<compile_context>
chip_gen: v5e
topology: v5e:2x2
jax: 0.10.0
libtpu: 0.0.40
codegen_flags: <defaults>
</compile_context>

<pallas_src>
import functools

import jax
import jax.numpy as jnp
from jax.experimental import pallas as pl
from jax.experimental.pallas import tpu as pltpu

CP = 128       # padded channel width (lane-dense)
KSIZE = 3      # conv kernel size
STRIDE = 2     # conv stride


def _make_fused_kernel(spatials, k1p):
    """spatials: per-conv-layer (OH, OW); last must be (1, 1)."""
    n_layers = len(spatials)
    oh1, ow1 = spatials[0]

    def kernel(p1_ref, w1_ref, wrest_ref, wh_ref, bias_ref, probs_ref, feats_ref):
        B = p1_ref.shape[0]
        biases = bias_ref[...]                                 # (8, CP) f32

        # ---- layer 1: wrapper-built lane-aligned patches, one MXU dot ----
        p1 = p1_ref[...].reshape(B * oh1 * ow1, k1p)           # (B*64, k1p) bf16
        h = jnp.dot(p1, w1_ref[...], preferred_element_type=jnp.float32)
        h = jnp.maximum(h + biases[0:1, :], 0.0)               # (B*64, CP) f32

        # ---- layers 2..n: in-register tap gather + single full-K dot ----
        for layer in range(1, n_layers):
            ih, iw = spatials[layer - 1]
            oh, ow = spatials[layer]
            hb = h.astype(jnp.bfloat16).reshape(B, ih, iw, CP)
            # zero-pad spatially by 1 via concatenation (value-level, no ref ops)
            zr = jnp.zeros((B, 1, iw, CP), jnp.bfloat16)
            xp = jnp.concatenate([zr, hb, zr], axis=1)         # (B, ih+2, iw, CP)
            zc = jnp.zeros((B, ih + 2, 1, CP), jnp.bfloat16)
            xp = jnp.concatenate([zc, xp, zc], axis=2)         # (B, ih+2, iw+2, CP)
            # parity split: xs[b, q, p, q', p', c] == xp[b, 2q+p, 2q'+p', c]
            xs = xp.reshape(B, (ih + 2) // 2, 2, (iw + 2) // 2, 2, CP)
            taps = []
            for i in range(KSIZE):
                qi, pi = i // 2, i % 2
                for j in range(KSIZE):
                    qj, pj = j // 2, j % 2
                    # tap (i,j): xp[:, 2*oh_+i, 2*ow_+j, :] for all outputs
                    t = xs[:, qi:qi + oh, pi, qj:qj + ow, pj, :]   # (B, oh, ow, CP)
                    taps.append(t.reshape(B * oh * ow, CP))
            patches = jnp.concatenate(taps, axis=-1)           # (B*oh*ow, 9*CP) bf16
            w = wrest_ref[(layer - 1) * KSIZE * KSIZE * CP:
                          layer * KSIZE * KSIZE * CP, :]       # (9*CP, CP) bf16
            acc = jnp.dot(patches, w, preferred_element_type=jnp.float32)
            h = jnp.maximum(acc + biases[layer:layer + 1, :], 0.0)

        # ---- head: dropout(eval)=identity, Linear + Sigmoid ----
        feats_ref[...] = h                                     # (B, CP) f32 features
        logits = jnp.dot(h.astype(jnp.bfloat16), wh_ref[...],
                         preferred_element_type=jnp.float32)
        logits = logits + biases[n_layers:n_layers + 1, :]
        probs_ref[...] = 1.0 / (1.0 + jnp.exp(-logits))        # (B, CP) f32

    return kernel


def _fused_forward(x_nchw, params, *, c_in, spatials, batch_block):
    """Fused feature-extractor + classifier head.

    Returns (probs_padded (N,128) f32, feats (N,128) f32)."""
    w1, wrest, wh, biases = params
    N = x_nchw.shape[0]
    oh1, ow1 = spatials[0]
    k1 = KSIZE * KSIZE * c_in
    k1p = w1.shape[0]

    # NCHW -> NHWC once; layer-1 im2col + K padding done by XLA (cheap, one-off).
    x = jnp.transpose(x_nchw.astype(jnp.float32), (0, 2, 3, 1))
    xpad = jnp.pad(x, ((0, 0), (1, 1), (1, 1), (0, 0)))
    cols = [xpad[:, i:i + STRIDE * oh1:STRIDE, j:j + STRIDE * ow1:STRIDE, :]
            for i in range(KSIZE) for j in range(KSIZE)]
    p1 = jnp.concatenate(cols, axis=-1)                        # (N, 8, 8, 27)
    p1 = jnp.pad(p1, ((0, 0), (0, 0), (0, 0), (0, k1p - k1)))
    p1 = p1.reshape(N, oh1 * ow1, k1p).astype(jnp.bfloat16)

    # Batch-block the grid.  For large N, raise batch_block toward 128-256 on
    # v6e/v7x (2x256 MXU) subject to VMEM; keep grid length >= 2 on v7x so the
    # two TensorCores both get work.
    if N <= batch_block:
        B, n_pad = N, N
    else:
        B = max(8, (batch_block // 8) * 8)
        n_pad = pl.cdiv(N, B) * B
        if n_pad != N:
            p1 = jnp.pad(p1, ((0, n_pad - N), (0, 0), (0, 0)))
    grid = (n_pad // B,)

    in_specs = [
        pl.BlockSpec((B, oh1 * ow1, k1p), lambda n: (n, 0, 0)),
        pl.BlockSpec(w1.shape, lambda n: (0, 0)),      # weights resident in VMEM
        pl.BlockSpec(wrest.shape, lambda n: (0, 0)),
        pl.BlockSpec(wh.shape, lambda n: (0, 0)),
        pl.BlockSpec(biases.shape, lambda n: (0, 0)),
    ]
    out_specs = (pl.BlockSpec((B, CP), lambda n: (n, 0)),
                 pl.BlockSpec((B, CP), lambda n: (n, 0)))
    out_shape = (jax.ShapeDtypeStruct((n_pad, CP), jnp.float32),   # sigmoid probs (padded)
                 jax.ShapeDtypeStruct((n_pad, CP), jnp.float32))   # extractor features

    flops = 2 * n_pad * (oh1 * ow1 * k1p * CP
                         + sum(oh * ow * KSIZE * KSIZE * CP * CP
                               for oh, ow in spatials[1:])
                         + CP * CP)
    bytes_accessed = (p1.size * 2 + (w1.size + wrest.size + wh.size) * 2
                      + biases.size * 4 + 2 * n_pad * CP * 4)
    cost = pl.CostEstimate(flops=flops, transcendentals=n_pad * CP,
                           bytes_accessed=bytes_accessed)

    probs, feats = pl.pallas_call(
        _make_fused_kernel(spatials, k1p),
        grid=grid,
        in_specs=in_specs,
        out_specs=out_specs,
        out_shape=out_shape,
        compiler_params=pltpu.CompilerParams(
            dimension_semantics=("parallel",),
            vmem_limit_bytes=48 * 1024 * 1024),
        cost_estimate=cost,
    )(p1, w1, wrest, wh, biases)
    return probs[:N], feats[:N]


class ClfImgPallas:
    """Pallas re-implementation of ClfImg.forward:
    feature extractor (stride-2 conv stack) + dropout(eval-identity) +
    Linear(num_layers_img*DIM_img, 40) + Sigmoid."""

    def __init__(self, key, image_channels=3, image_size=16, dim_img=32,
                 num_layers_img=4, num_attributes=40, batch_block=64):
        assert image_size == 2 ** num_layers_img, (
            "representative extractor halves spatial size per layer to 1x1")
        self.num_attributes = num_attributes

        chans = [image_channels] + [dim_img * (i + 1) for i in range(num_layers_img)]
        assert chans[-1] == num_layers_img * dim_img <= CP
        keys = jax.random.split(key, num_layers_img + 2)

        # PyTorch-layout float32 master parameters.
        self.conv_ws, self.conv_bs = [], []
        for i in range(num_layers_img):
            fan_in = chans[i] * KSIZE * KSIZE
            w = jax.random.normal(keys[i], (chans[i + 1], chans[i], KSIZE, KSIZE),
                                  dtype=jnp.float32) * (1.0 / fan_in) ** 0.5
            self.conv_ws.append(w)
            self.conv_bs.append(jnp.zeros((chans[i + 1],), dtype=jnp.float32))

        feat = num_layers_img * dim_img
        self.lin_w = (jax.random.normal(keys[-2], (feat, num_attributes),
                                        dtype=jnp.float32) * (1.0 / feat) ** 0.5)
        self.lin_b = (jax.random.normal(keys[-1], (num_attributes,),
                                        dtype=jnp.float32) * 0.01)

        # ---- pre-packed, channel-padded kernel weights (resident in VMEM) ----
        k1 = KSIZE * KSIZE * image_channels
        k1p = -(-k1 // 8) * 8                                    # 27 -> 32
        w0 = jnp.transpose(self.conv_ws[0], (2, 3, 1, 0)).reshape(k1, chans[1])
        self._w1 = jnp.pad(w0, ((0, k1p - k1), (0, CP - chans[1]))).astype(jnp.bfloat16)

        wrest = []
        for li in range(1, num_layers_img):
            w = self.conv_ws[li]
            cout, cin = w.shape[0], w.shape[1]
            whwio = jnp.transpose(w, (2, 3, 1, 0))               # (kh, kw, cin, cout)
            whwio = jnp.pad(whwio, ((0, 0), (0, 0), (0, CP - cin), (0, CP - cout)))
            wrest.append(whwio.reshape(KSIZE * KSIZE * CP, CP))
        self._wrest = jnp.concatenate(wrest, axis=0).astype(jnp.bfloat16)

        self._wh = jnp.pad(self.lin_w,
                           ((0, CP - feat), (0, CP - num_attributes))).astype(jnp.bfloat16)

        brows = [jnp.pad(b, (0, CP - b.shape[0])) for b in self.conv_bs]
        brows.append(jnp.pad(self.lin_b, (0, CP - num_attributes)))
        bias = jnp.stack(brows, axis=0)
        n_bias_rows = max(8, num_layers_img + 1)
        self._bias = jnp.pad(bias, ((0, n_bias_rows - bias.shape[0]), (0, 0))
                             ).astype(jnp.float32)

        spatials, s = [], image_size
        for _ in range(num_layers_img):
            s //= 2
            spatials.append((s, s))
        assert spatials[-1] == (1, 1)
        self._spatials = tuple(spatials)

        self._forward = jax.jit(functools.partial(
            _fused_forward, c_in=image_channels, spatials=self._spatials,
            batch_block=batch_block))

    def _run(self, x_img_nchw):
        return self._forward(x_img_nchw,
                             (self._w1, self._wrest, self._wh, self._bias))

    def get_activations(self, x_img_nchw):
        _, feats = self._run(x_img_nchw)
        n = feats.shape[0]
        return feats.reshape(n, -1, 1, 1)                     # (N, num_layers*DIM, 1, 1)

    def __call__(self, x_img_nchw):
        probs_pad, _ = self._run(x_img_nchw)
        return probs_pad[:, :self.num_attributes]             # (N, 40) sigmoid probs


def _reference_forward(model, x_nchw):
    """Pure-JAX (XLA) reference with matching bf16/f32 precision."""
    x = jnp.transpose(x_nchw.astype(jnp.float32), (0, 2, 3, 1)).astype(jnp.bfloat16)
    for w, b in zip(model.conv_ws, model.conv_bs):
        rhs = jnp.transpose(w, (2, 3, 1, 0)).astype(jnp.bfloat16)   # HWIO
        y = jax.lax.conv_general_dilated(
            x, rhs, window_strides=(STRIDE, STRIDE), padding=((1, 1), (1, 1)),
            dimension_numbers=("NHWC", "HWIO", "NHWC"),
            preferred_element_type=jnp.float32)
        x = jnp.maximum(y + b.reshape(1, 1, 1, -1), 0.0).astype(jnp.bfloat16)
    feats = x.reshape(x.shape[0], -1)                               # (N, 128) bf16
    logits = jnp.dot(feats, model.lin_w.astype(jnp.bfloat16),
                     preferred_element_type=jnp.float32) + model.lin_b
    return 1.0 / (1.0 + jnp.exp(-logits))


if __name__ == "__main__":
    key = jax.random.PRNGKey(0)
    k_params, k_data = jax.random.split(key)

    # batch=2, channels=3, spatial 16x16; four stride-2 convs: 16->8->4->2->1,
    # final feature width = num_layers_img * DIM_img = 4 * 32 = 128.
    x_img = jax.random.normal(k_data, (2, 3, 16, 16), dtype=jnp.float32)

    model = ClfImgPallas(k_params, image_channels=3, image_size=16,
                         dim_img=32, num_layers_img=4, num_attributes=40)

    out = jax.block_until_ready(model(x_img))
    assert out.shape == (2, 40), out.shape
    assert bool(jnp.all((out >= 0.0) & (out <= 1.0)))

    ref = jax.block_until_ready(_reference_forward(model, x_img))
    max_err = float(jnp.max(jnp.abs(out - ref)))
    assert max_err < 1e-2, f"mismatch vs pure-JAX reference: {max_err}"

    acts = jax.block_until_ready(model.get_activations(x_img))
    assert acts.shape == (2, 128, 1, 1), acts.shape

    print("KERNEL_OK")
</pallas_src>

<mosaic_0001>
module attributes {stable_mosaic.version = 11 : i64} {
  func.func @kernel(%arg0: i32, %arg1: memref<2x64x32xbf16, #tpu.memory_space<vmem>>, %arg2: memref<32x128xbf16, #tpu.memory_space<vmem>>, %arg3: memref<3456x128xbf16, #tpu.memory_space<vmem>>, %arg4: memref<128x128xbf16, #tpu.memory_space<vmem>>, %arg5: memref<8x128xf32, #tpu.memory_space<vmem>>, %arg6: memref<2x128xf32, #tpu.memory_space<vmem>>, %arg7: memref<2x128xf32, #tpu.memory_space<vmem>>) attributes {dimension_semantics = [#tpu.dimension_semantics<parallel>], iteration_bounds = array<i64: 1>, scalar_prefetch = 0 : i64, scratch_operands = 0 : i64, tpu.core_type = #tpu.core_type<tc>, window_params = [{transform_indices = @transform_0, window_bounds = array<i64: 2, 64, 32>}, {pipeline_mode = #tpu.pipeline_mode<synchronous>, transform_indices = @transform_1, window_bounds = array<i64: 32, 128>}, {pipeline_mode = #tpu.pipeline_mode<synchronous>, transform_indices = @transform_2, window_bounds = array<i64: 3456, 128>}, {pipeline_mode = #tpu.pipeline_mode<synchronous>, transform_indices = @transform_3, window_bounds = array<i64: 128, 128>}, {pipeline_mode = #tpu.pipeline_mode<synchronous>, transform_indices = @transform_4, window_bounds = array<i64: 8, 128>}, {transform_indices = @transform_5, window_bounds = array<i64: 2, 128>}, {transform_indices = @transform_6, window_bounds = array<i64: 2, 128>}]} {
    %c0 = arith.constant 0 : index
    %c0_0 = arith.constant 0 : index
    %0 = vector.load %arg5[%c0, %c0_0] : memref<8x128xf32, #tpu.memory_space<vmem>>, vector<8x128xf32>
    %c0_1 = arith.constant 0 : index
    %c0_2 = arith.constant 0 : index
    %c0_3 = arith.constant 0 : index
    %1 = vector.load %arg1[%c0_1, %c0_2, %c0_3] : memref<2x64x32xbf16, #tpu.memory_space<vmem>>, vector<2x64x32xbf16>
    %2 = vector.shape_cast %1 : vector<2x64x32xbf16> to vector<128x32xbf16>
    %c0_4 = arith.constant 0 : index
    %c0_5 = arith.constant 0 : index
    %3 = vector.load %arg2[%c0_4, %c0_5] : memref<32x128xbf16, #tpu.memory_space<vmem>>, vector<32x128xbf16>
    %cst = arith.constant dense<0.000000e+00> : vector<128x128xf32>
    %4 = tpu.matmul %2, %3, %cst {dimension_numbers = #tpu.dot_dimension_numbers<[1], [0], [0], [1], [0, 0, 1, 1], [], []>} : vector<128x32xbf16>, vector<32x128xbf16>, vector<128x128xf32> -> vector<128x128xf32>
    %5 = vector.extract_strided_slice %0 {offsets = [0, 0], sizes = [1, 128], strides = [1, 1]} : vector<8x128xf32> to vector<1x128xf32>
    %6 = vector.broadcast %5 : vector<1x128xf32> to vector<128x128xf32>
    %7 = arith.addf %4, %6 : vector<128x128xf32>
    %cst_6 = arith.constant 0.000000e+00 : f32
    %8 = vector.broadcast %cst_6 : f32 to vector<128x128xf32>
    %9 = arith.maximumf %7, %8 : vector<128x128xf32>
    %10 = arith.truncf %9 : vector<128x128xf32> to vector<128x128xbf16>
    %11 = vector.shape_cast %10 : vector<128x128xbf16> to vector<2x8x8x128xbf16>
    %cst_7 = arith.constant 0.000000e+00 : bf16
    %12 = vector.broadcast %cst_7 : bf16 to vector<2x1x8x128xbf16>
    %13 = tpu.concatenate %12, %11, %12 in 1 : vector<2x1x8x128xbf16>, vector<2x8x8x128xbf16>, vector<2x1x8x128xbf16> -> vector<2x10x8x128xbf16>
    %cst_8 = arith.constant 0.000000e+00 : bf16
    %14 = vector.broadcast %cst_8 : bf16 to vector<2x10x1x128xbf16>
    %15 = tpu.concatenate %14, %13, %14 in 2 : vector<2x10x1x128xbf16>, vector<2x10x8x128xbf16>, vector<2x10x1x128xbf16> -> vector<2x10x10x128xbf16>
    %16 = vector.shape_cast %15 : vector<2x10x10x128xbf16> to vector<2x5x2x5x2x128xbf16>
    %17 = vector.extract_strided_slice %16 {offsets = [0, 0, 0, 0, 0, 0], sizes = [2, 4, 1, 4, 1, 128], strides = [1, 1, 1, 1, 1, 1]} : vector<2x5x2x5x2x128xbf16> to vector<2x4x1x4x1x128xbf16>
    %18 = vector.shape_cast %17 : vector<2x4x1x4x1x128xbf16> to vector<2x4x4x128xbf16>
    %19 = vector.shape_cast %18 : vector<2x4x4x128xbf16> to vector<32x128xbf16>
    %20 = vector.extract_strided_slice %16 {offsets = [0, 0, 0, 0, 1, 0], sizes = [2, 4, 1, 4, 1, 128], strides = [1, 1, 1, 1, 1, 1]} : vector<2x5x2x5x2x128xbf16> to vector<2x4x1x4x1x128xbf16>
    %21 = vector.shape_cast %20 : vector<2x4x1x4x1x128xbf16> to vector<2x4x4x128xbf16>
    %22 = vector.shape_cast %21 : vector<2x4x4x128xbf16> to vector<32x128xbf16>
    %23 = vector.extract_strided_slice %16 {offsets = [0, 0, 0, 1, 0, 0], sizes = [2, 4, 1, 4, 1, 128], strides = [1, 1, 1, 1, 1, 1]} : vector<2x5x2x5x2x128xbf16> to vector<2x4x1x4x1x128xbf16>
    %24 = vector.shape_cast %23 : vector<2x4x1x4x1x128xbf16> to vector<2x4x4x128xbf16>
    %25 = vector.shape_cast %24 : vector<2x4x4x128xbf16> to vector<32x128xbf16>
    %26 = vector.extract_strided_slice %16 {offsets = [0, 0, 1, 0, 0, 0], sizes = [2, 4, 1, 4, 1, 128], strides = [1, 1, 1, 1, 1, 1]} : vector<2x5x2x5x2x128xbf16> to vector<2x4x1x4x1x128xbf16>
    %27 = vector.shape_cast %26 : vector<2x4x1x4x1x128xbf16> to vector<2x4x4x128xbf16>
    %28 = vector.shape_cast %27 : vector<2x4x4x128xbf16> to vector<32x128xbf16>
    %29 = vector.extract_strided_slice %16 {offsets = [0, 0, 1, 0, 1, 0], sizes = [2, 4, 1, 4, 1, 128], strides = [1, 1, 1, 1, 1, 1]} : vector<2x5x2x5x2x128xbf16> to vector<2x4x1x4x1x128xbf16>
    %30 = vector.shape_cast %29 : vector<2x4x1x4x1x128xbf16> to vector<2x4x4x128xbf16>
    %31 = vector.shape_cast %30 : vector<2x4x4x128xbf16> to vector<32x128xbf16>
    %32 = vector.extract_strided_slice %16 {offsets = [0, 0, 1, 1, 0, 0], sizes = [2, 4, 1, 4, 1, 128], strides = [1, 1, 1, 1, 1, 1]} : vector<2x5x2x5x2x128xbf16> to vector<2x4x1x4x1x128xbf16>
    %33 = vector.shape_cast %32 : vector<2x4x1x4x1x128xbf16> to vector<2x4x4x128xbf16>
    %34 = vector.shape_cast %33 : vector<2x4x4x128xbf16> to vector<32x128xbf16>
    %35 = vector.extract_strided_slice %16 {offsets = [0, 1, 0, 0, 0, 0], sizes = [2, 4, 1, 4, 1, 128], strides = [1, 1, 1, 1, 1, 1]} : vector<2x5x2x5x2x128xbf16> to vector<2x4x1x4x1x128xbf16>
    %36 = vector.shape_cast %35 : vector<2x4x1x4x1x128xbf16> to vector<2x4x4x128xbf16>
    %37 = vector.shape_cast %36 : vector<2x4x4x128xbf16> to vector<32x128xbf16>
    %38 = vector.extract_strided_slice %16 {offsets = [0, 1, 0, 0, 1, 0], sizes = [2, 4, 1, 4, 1, 128], strides = [1, 1, 1, 1, 1, 1]} : vector<2x5x2x5x2x128xbf16> to vector<2x4x1x4x1x128xbf16>
    %39 = vector.shape_cast %38 : vector<2x4x1x4x1x128xbf16> to vector<2x4x4x128xbf16>
    %40 = vector.shape_cast %39 : vector<2x4x4x128xbf16> to vector<32x128xbf16>
    %41 = vector.extract_strided_slice %16 {offsets = [0, 1, 0, 1, 0, 0], sizes = [2, 4, 1, 4, 1, 128], strides = [1, 1, 1, 1, 1, 1]} : vector<2x5x2x5x2x128xbf16> to vector<2x4x1x4x1x128xbf16>
    %42 = vector.shape_cast %41 : vector<2x4x1x4x1x128xbf16> to vector<2x4x4x128xbf16>
    %43 = vector.shape_cast %42 : vector<2x4x4x128xbf16> to vector<32x128xbf16>
    %44 = tpu.concatenate %19, %22, %25, %28, %31, %34, %37, %40, %43 in 1 : vector<32x128xbf16>, vector<32x128xbf16>, vector<32x128xbf16>, vector<32x128xbf16>, vector<32x128xbf16>, vector<32x128xbf16>, vector<32x128xbf16>, vector<32x128xbf16>, vector<32x128xbf16> -> vector<32x1152xbf16>
    %c0_9 = arith.constant 0 : index
    %c0_10 = arith.constant 0 : index
    %45 = vector.load %arg3[%c0_9, %c0_10] : memref<3456x128xbf16, #tpu.memory_space<vmem>>, vector<1152x128xbf16>
    %cst_11 = arith.constant dense<0.000000e+00> : vector<32x128xf32>
    %46 = tpu.matmul %44, %45, %cst_11 {dimension_numbers = #tpu.dot_dimension_numbers<[1], [0], [0], [1], [0, 0, 1, 1], [], []>} : vector<32x1152xbf16>, vector<1152x128xbf16>, vector<32x128xf32> -> vector<32x128xf32>
    %47 = vector.extract_strided_slice %0 {offsets = [1, 0], sizes = [1, 128], strides = [1, 1]} : vector<8x128xf32> to vector<1x128xf32>
    %48 = vector.broadcast %47 : vector<1x128xf32> to vector<32x128xf32>
    %49 = arith.addf %46, %48 : vector<32x128xf32>
    %cst_12 = arith.constant 0.000000e+00 : f32
    %50 = vector.broadcast %cst_12 : f32 to vector<32x128xf32>
    %51 = arith.maximumf %49, %50 : vector<32x128xf32>
    %52 = arith.truncf %51 : vector<32x128xf32> to vector<32x128xbf16>
    %53 = vector.shape_cast %52 : vector<32x128xbf16> to vector<2x4x4x128xbf16>
    %cst_13 = arith.constant 0.000000e+00 : bf16
    %54 = vector.broadcast %cst_13 : bf16 to vector<2x1x4x128xbf16>
    %55 = tpu.concatenate %54, %53, %54 in 1 : vector<2x1x4x128xbf16>, vector<2x4x4x128xbf16>, vector<2x1x4x128xbf16> -> vector<2x6x4x128xbf16>
    %cst_14 = arith.constant 0.000000e+00 : bf16
    %56 = vector.broadcast %cst_14 : bf16 to vector<2x6x1x128xbf16>
    %57 = tpu.concatenate %56, %55, %56 in 2 : vector<2x6x1x128xbf16>, vector<2x6x4x128xbf16>, vector<2x6x1x128xbf16> -> vector<2x6x6x128xbf16>
    %58 = vector.shape_cast %57 : vector<2x6x6x128xbf16> to vector<2x3x2x3x2x128xbf16>
    %59 = vector.extract_strided_slice %58 {offsets = [0, 0, 0, 0, 0, 0], sizes = [2, 2, 1, 2, 1, 128], strides = [1, 1, 1, 1, 1, 1]} : vector<2x3x2x3x2x128xbf16> to vector<2x2x1x2x1x128xbf16>
    %60 = vector.shape_cast %59 : vector<2x2x1x2x1x128xbf16> to vector<2x2x2x128xbf16>
    %61 = vector.shape_cast %60 : vector<2x2x2x128xbf16> to vector<8x128xbf16>
    %62 = vector.extract_strided_slice %58 {offsets = [0, 0, 0, 0, 1, 0], sizes = [2, 2, 1, 2, 1, 128], strides = [1, 1, 1, 1, 1, 1]} : vector<2x3x2x3x2x128xbf16> to vector<2x2x1x2x1x128xbf16>
    %63 = vector.shape_cast %62 : vector<2x2x1x2x1x128xbf16> to vector<2x2x2x128xbf16>
    %64 = vector.shape_cast %63 : vector<2x2x2x128xbf16> to vector<8x128xbf16>
    %65 = vector.extract_strided_slice %58 {offsets = [0, 0, 0, 1, 0, 0], sizes = [2, 2, 1, 2, 1, 128], strides = [1, 1, 1, 1, 1, 1]} : vector<2x3x2x3x2x128xbf16> to vector<2x2x1x2x1x128xbf16>
    %66 = vector.shape_cast %65 : vector<2x2x1x2x1x128xbf16> to vector<2x2x2x128xbf16>
    %67 = vector.shape_cast %66 : vector<2x2x2x128xbf16> to vector<8x128xbf16>
    %68 = vector.extract_strided_slice %58 {offsets = [0, 0, 1, 0, 0, 0], sizes = [2, 2, 1, 2, 1, 128], strides = [1, 1, 1, 1, 1, 1]} : vector<2x3x2x3x2x128xbf16> to vector<2x2x1x2x1x128xbf16>
    %69 = vector.shape_cast %68 : vector<2x2x1x2x1x128xbf16> to vector<2x2x2x128xbf16>
    %70 = vector.shape_cast %69 : vector<2x2x2x128xbf16> to vector<8x128xbf16>
    %71 = vector.extract_strided_slice %58 {offsets = [0, 0, 1, 0, 1, 0], sizes = [2, 2, 1, 2, 1, 128], strides = [1, 1, 1, 1, 1, 1]} : vector<2x3x2x3x2x128xbf16> to vector<2x2x1x2x1x128xbf16>
    %72 = vector.shape_cast %71 : vector<2x2x1x2x1x128xbf16> to vector<2x2x2x128xbf16>
    %73 = vector.shape_cast %72 : vector<2x2x2x128xbf16> to vector<8x128xbf16>
    %74 = vector.extract_strided_slice %58 {offsets = [0, 0, 1, 1, 0, 0], sizes = [2, 2, 1, 2, 1, 128], strides = [1, 1, 1, 1, 1, 1]} : vector<2x3x2x3x2x128xbf16> to vector<2x2x1x2x1x128xbf16>
    %75 = vector.shape_cast %74 : vector<2x2x1x2x1x128xbf16> to vector<2x2x2x128xbf16>
    %76 = vector.shape_cast %75 : vector<2x2x2x128xbf16> to vector<8x128xbf16>
    %77 = vector.extract_strided_slice %58 {offsets = [0, 1, 0, 0, 0, 0], sizes = [2, 2, 1, 2, 1, 128], strides = [1, 1, 1, 1, 1, 1]} : vector<2x3x2x3x2x128xbf16> to vector<2x2x1x2x1x128xbf16>
    %78 = vector.shape_cast %77 : vector<2x2x1x2x1x128xbf16> to vector<2x2x2x128xbf16>
    %79 = vector.shape_cast %78 : vector<2x2x2x128xbf16> to vector<8x128xbf16>
    %80 = vector.extract_strided_slice %58 {offsets = [0, 1, 0, 0, 1, 0], sizes = [2, 2, 1, 2, 1, 128], strides = [1, 1, 1, 1, 1, 1]} : vector<2x3x2x3x2x128xbf16> to vector<2x2x1x2x1x128xbf16>
    %81 = vector.shape_cast %80 : vector<2x2x1x2x1x128xbf16> to vector<2x2x2x128xbf16>
    %82 = vector.shape_cast %81 : vector<2x2x2x128xbf16> to vector<8x128xbf16>
    %83 = vector.extract_strided_slice %58 {offsets = [0, 1, 0, 1, 0, 0], sizes = [2, 2, 1, 2, 1, 128], strides = [1, 1, 1, 1, 1, 1]} : vector<2x3x2x3x2x128xbf16> to vector<2x2x1x2x1x128xbf16>
    %84 = vector.shape_cast %83 : vector<2x2x1x2x1x128xbf16> to vector<2x2x2x128xbf16>
    %85 = vector.shape_cast %84 : vector<2x2x2x128xbf16> to vector<8x128xbf16>
    %86 = tpu.concatenate %61, %64, %67, %70, %73, %76, %79, %82, %85 in 1 : vector<8x128xbf16>, vector<8x128xbf16>, vector<8x128xbf16>, vector<8x128xbf16>, vector<8x128xbf16>, vector<8x128xbf16>, vector<8x128xbf16>, vector<8x128xbf16>, vector<8x128xbf16> -> vector<8x1152xbf16>
    %c1152 = arith.constant 1152 : index
    %c0_15 = arith.constant 0 : index
    %87 = vector.load %arg3[%c1152, %c0_15] : memref<3456x128xbf16, #tpu.memory_space<vmem>>, vector<1152x128xbf16>
    %cst_16 = arith.constant dense<0.000000e+00> : vector<8x128xf32>
    %88 = tpu.matmul %86, %87, %cst_16 {dimension_numbers = #tpu.dot_dimension_numbers<[1], [0], [0], [1], [0, 0, 1, 1], [], []>} : vector<8x1152xbf16>, vector<1152x128xbf16>, vector<8x128xf32> -> vector<8x128xf32>
    %89 = vector.extract_strided_slice %0 {offsets = [2, 0], sizes = [1, 128], strides = [1, 1]} : vector<8x128xf32> to vector<1x128xf32>
    %90 = vector.broadcast %89 : vector<1x128xf32> to vector<8x128xf32>
    %91 = arith.addf %88, %90 : vector<8x128xf32>
    %cst_17 = arith.constant 0.000000e+00 : f32
    %92 = vector.broadcast %cst_17 : f32 to vector<8x128xf32>
    %93 = arith.maximumf %91, %92 : vector<8x128xf32>
    %94 = arith.truncf %93 : vector<8x128xf32> to vector<8x128xbf16>
    %95 = vector.shape_cast %94 : vector<8x128xbf16> to vector<2x2x2x128xbf16>
    %cst_18 = arith.constant 0.000000e+00 : bf16
    %96 = vector.broadcast %cst_18 : bf16 to vector<2x1x2x128xbf16>
    %97 = tpu.concatenate %96, %95, %96 in 1 : vector<2x1x2x128xbf16>, vector<2x2x2x128xbf16>, vector<2x1x2x128xbf16> -> vector<2x4x2x128xbf16>
    %cst_19 = arith.constant 0.000000e+00 : bf16
    %98 = vector.broadcast %cst_19 : bf16 to vector<2x4x1x128xbf16>
    %99 = tpu.concatenate %98, %97, %98 in 2 : vector<2x4x1x128xbf16>, vector<2x4x2x128xbf16>, vector<2x4x1x128xbf16> -> vector<2x4x4x128xbf16>
    %100 = vector.shape_cast %99 : vector<2x4x4x128xbf16> to vector<2x2x2x2x2x128xbf16>
    %101 = vector.extract_strided_slice %100 {offsets = [0, 0, 0, 0, 0, 0], sizes = [2, 1, 1, 1, 1, 128], strides = [1, 1, 1, 1, 1, 1]} : vector<2x2x2x2x2x128xbf16> to vector<2x1x1x1x1x128xbf16>
    %102 = vector.shape_cast %101 : vector<2x1x1x1x1x128xbf16> to vector<2x1x1x128xbf16>
    %103 = vector.shape_cast %102 : vector<2x1x1x128xbf16> to vector<2x128xbf16>
    %104 = vector.extract_strided_slice %100 {offsets = [0, 0, 0, 0, 1, 0], sizes = [2, 1, 1, 1, 1, 128], strides = [1, 1, 1, 1, 1, 1]} : vector<2x2x2x2x2x128xbf16> to vector<2x1x1x1x1x128xbf16>
    %105 = vector.shape_cast %104 : vector<2x1x1x1x1x128xbf16> to vector<2x1x1x128xbf16>
    %106 = vector.shape_cast %105 : vector<2x1x1x128xbf16> to vector<2x128xbf16>
    %107 = vector.extract_strided_slice %100 {offsets = [0, 0, 0, 1, 0, 0], sizes = [2, 1, 1, 1, 1, 128], strides = [1, 1, 1, 1, 1, 1]} : vector<2x2x2x2x2x128xbf16> to vector<2x1x1x1x1x128xbf16>
    %108 = vector.shape_cast %107 : vector<2x1x1x1x1x128xbf16> to vector<2x1x1x128xbf16>
    %109 = vector.shape_cast %108 : vector<2x1x1x128xbf16> to vector<2x128xbf16>
    %110 = vector.extract_strided_slice %100 {offsets = [0, 0, 1, 0, 0, 0], sizes = [2, 1, 1, 1, 1, 128], strides = [1, 1, 1, 1, 1, 1]} : vector<2x2x2x2x2x128xbf16> to vector<2x1x1x1x1x128xbf16>
    %111 = vector.shape_cast %110 : vector<2x1x1x1x1x128xbf16> to vector<2x1x1x128xbf16>
    %112 = vector.shape_cast %111 : vector<2x1x1x128xbf16> to vector<2x128xbf16>
    %113 = vector.extract_strided_slice %100 {offsets = [0, 0, 1, 0, 1, 0], sizes = [2, 1, 1, 1, 1, 128], strides = [1, 1, 1, 1, 1, 1]} : vector<2x2x2x2x2x128xbf16> to vector<2x1x1x1x1x128xbf16>
    %114 = vector.shape_cast %113 : vector<2x1x1x1x1x128xbf16> to vector<2x1x1x128xbf16>
    %115 = vector.shape_cast %114 : vector<2x1x1x128xbf16> to vector<2x128xbf16>
    %116 = vector.extract_strided_slice %100 {offsets = [0, 0, 1, 1, 0, 0], sizes = [2, 1, 1, 1, 1, 128], strides = [1, 1, 1, 1, 1, 1]} : vector<2x2x2x2x2x128xbf16> to vector<2x1x1x1x1x128xbf16>
    %117 = vector.shape_cast %116 : vector<2x1x1x1x1x128xbf16> to vector<2x1x1x128xbf16>
    %118 = vector.shape_cast %117 : vector<2x1x1x128xbf16> to vector<2x128xbf16>
    %119 = vector.extract_strided_slice %100 {offsets = [0, 1, 0, 0, 0, 0], sizes = [2, 1, 1, 1, 1, 128], strides = [1, 1, 1, 1, 1, 1]} : vector<2x2x2x2x2x128xbf16> to vector<2x1x1x1x1x128xbf16>
    %120 = vector.shape_cast %119 : vector<2x1x1x1x1x128xbf16> to vector<2x1x1x128xbf16>
    %121 = vector.shape_cast %120 : vector<2x1x1x128xbf16> to vector<2x128xbf16>
    %122 = vector.extract_strided_slice %100 {offsets = [0, 1, 0, 0, 1, 0], sizes = [2, 1, 1, 1, 1, 128], strides = [1, 1, 1, 1, 1, 1]} : vector<2x2x2x2x2x128xbf16> to vector<2x1x1x1x1x128xbf16>
    %123 = vector.shape_cast %122 : vector<2x1x1x1x1x128xbf16> to vector<2x1x1x128xbf16>
    %124 = vector.shape_cast %123 : vector<2x1x1x128xbf16> to vector<2x128xbf16>
    %125 = vector.extract_strided_slice %100 {offsets = [0, 1, 0, 1, 0, 0], sizes = [2, 1, 1, 1, 1, 128], strides = [1, 1, 1, 1, 1, 1]} : vector<2x2x2x2x2x128xbf16> to vector<2x1x1x1x1x128xbf16>
    %126 = vector.shape_cast %125 : vector<2x1x1x1x1x128xbf16> to vector<2x1x1x128xbf16>
    %127 = vector.shape_cast %126 : vector<2x1x1x128xbf16> to vector<2x128xbf16>
    %128 = tpu.concatenate %103, %106, %109, %112, %115, %118, %121, %124, %127 in 1 : vector<2x128xbf16>, vector<2x128xbf16>, vector<2x128xbf16>, vector<2x128xbf16>, vector<2x128xbf16>, vector<2x128xbf16>, vector<2x128xbf16>, vector<2x128xbf16>, vector<2x128xbf16> -> vector<2x1152xbf16>
    %c2304 = arith.constant 2304 : index
    %c0_20 = arith.constant 0 : index
    %129 = vector.load %arg3[%c2304, %c0_20] : memref<3456x128xbf16, #tpu.memory_space<vmem>>, vector<1152x128xbf16>
    %cst_21 = arith.constant dense<0.000000e+00> : vector<2x128xf32>
    %130 = tpu.matmul %128, %129, %cst_21 {dimension_numbers = #tpu.dot_dimension_numbers<[1], [0], [0], [1], [0, 0, 1, 1], [], []>} : vector<2x1152xbf16>, vector<1152x128xbf16>, vector<2x128xf32> -> vector<2x128xf32>
    %131 = vector.extract_strided_slice %0 {offsets = [3, 0], sizes = [1, 128], strides = [1, 1]} : vector<8x128xf32> to vector<1x128xf32>
    %132 = vector.broadcast %131 : vector<1x128xf32> to vector<2x128xf32>
    %133 = arith.addf %130, %132 : vector<2x128xf32>
    %cst_22 = arith.constant 0.000000e+00 : f32
    %134 = vector.broadcast %cst_22 : f32 to vector<2x128xf32>
    %135 = arith.maximumf %133, %134 : vector<2x128xf32>
    %c0_23 = arith.constant 0 : index
    %c0_24 = arith.constant 0 : index
    %136 = vector.load %arg7[%c0_23, %c0_24] : memref<2x128xf32, #tpu.memory_space<vmem>>, vector<2x128xf32>
    tpu.vector_store %arg7[%c0_23, %c0_24], %135 {strides = array<i32>} : memref<2x128xf32, #tpu.memory_space<vmem>>, vector<2x128xf32>,
    %137 = arith.truncf %135 : vector<2x128xf32> to vector<2x128xbf16>
    %c0_25 = arith.constant 0 : index
    %c0_26 = arith.constant 0 : index
    %138 = vector.load %arg4[%c0_25, %c0_26] : memref<128x128xbf16, #tpu.memory_space<vmem>>, vector<128x128xbf16>
    %cst_27 = arith.constant dense<0.000000e+00> : vector<2x128xf32>
    %139 = tpu.matmul %137, %138, %cst_27 {dimension_numbers = #tpu.dot_dimension_numbers<[1], [0], [0], [1], [0, 0, 1, 1], [], []>} : vector<2x128xbf16>, vector<128x128xbf16>, vector<2x128xf32> -> vector<2x128xf32>
    %140 = vector.extract_strided_slice %0 {offsets = [4, 0], sizes = [1, 128], strides = [1, 1]} : vector<8x128xf32> to vector<1x128xf32>
    %141 = vector.broadcast %140 : vector<1x128xf32> to vector<2x128xf32>
    %142 = arith.addf %139, %141 : vector<2x128xf32>
    %cst_28 = arith.constant 0.000000e+00 : f32
    %143 = vector.broadcast %cst_28 : f32 to vector<2x128xf32>
    %144 = arith.subf %143, %142 : vector<2x128xf32>
    %145 = math.exp %144 : vector<2x128xf32>
    %cst_29 = arith.constant 1.000000e+00 : f32
    %146 = vector.broadcast %cst_29 : f32 to vector<2x128xf32>
    %147 = arith.addf %146, %145 : vector<2x128xf32>
    %cst_30 = arith.constant 1.000000e+00 : f32
    %148 = vector.broadcast %cst_30 : f32 to vector<2x128xf32>
    %149 = arith.divf %148, %147 : vector<2x128xf32>
    %c0_31 = arith.constant 0 : index
    %c0_32 = arith.constant 0 : index
    %150 = vector.load %arg6[%c0_31, %c0_32] : memref<2x128xf32, #tpu.memory_space<vmem>>, vector<2x128xf32>
    tpu.vector_store %arg6[%c0_31, %c0_32], %149 {strides = array<i32>} : memref<2x128xf32, #tpu.memory_space<vmem>>, vector<2x128xf32>,
    return
  }
  func.func @transform_0(%arg0: i32) -> (i32, i32, i32) {
    %c0_i32 = arith.constant 0 : i32
    %c0_i32_0 = arith.constant 0 : i32
    %c0_i32_1 = arith.constant 0 : i32
    return %arg0, %c0_i32, %c0_i32_0 : i32, i32, i32
  }
  func.func @transform_1(%arg0: i32) -> (i32, i32) {
    %c0_i32 = arith.constant 0 : i32
    %c0_i32_0 = arith.constant 0 : i32
    %c0_i32_1 = arith.constant 0 : i32
    return %c0_i32, %c0_i32_0 : i32, i32
  }
  func.func @transform_2(%arg0: i32) -> (i32, i32) {
    %c0_i32 = arith.constant 0 : i32
    %c0_i32_0 = arith.constant 0 : i32
    %c0_i32_1 = arith.constant 0 : i32
    return %c0_i32, %c0_i32_0 : i32, i32
  }
  func.func @transform_3(%arg0: i32) -> (i32, i32) {
    %c0_i32 = arith.constant 0 : i32
    %c0_i32_0 = arith.constant 0 : i32
    %c0_i32_1 = arith.constant 0 : i32
    return %c0_i32, %c0_i32_0 : i32, i32
  }
  func.func @transform_4(%arg0: i32) -> (i32, i32) {
    %c0_i32 = arith.constant 0 : i32
    %c0_i32_0 = arith.constant 0 : i32
    %c0_i32_1 = arith.constant 0 : i32
    return %c0_i32, %c0_i32_0 : i32, i32
  }
  func.func @transform_5(%arg0: i32) -> (i32, i32) {
    %c0_i32 = arith.constant 0 : i32
    %c0_i32_0 = arith.constant 0 : i32
    return %arg0, %c0_i32 : i32, i32
  }
  func.func @transform_6(%arg0: i32) -> (i32, i32) {
    %c0_i32 = arith.constant 0 : i32
    %c0_i32_0 = arith.constant 0 : i32
    return %arg0, %c0_i32 : i32, i32
  }
}

</mosaic_0001>

<bundles_post_ra>
// kernel: _fused_forward.1
= control target key start
LH: loop header
LB: loop body
LE: loop exit
PB: predicated region body
PF: predicated region fallthrough
CT: control target
= control target key end

     0   :  { %12 = vsyncpa [#allocation3], 0  ;;  %s8795_s0 = inlined_call_operand.vmem [shape: bf16[2,64,32], index: 0, kind: input, shape index: {}]   ;;  %s8796_s1 = inlined_call_operand.vmem [shape: bf16[32,128], index: 1, kind: input, shape index: {}]   ;;  %s8797_s2 = inlined_call_operand.vmem [shape: bf16[3456,128], index: 2, kind: input, shape index: {}]   ;;  %s8798_s3 = inlined_call_operand.vmem [shape: bf16[128,128], index: 3, kind: input, shape index: {}]   ;;  %s8799_s4 = inlined_call_operand.vmem [shape: f32[8,128], index: 4, kind: input, shape index: {}]   ;;  %s8800_s5 = inlined_call_operand.hbm [shape: f32[2,128], index: 5, kind: output, shape index: {0}]   ;;  %s8801_s6 = inlined_call_operand.hbm [shape: f32[2,128], index: 6, kind: output, shape index: {1}]  }
   0x1   :  { %v6268_v0 = vld [vmem:[%s8796_s1 + $0x8] sm:$0xff] }
   0x2   :  { %13 = vsyncpa [#allocation5], 0  ;;  %130 = vmatpush.bf16.msra.mxu0 %v6268_v0  ;;  %v6267_v1 = vld [vmem:[%s8796_s1] sm:$0xff]  ;;  %vm99_vm0 = vcmask 261120   ;;  %v6260_v3 = vld [vmem:[%s8795_s0 + $0x8] sm:$0xff]  ;;  %vm341_vm1 = vcmask 1040384  }
   0x3   :  { %v6259_v2 = vld [vmem:[%s8795_s0] sm:$0xff]  ;;  %v6261_v4 = vld [vmem:[%s8795_s0 + $0x10] sm:$0xff]  ;;  %v6262_v5 = vld [vmem:[%s8795_s0 + $0x18] sm:$0xff]  ;;  %vm342_vm2 = vsmask.f32 256  ;;  %v6555_v7 = vmov 0  }
   0x4   :  { %v6263_v6 = vld [vmem:[%s8795_s0 + $0x20] sm:$0xff]  ;;  %v208_v8 = vrot.slane %v6555_v7, 7  ;;  %vm6620_vm3 = vmand %vm341_vm1, %vm342_vm2  ;;  %v8872_v9 = vmov 0  ;;  %vm361_vm4 = vcmask 1044480   ;;  %vm362_vm5 = vsmask.f32 4352 }
   0x5   :  { %v8873_v9 = vsel %vm6620_vm3, 4294967295, %v8872_v9  ;;  %vm6624_vm6 = vmand %vm361_vm4, %vm362_vm5  ;;  %v8875_v10 = vmov 0  ;;  %v6264_v19 = vld [vmem:[%s8795_s0 + $0x28] sm:$0xff]  ;;  %v25_v21 = vld [vmem:[%s8799_s4] sm:$0xff]  ;;  %vm623_vm7 = vcmask 1041409   ;;  %vm626_vm8 = vcmask 1042434  }
   0x6   :  { %131 = vmatpush.bf16.msra.mxu0 %v6267_v1  ;;  %8874 = vst [vmem:[#allocation8_spill] sm:$0xff] %v8873_v9  ;;  %v8876_v10 = vsel %vm6624_vm6, 4294967295, %v8875_v10  ;;  %v6630_v11 = vsel %vm6620_vm3, 0, %v208_v8  ;;  %v6665_v22 = vperm.slane %v25_v21, 0  ;;  %v6265_v36 = vld [vmem:[%s8795_s0 + $0x30] sm:$0xff]  ;;  %v6276_v57 = vld [vmem:[%s8797_s2 + $0x38] sm:$0xff] }
   0x7   :  { %8877 = vst [vmem:[#allocation9_spill] sm:$0xff] %v8876_v10  ;;  %v6635_v12 = vsel %vm6624_vm6, %v6630_v11, 0  ;;  %2827 = vmatpush.bf16.msra.mxu1 %v6276_v57  ;;  %v6275_v60 = vld [vmem:[%s8797_s2 + $0x30] sm:$0xff]  ;;  %v6274_v63 = vld [vmem:[%s8797_s2 + $0x28] sm:$0xff]  ;;  %vm629_vm9 = vcmask 1043459   ;;  %vm632_vm10 = vcmask 1044484  }
   0x8   :  { %8878 = vst [vmem:[#allocation10_spill] sm:$0xff] %v6630_v11  ;;  %v6639_v13 = vrot.slane %v6635_v12, 1  ;;  %v6645_v15 = vrot.slane %v6635_v12, 2  ;;  %v6651_v17 = vrot.slane %v6635_v12, 3  ;;  %vm635_vm11 = vcmask 1045509   ;;  %s6556_s29 = smov [#allocation4]  }
   0x9   :  { %5355 = vmatmul.msk.bf16.vlgmr.msra.gmra.mxu0 %vm99_vm0, %v6259_v2  ;;  %467 = vst [vmem:[#allocation1] ss:$9 sm:$0xff] %v6635_v12  ;;  %v6273_v2 = vld [vmem:[%s8797_s2 + $0x20] sm:$0xff]  ;;  %vm638_vm12 = vcmask 1046534   ;;  %vm641_vm13 = vcmask 1047559   ;;  %vm3108_vm14 = vcmask 1042432  }
   0xa   :  { %8879 = vst [vmem:[#allocation11_spill] sm:$0xff] %v6665_v22  ;;  %vm3109_vm15 = vsmask.f32 2304  ;;  %vm3014_vm2 = vcmask 1041408   ;;  %vm3018_vm4 = vcmask 1043458   ;;  %s5299_s30 = sshll.u32 %s6556_s29, 4  ;;  %s5300_s30 = int_to_ptr.vmem [resolvable:$true] %s5299_s30 }
   0xb   :  { %2828 = vmatpush.bf16.msra.mxu1 %v6275_v60  ;;  %vm4353_vm5 = vsmask.f32 1280  ;;  %s5290_s11 = sshll.u32 %s8800_s5, 4  ;;  %s5291_s11 = int_to_ptr.hbm [resolvable:$true] %s5290_s11 }
   0xf   :  { %2829 = vmatpush.bf16.msra.mxu1 %v6274_v63 }
  0x10   :  { %v6641_v14 = vld [vmem:[#allocation1] sm:$0xf] }
  0x11   :  { %471 = vst [vmem:[#allocation1] ss:$9 sm:$0xff] %v6639_v13 }
  0x13   :  { %2830 = vmatpush.bf16.msra.mxu1 %v6273_v2 }
  0x18   :  { %v6647_v16 = vld [vmem:[#allocation1] sm:$0xf] }
  0x19   :  { %5356 = vmatmul.msk.bf16.gmra.mxu0 %vm99_vm0, %v6260_v3  ;;  %475 = vst [vmem:[#allocation1] ss:$9 sm:$0xff] %v6645_v15 }
  0x20   :  { %v6653_v18 = vld [vmem:[#allocation1] sm:$0xf] }
  0x21   :  { %479 = vst [vmem:[#allocation1] ss:$9 sm:$0xff] %v6651_v17 }
  0x28   :  { %v6670_v32 = vld [vmem:[#allocation1] sm:$0xf] }
  0x29   :  { %5357 = vmatmul.msk.bf16.gmra.mxu0 %vm99_vm0, %v6261_v4 }
  0x39   :  { %5358 = vmatmul.msk.bf16.gmra.mxu0 %vm99_vm0, %v6262_v5 }
  0x49   :  { %5359 = vmatmul.msk.bf16.gmra.mxu0 %vm99_vm0, %v6263_v6  ;;  %v6272_v6 = vld [vmem:[%s8797_s2 + $0x18] sm:$0xff] }
  0x4a   :  { %2831 = vmatpush.bf16.msra.mxu1 %v6272_v6 }
  0x59   :  { %5360 = vmatmul.msk.bf16.gmra.mxu0 %vm99_vm0, %v6264_v19  ;;  %v6271_v19 = vld [vmem:[%s8797_s2 + $0x10] sm:$0xff] }
  0x5a   :  { %2832 = vmatpush.bf16.msra.mxu1 %v6271_v19 }
  0x69   :  { %5361 = vmatmul.msk.bf16.gmra.mxu0 %vm99_vm0, %v6265_v36 }
  0x86   :  { %v6660_v20 = vpop.f32.mrf.mxu0 }
  0x8e   :  { %v135_v23 = vpop.f32.mrf.mxu0 }
  0x8f   :  { %v136_v24 = vadd.f32 %v135_v23, %v6665_v22  ;;  %v6270_v23 = vld [vmem:[%s8797_s2 + $0x8] sm:$0xff] }
  0x90   :  { %2833 = vmatpush.bf16.msra.mxu1 %v6270_v23 }
  0x91   :  { %v174_v25 = vmax.f32 %v136_v24, 0.0 }
  0x93   :  { %v190_v26 = vpack.c.bf16 %v174_v25, %v174_v25 }
  0x95   :  { %v220_v27 = vshrl.u32 %v190_v26, 16  ;;  %v223_v30 = vshll.u32 %v190_v26, 16  ;;  %v6269_v26 = vld [vmem:[%s8797_s2] sm:$0xff] }
  0x96   :  { %v6668_v28 = vpop.f32.mrf.mxu0  ;;  %2834 = vmatpush.bf16.msra.mxu1 %v6269_v26 }
  0x97   :  { %8880 = vst [vmem:[#allocation12_spill] sm:$0xff] %v6668_v28  ;;  %v222_v29 = vrot.slane %v220_v27, 7 }
  0x99   :  { %v225_v31 = vor.u32 %v223_v30, %v222_v29 }
  0x9b   :  { %v346_v33 = vsel %vm6620_vm3, 0, %v225_v31 }
  0x9c   :  { %v6676_v34 = vsel %vm6624_vm6, %v346_v33, 0 }
  0x9d   :  { %8881 = vst [vmem:[#allocation13_spill] sm:$0xff] %v6676_v34  ;;  %v6685_v38 = vrot.slane %v6676_v34, 1  ;;  %v6691_v42 = vrot.slane %v6676_v34, 2  ;;  %v6697_v47 = vrot.slane %v6676_v34, 3 }
  0x9e   :  { %483 = vst [vmem:[#allocation1] ss:$9 sm:$0xff] %v6676_v34  ;;  %v140_v35 = vpop.f32.mrf.mxu0 }
  0x9f   :  { %v141_v37 = vadd.f32 %v140_v35, %v6665_v22  ;;  %8882 = vst [vmem:[#allocation14_spill] sm:$0xff] %v6685_v38  ;;  %v591_v35 = vunpack.c.l.b16 %v6647_v16 }
  0xa0   :  { %8883 = vst [vmem:[#allocation15_spill] sm:$0xff] %v6691_v42 }
  0xa1   :  { %v176_v40 = vmax.f32 %v141_v37, 0.0  ;;  %8884 = vst [vmem:[#allocation16_spill] sm:$0xff] %v6697_v47  ;;  %v592_v37 = vunpack.c.l.b16 %v6653_v18 }
  0xa3   :  { %v192_v41 = vpack.c.bf16 %v176_v40, %v176_v40  ;;  %v590_v40 = vunpack.c.l.b16 %v6641_v14 }
  0xa5   :  { %v6687_v39 = vld [vmem:[#allocation1] sm:$0xf]  ;;  %v234_v44 = vshrl.u32 %v192_v41, 16  ;;  %v237_v46 = vshll.u32 %v192_v41, 16  ;;  %v622_v41 = vrot.slane %v591_v35, 7 }
  0xa6   :  { %487 = vst [vmem:[#allocation1] ss:$9 sm:$0xff] %v6685_v38  ;;  %v6701_v49 = vpop.f32.mrf.mxu0  ;;  %v594_v14 = vunpack.c.l.b16 %v6687_v39 }
  0xa7   :  { %v236_v45 = vrot.slane %v234_v44, 7  ;;  %8885 = vst [vmem:[#allocation17_spill] sm:$0xff] %v6701_v49  ;;  %v593_v44 = vunpack.c.l.b16 %v6670_v32 }
  0xa9   :  { %v239_v50 = vor.u32 %v237_v46, %v236_v45  ;;  %v625_v45 = vrot.slane %v592_v37, 6 }
  0xab   :  { %v348_v51 = vsel %vm6620_vm3, 0, %v239_v50 }
  0xac   :  { %v6708_v52 = vsel %vm6624_vm6, %v348_v51, 0  ;;  %v624_v51 = vsel %vm623_vm7, %v622_v41, %v590_v40 }
  0xad   :  { %v6693_v43 = vld [vmem:[#allocation1] sm:$0xf]  ;;  %8886 = vst [vmem:[#allocation18_spill] sm:$0xff] %v6708_v52  ;;  %v6715_v56 = vrot.slane %v6708_v52, 1  ;;  %v6727_v62 = vrot.slane %v6708_v52, 2  ;;  %v6737_v5 = vrot.slane %v6708_v52, 3  ;;  %v627_v32 = vsel %vm626_vm8, %v625_v45, %v624_v51 }
  0xae   :  { %491 = vst [vmem:[#allocation1] ss:$9 sm:$0xff] %v6691_v42  ;;  %v145_v54 = vpop.f32.mrf.mxu0  ;;  %v595_v60 = vunpack.c.l.b16 %v6693_v43 }
  0xaf   :  { %v146_v55 = vadd.f32 %v145_v54, %v6665_v22  ;;  %8887 = vst [vmem:[#allocation19_spill] sm:$0xff] %v6715_v56 }
  0xb0   :  { %8888 = vst [vmem:[#allocation20_spill] sm:$0xff] %v6727_v62  ;;  %v634_v19 = vrot.slane %v595_v60, 3 }
  0xb1   :  { %v178_v59 = vmax.f32 %v146_v55, 0.0  ;;  %8889 = vst [vmem:[#allocation21_spill] sm:$0xff] %v6737_v5 }
  0xb3   :  { %v194_v61 = vpack.c.bf16 %v178_v59, %v178_v59  ;;  %v628_v59 = vrot.slane %v593_v44, 5 }
  0xb5   :  { %v6699_v48 = vld [vmem:[#allocation1] sm:$0xf]  ;;  %v248_v1 = vshrl.u32 %v194_v61, 16  ;;  %v251_v4 = vshll.u32 %v194_v61, 16  ;;  %v630_v39 = vsel %vm629_vm9, %v628_v59, %v627_v32 }
  0xb6   :  { %495 = vst [vmem:[#allocation1] ss:$9 sm:$0xff] %v6697_v47  ;;  %v6759_v27 = vpop.f32.mrf.mxu0 }
  0xb7   :  { %v250_v3 = vrot.slane %v248_v1, 7  ;;  %8891 = vst [vmem:[#allocation23_spill] sm:$0xff] %v6759_v27 }
  0xb9   :  { %v253_v8 = vor.u32 %v251_v4, %v250_v3 }
  0xbb   :  { %v350_v21 = vsel %vm6620_vm3, 0, %v253_v8 }
  0xbc   :  { %v6753_v24 = vsel %vm6624_vm6, %v350_v21, 0 }
  0xbd   :  { %v6710_v53 = vld [vmem:[#allocation1] sm:$0xf]  ;;  %8890 = vst [vmem:[#allocation22_spill] sm:$0xff] %v6753_v24  ;;  %v6762_v29 = vrot.slane %v6753_v24, 1  ;;  %v6768_v33 = vrot.slane %v6753_v24, 2  ;;  %v6776_v46 = vrot.slane %v6753_v24, 3 }
  0xbe   :  { %499 = vst [vmem:[#allocation1] ss:$9 sm:$0xff] %v6708_v52  ;;  %v6765_v31 = vpop.f32.mrf.mxu0  ;;  %v597_v3 = vunpack.c.l.b16 %v6710_v53 }
  0xbf   :  { %8892 = vst [vmem:[#allocation24_spill] sm:$0xff] %v6762_v29 }
  0xc0   :  { %8893 = vst [vmem:[#allocation25_spill] sm:$0xff] %v6765_v31 }
  0xc1   :  { %8894 = vst [vmem:[#allocation26_spill] sm:$0xff] %v6768_v33 }
  0xc2   :  { %8895 = vst [vmem:[#allocation27_spill] sm:$0xff] %v6776_v46 }
  0xc5   :  { %v6720_v58 = vld [vmem:[#allocation1] sm:$0xf] }
  0xc6   :  { %503 = vst [vmem:[#allocation1] ss:$9 sm:$0xff] %v6715_v56  ;;  %v6779_v54 = vpop.f32.mrf.mxu0  ;;  %v598_v4 = vunpack.c.l.b16 %v6720_v58  ;;  %v640_v58 = vrot.slane %v597_v3, 1 }
  0xc7   :  { %8896 = vst [vmem:[#allocation28_spill] sm:$0xff] %v6779_v54 }
  0xcd   :  { %v504_v0 = vld [vmem:[#allocation1] sm:$0xf] }
  0xce   :  { %507 = vst [vmem:[#allocation1] ss:$9 sm:$0xff] %v6727_v62  ;;  %v599_v50 = vunpack.c.l.b16 %v504_v0  ;;  %v596_v0 = vunpack.c.l.b16 %v6699_v48  ;;  %v155_v35 = vpop.f32.mrf.mxu0 }
  0xcf   :  { %v156_v51 = vadd.f32 %v155_v35, %v6665_v22 }
  0xd0   :  { %v643_v63 = vrot.slane %v599_v50, 7 }
  0xd2   :  { %v644_v43 = vsel %vm623_vm7, %v643_v63, %v598_v4 }
  0xd5   :  { %v508_v7 = vld [vmem:[#allocation1] sm:$0xf] }
  0xd6   :  { %511 = vst [vmem:[#allocation1] ss:$9 sm:$0xff] %v6737_v5  ;;  %v600_v55 = vunpack.c.l.b16 %v508_v7  ;;  %v631_v7 = vrot.slane %v594_v14, 4 }
  0xd8   :  { %v645_v2 = vrot.slane %v600_v55, 6 }
  0xda   :  { %v646_v48 = vsel %vm626_vm8, %v645_v2, %v644_v43 }
  0xdd   :  { %v512_v25 = vld [vmem:[#allocation1] sm:$0xf] }
  0xde   :  { %515 = vst [vmem:[#allocation1] ss:$9 sm:$0xff] %v6753_v24  ;;  %v601_v18 = vunpack.c.l.b16 %v512_v25  ;;  %v637_v25 = vrot.slane %v596_v0, 2 }
  0xe0   :  { %v647_v6 = vrot.slane %v601_v18, 5 }
  0xe5   :  { %v516_v30 = vld [vmem:[#allocation1] sm:$0xf] }
  0xe6   :  { %519 = vst [vmem:[#allocation1] ss:$9 sm:$0xff] %v6762_v29  ;;  %v602_v57 = vunpack.c.l.b16 %v516_v30  ;;  %v648_v30 = vsel %vm629_vm9, %v647_v6, %v646_v48 }
  0xe8   :  { %v649_v8 = vrot.slane %v602_v57, 4  ;;  %v182_v57 = vmax.f32 %v156_v51, 0.0 }
  0xea   :  { %v650_v37 = vsel %vm632_vm10, %v649_v8, %v648_v30  ;;  %v198_v32 = vpack.c.bf16 %v182_v57, %v182_v57 }
  0xec   :  { %v276_v60 = vshrl.u32 %v198_v32, 16  ;;  %v279_v63 = vshll.u32 %v198_v32, 16 }
  0xed   :  { %v520_v36 = vld [vmem:[#allocation1] sm:$0xf] }
  0xee   :  { %523 = vst [vmem:[#allocation1] ss:$9 sm:$0xff] %v6768_v33  ;;  %v603_v61 = vunpack.c.l.b16 %v520_v36  ;;  %v633_v36 = vsel %vm632_vm10, %v631_v7, %v630_v39 }
  0xef   :  { %v636_v40 = vsel %vm635_vm11, %v634_v19, %v633_v36 }
  0xf0   :  { %v651_v21 = vrot.slane %v603_v61, 3  ;;  %v639_v45 = vsel %vm638_vm12, %v637_v25, %v636_v40  ;;  %v278_v61 = vrot.slane %v276_v60, 7 }
  0xf2   :  { %v652_v41 = vsel %vm635_vm11, %v651_v21, %v650_v37  ;;  %v281_v2 = vor.u32 %v279_v63, %v278_v61 }
  0xf4   :  { %v354_v3 = vsel %vm6620_vm3, 0, %v281_v2 }
  0xf5   :  { %v524_v16 = vld [vmem:[#allocation1] sm:$0xf]  ;;  %v6817_v4 = vsel %vm6624_vm6, %v354_v3, 0 }
  0xf6   :  { %527 = vst [vmem:[#allocation1] ss:$9 sm:$0xff] %v6776_v46  ;;  %v604_v1 = vunpack.c.l.b16 %v524_v16  ;;  %v642_v16 = vsel %vm641_vm13, %v640_v58, %v639_v45  ;;  %v6824_v8 = vrot.slane %v6817_v4, 1  ;;  %v6836_v58 = vrot.slane %v6817_v4, 3 }
  0xf7   :  { %8898 = vst [vmem:[#allocation30_spill] sm:$0xff] %v6817_v4 }
  0xf8   :  { %v653_v26 = vrot.slane %v604_v1, 2  ;;  %v6810_v1 = vpop.f32.mrf.mxu0  ;;  %8899 = vst [vmem:[#allocation31_spill] sm:$0xff] %v6824_v8 }
  0xf9   :  { %8897 = vst [vmem:[#allocation29_spill] sm:$0xff] %v6810_v1 }
  0xfa   :  { %v654_v50 = vsel %vm638_vm12, %v653_v26, %v652_v41  ;;  %8901 = vst [vmem:[#allocation33_spill] sm:$0xff] %v6836_v58 }
  0xfd   :  { %v528_v23 = vld [vmem:[#allocation1] sm:$0xf] }
  0xfe   :  { %530 = vst [vmem:[#allocation1] ss:$9 sm:$0xff] %v6635_v12  ;;  %v605_v53 = vunpack.c.l.b16 %v528_v23  ;;  %v6830_v23 = vrot.slane %v6817_v4, 2 }
 0x100   :  { %v655_v44 = vrot.slane %v605_v53, 1  ;;  %v160_v39 = vpop.f32.mrf.mxu0  ;;  %8900 = vst [vmem:[#allocation32_spill] sm:$0xff] %v6830_v23 }
 0x101   :  { %v161_v7 = vadd.f32 %v160_v39, %v6665_v22 }
 0x102   :  { %v656_v55 = vsel %vm641_vm13, %v655_v44, %v654_v50 }
 0x103   :  { %v685_v18 = vpack.c.b16 %v656_v55, %v642_v16  ;;  %v184_v43 = vmax.f32 %v161_v7, 0.0 }
 0x105   :  { %v6802_v14 = vld [vmem:[#allocation1] sm:$0xf]  ;;  %2835 = vmatmul.bf16.vlgmr.msra.gmra.mxu1 %v685_v18  ;;  %v200_v21 = vpack.c.bf16 %v184_v43, %v184_v43 }
 0x106   :  { %533 = vst [vmem:[#allocation1] ss:$9 sm:$0xff] %v6639_v13 }
 0x107   :  { %v290_v48 = vshrl.u32 %v200_v21, 16  ;;  %v293_v53 = vshll.u32 %v200_v21, 16 }
 0x108   :  { %v6840_v35 = vpop.f32.mrf.mxu0 }
 0x109   :  { %v292_v26 = vrot.slane %v290_v48, 7  ;;  %8902 = vst [vmem:[#allocation34_spill] sm:$0xff] %v6840_v35 }
 0x10b   :  { %v295_v36 = vor.u32 %v293_v53, %v292_v26 }
 0x10d   :  { %v6805_v59 = vld [vmem:[#allocation1] sm:$0xf]  ;;  %v356_v37 = vsel %vm6620_vm3, 0, %v295_v36 }
 0x10e   :  { %536 = vst [vmem:[#allocation1] ss:$9 sm:$0xff] %v6645_v15  ;;  %v6849_v41 = vsel %vm6624_vm6, %v356_v37, 0  ;;  %v607_v36 = vunpack.c.l.b16 %v6805_v59 }
 0x10f   :  { %8903 = vst [vmem:[#allocation35_spill] sm:$0xff] %v6849_v41  ;;  %v6854_v50 = vrot.slane %v6849_v41, 1  ;;  %v6858_v18 = vrot.slane %v6849_v41, 2  ;;  %v6862_v63 = vrot.slane %v6849_v41, 3 }
 0x110   :  { %v165_v44 = vpop.f32.mrf.mxu0 }
 0x111   :  { %v166_v45 = vadd.f32 %v165_v44, %v6665_v22  ;;  %8904 = vst [vmem:[#allocation36_spill] sm:$0xff] %v6854_v50  ;;  %v606_v44 = vunpack.c.l.b16 %v6802_v14 }
 0x112   :  { %8905 = vst [vmem:[#allocation37_spill] sm:$0xff] %v6858_v18 }
 0x113   :  { %v186_v16 = vmax.f32 %v166_v45, 0.0  ;;  %8906 = vst [vmem:[#allocation38_spill] sm:$0xff] %v6862_v63  ;;  %v657_v45 = vrot.slane %v607_v36, 7 }
 0x115   :  { %v6808_v0 = vld [vmem:[#allocation1] sm:$0xf]  ;;  %v202_v55 = vpack.c.bf16 %v186_v16, %v186_v16  ;;  %v658_v11 = vsel %vm623_vm7, %v657_v45, %v606_v44 }
 0x116   :  { %539 = vst [vmem:[#allocation1] ss:$9 sm:$0xff] %v6651_v17  ;;  %v608_v37 = vunpack.c.l.b16 %v6808_v0 }
 0x117   :  { %v304_v32 = vshrl.u32 %v202_v55, 16  ;;  %v307_v61 = vshll.u32 %v202_v55, 16 }
 0x119   :  { %v306_v60 = vrot.slane %v304_v32, 7 }
 0x11b   :  { %v309_v3 = vor.u32 %v307_v61, %v306_v60 }
 0x11d   :  { %v6819_v6 = vld [vmem:[#allocation1] sm:$0xf]  ;;  %v358_v39 = vsel %vm6620_vm3, 0, %v309_v3  ;;  %v659_v3 = vrot.slane %v608_v37, 6 }
 0x11e   :  { %543 = vst [vmem:[#allocation1] ss:$9 sm:$0xff] %v6817_v4  ;;  %v6869_v43 = vsel %vm6624_vm6, %v358_v39, 0  ;;  %v609_v55 = vunpack.c.l.b16 %v6819_v6 }
 0x11f   :  { %8907 = vst [vmem:[#allocation39_spill] sm:$0xff] %v6869_v43  ;;  %v6873_v21 = vrot.slane %v6869_v43, 1  ;;  %v6877_v26 = vrot.slane %v6869_v43, 2  ;;  %v6884_v16 = vrot.slane %v6869_v43, 3 }
 0x120   :  { %v661_v31 = vrot.slane %v609_v55, 5 }
 0x121   :  { %8908 = vst [vmem:[#allocation40_spill] sm:$0xff] %v6873_v21 }
 0x122   :  { %8909 = vst [vmem:[#allocation41_spill] sm:$0xff] %v6877_v26 }
 0x123   :  { %8910 = vst [vmem:[#allocation42_spill] sm:$0xff] %v6884_v16 }
 0x125   :  { %v6826_v19 = vld [vmem:[#allocation1] sm:$0xf] }
 0x126   :  { %547 = vst [vmem:[#allocation1] ss:$9 sm:$0xff] %v6824_v8  ;;  %v610_v59 = vunpack.c.l.b16 %v6826_v19 }
 0x128   :  { %v663_v27 = vrot.slane %v610_v59, 4 }
 0x12d   :  { %v6832_v25 = vld [vmem:[#allocation1] sm:$0xf] }
 0x12e   :  { %551 = vst [vmem:[#allocation1] ss:$9 sm:$0xff] %v6830_v23  ;;  %v611_v14 = vunpack.c.l.b16 %v6832_v25 }
 0x135   :  { %v6838_v30 = vld [vmem:[#allocation1] sm:$0xf] }
 0x136   :  { %555 = vst [vmem:[#allocation1] ss:$9 sm:$0xff] %v6836_v58  ;;  %v612_v1 = vunpack.c.l.b16 %v6838_v30 }
 0x138   :  { %v667_v55 = vrot.slane %v612_v1, 2 }
 0x13d   :  { %v6845_v40 = vld [vmem:[#allocation1] sm:$0xf] }
 0x13e   :  { %559 = vst [vmem:[#allocation1] ss:$9 sm:$0xff] %v6849_v41  ;;  %v613_v37 = vunpack.c.l.b16 %v6845_v40 }
 0x145   :  { %v560_v51 = vld [vmem:[#allocation1] sm:$0xf] }
 0x146   :  { %563 = vst [vmem:[#allocation1] ss:$9 sm:$0xff] %v6854_v50  ;;  %v614_v54 = vunpack.c.l.b16 %v560_v51 }
 0x14d   :  { %v564_v57 = vld [vmem:[#allocation1] sm:$0xf] }
 0x14e   :  { %567 = vst [vmem:[#allocation1] ss:$9 sm:$0xff] %v6858_v18  ;;  %v615_v32 = vunpack.c.l.b16 %v564_v57  ;;  %v660_v57 = vsel %vm626_vm8, %v659_v3, %v658_v11 }
 0x14f   :  { %v662_v19 = vsel %vm629_vm9, %v661_v31, %v660_v57 }
 0x150   :  { %v671_v35 = vrot.slane %v615_v32, 7  ;;  %v664_v51 = vsel %vm632_vm10, %v663_v27, %v662_v19  ;;  %v6284_v19 = vld [vmem:[%s8797_s2 + $0x78] sm:$0xff] }
 0x151   :  { %2846 = vmatpush.bf16.msra.mxu2 %v6284_v19 }
 0x152   :  { %v672_v25 = vsel %vm623_vm7, %v671_v35, %v614_v54 }
 0x155   :  { %v568_v2 = vld [vmem:[#allocation1] sm:$0xf] }
 0x156   :  { %571 = vst [vmem:[#allocation1] ss:$9 sm:$0xff] %v6862_v63  ;;  %v616_v61 = vunpack.c.l.b16 %v568_v2 }
 0x158   :  { %v673_v2 = vrot.slane %v616_v61, 6 }
 0x15a   :  { %v674_v30 = vsel %vm626_vm8, %v673_v2, %v672_v25 }
 0x15d   :  { %v572_v7 = vld [vmem:[#allocation1] sm:$0xf] }
 0x15e   :  { %575 = vst [vmem:[#allocation1] ss:$9 sm:$0xff] %v6869_v43  ;;  %v617_v39 = vunpack.c.l.b16 %v572_v7 }
 0x160   :  { %v675_v7 = vrot.slane %v617_v39, 5 }
 0x162   :  { %v676_v40 = vsel %vm629_vm9, %v675_v7, %v674_v30  ;;  %v6280_v30 = vld [vmem:[%s8797_s2 + $0x58] sm:$0xff] }
 0x165   :  { %v576_v48 = vld [vmem:[#allocation1] sm:$0xf] }
 0x166   :  { %579 = vst [vmem:[#allocation1] ss:$9 sm:$0xff] %v6873_v21  ;;  %v618_v0 = vunpack.c.l.b16 %v576_v48  ;;  %v665_v48 = vrot.slane %v611_v14, 3 }
 0x168   :  { %v677_v44 = vrot.slane %v618_v0, 4  ;;  %v666_v31 = vsel %vm635_vm11, %v665_v48, %v664_v51  ;;  %v6283_v48 = vld [vmem:[%s8797_s2 + $0x70] sm:$0xff] }
 0x169   :  { %v668_v1 = vsel %vm638_vm12, %v667_v55, %v666_v31  ;;  %2847 = vmatpush.bf16.msra.mxu2 %v6283_v48 }
 0x16a   :  { %v678_v61 = vsel %vm632_vm10, %v677_v44, %v676_v40  ;;  %v6277_v40 = vld [vmem:[%s8797_s2 + $0x40] sm:$0xff] }
 0x16d   :  { %v580_v53 = vld [vmem:[#allocation1] sm:$0xf] }
 0x16e   :  { %583 = vst [vmem:[#allocation1] ss:$9 sm:$0xff] %v6877_v26  ;;  %v619_v36 = vunpack.c.l.b16 %v580_v53 }
 0x170   :  { %v679_v53 = vrot.slane %v619_v36, 3 }
 0x172   :  { %v680_v54 = vsel %vm635_vm11, %v679_v53, %v678_v61  ;;  %v6282_v53 = vld [vmem:[%s8797_s2 + $0x68] sm:$0xff] }
 0x173   :  { %2848 = vmatpush.bf16.msra.mxu2 %v6282_v53 }
 0x175   :  { %v584_v60 = vld [vmem:[#allocation1] sm:$0xf] }
 0x176   :  { %587 = vst [vmem:[#allocation1] ss:$9 sm:$0xff] %v6884_v16  ;;  %v620_v6 = vunpack.c.l.b16 %v584_v60  ;;  %v669_v60 = vrot.slane %v613_v37, 1 }
 0x178   :  { %v681_v32 = vrot.slane %v620_v6, 2  ;;  %v670_v39 = vsel %vm641_vm13, %v669_v60, %v668_v1  ;;  %v6278_v60 = vld [vmem:[%s8797_s2 + $0x48] sm:$0xff] }
 0x17a   :  { %v682_v3 = vsel %vm638_vm12, %v681_v32, %v680_v54  ;;  %v6279_v32 = vld [vmem:[%s8797_s2 + $0x50] sm:$0xff] }
 0x17d   :  { %v588_v45 = vld [vmem:[#allocation1] sm:$0xf] }
 0x17e   :  { %689 = vst [vmem:[#allocation1] ss:$9 sm:$0xff] %v6635_v12  ;;  %v621_v11 = vunpack.c.l.b16 %v588_v45  ;;  %v6281_v45 = vld [vmem:[%s8797_s2 + $0x60] sm:$0xff] }
 0x17f   :  { %2849 = vmatpush.bf16.msra.mxu2 %v6281_v45 }
 0x180   :  { %v683_v35 = vrot.slane %v621_v11, 1 }
 0x182   :  { %v684_v59 = vsel %vm641_vm13, %v683_v35, %v682_v3 }
 0x183   :  { %v686_v0 = vpack.c.b16 %v684_v59, %v670_v39  ;;  %2850 = vmatpush.bf16.msra.mxu2 %v6280_v30 }
 0x185   :  { %v690_v14 = vld [vmem:[#allocation1] sm:$0xf]  ;;  %2840 = vmatmul.bf16.gmra.mxu1 %v686_v0 }
 0x186   :  { %692 = vst [vmem:[#allocation1] ss:$9 sm:$0xff] %v6639_v13  ;;  %v785_v31 = vunpack.c.l.b16 %v690_v14 }
 0x187   :  { %2851 = vmatpush.bf16.msra.mxu2 %v6279_v32 }
 0x188   :  { %v817_v1 = vrot.slane %v785_v31, 1 }
 0x18b   :  { %2852 = vmatpush.bf16.msra.mxu2 %v6278_v60 }
 0x18d   :  { %v693_v27 = vld [vmem:[#allocation1] sm:$0xf] }
 0x18e   :  { %695 = vst [vmem:[#allocation1] ss:$9 sm:$0xff] %v6645_v15  ;;  %v786_v35 = vunpack.c.l.b16 %v693_v27 }
 0x18f   :  { %2853 = vmatpush.bf16.msra.mxu2 %v6277_v40 }
 0x190   :  { %v818_v53 = vsel %vm623_vm7, %v786_v35, %v817_v1 }
 0x195   :  { %v696_v36 = vld [vmem:[#allocation1] sm:$0xf] }
 0x196   :  { %698 = vst [vmem:[#allocation1] ss:$9 sm:$0xff] %v6651_v17  ;;  %v787_v54 = vunpack.c.l.b16 %v696_v36 }
 0x198   :  { %v819_v0 = vrot.slane %v787_v54, 7 }
 0x19d   :  { %v699_v6 = vld [vmem:[#allocation1] sm:$0xf] }
 0x19e   :  { %701 = vst [vmem:[#allocation1] ss:$9 sm:$0xff] %v6676_v34  ;;  %v788_v3 = vunpack.c.l.b16 %v699_v6  ;;  %v820_v6 = vsel %vm626_vm8, %v819_v0, %v818_v53 }
 0x1a0   :  { %v821_v14 = vrot.slane %v788_v3, 6 }
 0x1a5   :  { %v702_v57 = vld [vmem:[#allocation1] sm:$0xf] }
 0x1a6   :  { %704 = vst [vmem:[#allocation1] ss:$9 sm:$0xff] %v6685_v38  ;;  %v789_v45 = vunpack.c.l.b16 %v702_v57  ;;  %v822_v57 = vsel %vm629_vm9, %v821_v14, %v820_v6 }
 0x1ad   :  { %v6912_v2 = vld [vmem:[#allocation1] sm:$0xf] }
 0x1ae   :  { %707 = vst [vmem:[#allocation1] ss:$9 sm:$0xff] %v6691_v42  ;;  %v790_v32 = vunpack.c.l.b16 %v6912_v2 }
 0x1b5   :  { %v6915_v37 = vld [vmem:[#allocation1] sm:$0xf] }
 0x1b6   :  { %710 = vst [vmem:[#allocation1] ss:$9 sm:$0xff] %v6697_v47  ;;  %v791_v27 = vunpack.c.l.b16 %v6915_v37 }
 0x1b8   :  { %v827_v35 = vrot.slane %v791_v27, 3 }
 0x1bd   :  { %v6918_v7 = vld [vmem:[#allocation1] sm:$0xf] }
 0x1be   :  { %713 = vst [vmem:[#allocation1] ss:$9 sm:$0xff] %v6708_v52  ;;  %v792_v31 = vunpack.c.l.b16 %v6918_v7 }
 0x1c5   :  { %v714_v44 = vld [vmem:[#allocation1] sm:$0xf] }
 0x1c6   :  { %716 = vst [vmem:[#allocation1] ss:$9 sm:$0xff] %v6715_v56  ;;  %v793_v19 = vunpack.c.l.b16 %v714_v44 }
 0x1c8   :  { %v831_v54 = vrot.slane %v793_v19, 1 }
 0x1cd   :  { %v717_v25 = vld [vmem:[#allocation1] sm:$0xf] }
 0x1ce   :  { %719 = vst [vmem:[#allocation1] ss:$9 sm:$0xff] %v6727_v62  ;;  %v794_v60 = vunpack.c.l.b16 %v717_v25 }
 0x1d0   :  { %v832_v2 = vsel %vm623_vm7, %v794_v60, %v831_v54 }
 0x1d5   :  { %v720_v55 = vld [vmem:[#allocation1] sm:$0xf] }
 0x1d6   :  { %722 = vst [vmem:[#allocation1] ss:$9 sm:$0xff] %v6737_v5  ;;  %v795_v59 = vunpack.c.l.b16 %v720_v55 }
 0x1d8   :  { %v833_v55 = vrot.slane %v795_v59, 7 }
 0x1da   :  { %v834_v37 = vsel %vm626_vm8, %v833_v55, %v832_v2 }
 0x1dd   :  { %v723_v11 = vld [vmem:[#allocation1] sm:$0xf] }
 0x1de   :  { %725 = vst [vmem:[#allocation1] ss:$9 sm:$0xff] %v6753_v24  ;;  %v796_v48 = vunpack.c.l.b16 %v723_v11  ;;  %v823_v11 = vrot.slane %v789_v45, 5 }
 0x1e0   :  { %v835_v44 = vrot.slane %v796_v48, 6  ;;  %v824_v59 = vsel %vm632_vm10, %v823_v11, %v822_v57 }
 0x1e2   :  { %v836_v7 = vsel %vm629_vm9, %v835_v44, %v834_v37 }
 0x1e5   :  { %v726_v51 = vld [vmem:[#allocation1] sm:$0xf] }
 0x1e6   :  { %728 = vst [vmem:[#allocation1] ss:$9 sm:$0xff] %v6762_v29  ;;  %v797_v30 = vunpack.c.l.b16 %v726_v51  ;;  %v825_v51 = vrot.slane %v790_v32, 4 }
 0x1e8   :  { %v837_v49 = vrot.slane %v797_v30, 5  ;;  %v826_v19 = vsel %vm635_vm11, %v825_v51, %v824_v59 }
 0x1e9   :  { %v828_v45 = vsel %vm638_vm12, %v827_v35, %v826_v19 }
 0x1ea   :  { %v838_v0 = vsel %vm632_vm10, %v837_v49, %v836_v7 }
 0x1ed   :  { %v729_v61 = vld [vmem:[#allocation1] sm:$0xf] }
 0x1ee   :  { %731 = vst [vmem:[#allocation1] ss:$9 sm:$0xff] %v6768_v33  ;;  %v798_v40 = vunpack.c.l.b16 %v729_v61 }
 0x1f0   :  { %v839_v25 = vrot.slane %v798_v40, 4 }
 0x1f2   :  { %v840_v48 = vsel %vm635_vm11, %v839_v25, %v838_v0 }
 0x1f5   :  { %v732_v39 = vld [vmem:[#allocation1] sm:$0xf] }
 0x1f6   :  { %734 = vst [vmem:[#allocation1] ss:$9 sm:$0xff] %v6776_v46  ;;  %v799_v36 = vunpack.c.l.b16 %v732_v39  ;;  %v829_v39 = vrot.slane %v792_v31, 2 }
 0x1f8   :  { %v841_v1 = vrot.slane %v799_v36, 3  ;;  %v830_v32 = vsel %vm641_vm13, %v829_v39, %v828_v45 }
 0x1fa   :  { %v842_v30 = vsel %vm638_vm12, %v841_v1, %v840_v48 }
 0x1fd   :  { %v735_v61 = vld [vmem:[#allocation1] sm:$0xf] }
 0x1fe   :  { %737 = vst [vmem:[#allocation1] ss:$9 sm:$0xff] %v6635_v12  ;;  %v800_v3 = vunpack.c.l.b16 %v735_v61 }
 0x200   :  { %v843_v53 = vrot.slane %v800_v3, 2 }
 0x202   :  { %v844_v60 = vsel %vm641_vm13, %v843_v53, %v842_v30 }
 0x203   :  { %v873_v40 = vpack.c.b16 %v844_v60, %v830_v32 }
 0x205   :  { %v738_v14 = vld [vmem:[#allocation1] sm:$0xf]  ;;  %2854 = vmatmul.bf16.vlgmr.msra.gmra.mxu2 %v873_v40 }
 0x206   :  { %740 = vst [vmem:[#allocation1] ss:$9 sm:$0xff] %v6639_v13  ;;  %v801_v61 = vunpack.c.l.b16 %v738_v14 }
 0x208   :  { %v845_v1 = vrot.slane %v801_v61, 1 }
 0x20d   :  { %v741_v27 = vld [vmem:[#allocation1] sm:$0xf] }
 0x20e   :  { %743 = vst [vmem:[#allocation1] ss:$9 sm:$0xff] %v6645_v15  ;;  %v802_v37 = vunpack.c.l.b16 %v741_v27 }
 0x210   :  { %v846_v48 = vsel %vm623_vm7, %v802_v37, %v845_v1 }
 0x215   :  { %v744_v49 = vld [vmem:[#allocation1] sm:$0xf] }
 0x216   :  { %746 = vst [vmem:[#allocation1] ss:$9 sm:$0xff] %v6651_v17  ;;  %v803_v35 = vunpack.c.l.b16 %v744_v49 }
 0x218   :  { %v847_v59 = vrot.slane %v803_v35, 7 }
 0x21a   :  { %v848_v27 = vsel %vm626_vm8, %v847_v59, %v846_v48 }
 0x21d   :  { %v747_v36 = vld [vmem:[#allocation1] sm:$0xf] }
 0x21e   :  { %749 = vst [vmem:[#allocation1] ss:$9 sm:$0xff] %v6817_v4  ;;  %v804_v3 = vunpack.c.l.b16 %v747_v36 }
 0x220   :  { %v849_v40 = vrot.slane %v804_v3, 6 }
 0x225   :  { %v750_v6 = vld [vmem:[#allocation1] sm:$0xf] }
 0x226   :  { %752 = vst [vmem:[#allocation1] ss:$9 sm:$0xff] %v6824_v8  ;;  %v805_v53 = vunpack.c.l.b16 %v750_v6 }
 0x228   :  { %v851_v28 = vrot.slane %v805_v53, 5 }
 0x22d   :  { %v753_v55 = vld [vmem:[#allocation1] sm:$0xf] }
 0x22e   :  { %755 = vst [vmem:[#allocation1] ss:$9 sm:$0xff] %v6830_v23  ;;  %v806_v30 = vunpack.c.l.b16 %v753_v55 }
 0x235   :  { %v756_v31 = vld [vmem:[#allocation1] sm:$0xf] }
 0x236   :  { %758 = vst [vmem:[#allocation1] ss:$9 sm:$0xff] %v6836_v58  ;;  %v807_v14 = vunpack.c.l.b16 %v756_v31 }
 0x23d   :  { %v759_v54 = vld [vmem:[#allocation1] sm:$0xf] }
 0x23e   :  { %761 = vst [vmem:[#allocation1] ss:$9 sm:$0xff] %v6849_v41  ;;  %v808_v61 = vunpack.c.l.b16 %v759_v54 }
 0x240   :  { %v857_v1 = vrot.slane %v808_v61, 2 }
 0x245   :  { %v762_v44 = vld [vmem:[#allocation1] sm:$0xf] }
 0x246   :  { %764 = vst [vmem:[#allocation1] ss:$9 sm:$0xff] %v6854_v50  ;;  %v809_v0 = vunpack.c.l.b16 %v762_v44  ;;  %v850_v44 = vsel %vm629_vm9, %v849_v40, %v848_v27  ;;  %v8810_v27 = vrot.slane %v6676_v34, 4 }
 0x247   :  { %v852_v3 = vsel %vm632_vm10, %v851_v28, %v850_v44  ;;  %v401_v28 = vrot.slane %v6635_v12, 4  ;;  %v6291_v44 = vld [vmem:[%s8797_s2 + $0xb0] sm:$0xff] }
 0x24d   :  { %v765_v11 = vld [vmem:[#allocation1] sm:$0xf] }
 0x24e   :  { %767 = vst [vmem:[#allocation1] ss:$9 sm:$0xff] %v6858_v18  ;;  %v810_v32 = vunpack.c.l.b16 %v765_v11  ;;  %v855_v11 = vrot.slane %v807_v14, 3 }
 0x255   :  { %v768_v57 = vld [vmem:[#allocation1] sm:$0xf] }
 0x256   :  { %770 = vst [vmem:[#allocation1] ss:$9 sm:$0xff] %v6862_v63  ;;  %v811_v7 = vunpack.c.l.b16 %v768_v57  ;;  %v859_v57 = vrot.slane %v809_v0, 1 }
 0x258   :  { %v861_v36 = vrot.slane %v811_v7, 7  ;;  %v860_v6 = vsel %vm623_vm7, %v810_v32, %v859_v57 }
 0x25d   :  { %v771_v51 = vld [vmem:[#allocation1] sm:$0xf] }
 0x25e   :  { %773 = vst [vmem:[#allocation1] ss:$9 sm:$0xff] %v6869_v43  ;;  %v812_v19 = vunpack.c.l.b16 %v771_v51  ;;  %v853_v51 = vrot.slane %v806_v30, 4 }
 0x260   :  { %v863_v35 = vrot.slane %v812_v19, 6  ;;  %v854_v7 = vsel %vm635_vm11, %v853_v51, %v852_v3 }
 0x261   :  { %v856_v19 = vsel %vm638_vm12, %v855_v11, %v854_v7 }
 0x262   :  { %v858_v53 = vsel %vm641_vm13, %v857_v1, %v856_v19  ;;  %v6286_v1 = vld [vmem:[%s8797_s2 + $0x88] sm:$0xff] }
 0x265   :  { %v774_v2 = vld [vmem:[#allocation1] sm:$0xf] }
 0x266   :  { %776 = vst [vmem:[#allocation1] ss:$9 sm:$0xff] %v6873_v21  ;;  %v813_v45 = vunpack.c.l.b16 %v774_v2 }
 0x268   :  { %v865_v10 = vrot.slane %v813_v45, 5 }
 0x26d   :  { %v777_v25 = vld [vmem:[#allocation1] sm:$0xf] }
 0x26e   :  { %779 = vst [vmem:[#allocation1] ss:$9 sm:$0xff] %v6877_v26  ;;  %v814_v60 = vunpack.c.l.b16 %v777_v25  ;;  %v862_v25 = vsel %vm626_vm8, %v861_v36, %v860_v6  ;;  %v6290_v6 = vld [vmem:[%s8797_s2 + $0xa8] sm:$0xff] }
 0x26f   :  { %v864_v54 = vsel %vm629_vm9, %v863_v35, %v862_v25  ;;  %v6292_v35 = vld [vmem:[%s8797_s2 + $0xb8] sm:$0xff] }
 0x270   :  { %v867_v2 = vrot.slane %v814_v60, 4  ;;  %2865 = vmatpush.bf16.msra.mxu3 %v6292_v35  ;;  %v6288_v25 = vld [vmem:[%s8797_s2 + $0x98] sm:$0xff] }
 0x274   :  { %2866 = vmatpush.bf16.msra.mxu3 %v6291_v44 }
 0x275   :  { %v780_v39 = vld [vmem:[#allocation1] sm:$0xf] }
 0x276   :  { %782 = vst [vmem:[#allocation1] ss:$9 sm:$0xff] %v6884_v16  ;;  %v815_v49 = vunpack.c.l.b16 %v780_v39  ;;  %v866_v39 = vsel %vm632_vm10, %v865_v10, %v864_v54  ;;  %v6285_v54 = vld [vmem:[%s8797_s2 + $0x80] sm:$0xff] }
 0x277   :  { %v868_v59 = vsel %vm635_vm11, %v867_v2, %v866_v39  ;;  %v6289_v2 = vld [vmem:[%s8797_s2 + $0xa0] sm:$0xff] }
 0x278   :  { %v869_v31 = vrot.slane %v815_v49, 3  ;;  %2867 = vmatpush.bf16.msra.mxu3 %v6290_v6 }
 0x27a   :  { %v870_v48 = vsel %vm638_vm12, %v869_v31, %v868_v59  ;;  %v6287_v31 = vld [vmem:[%s8797_s2 + $0x90] sm:$0xff] }
 0x27c   :  { %2868 = vmatpush.bf16.msra.mxu3 %v6289_v2 }
 0x27d   :  { %v783_v55 = vld [vmem:[#allocation1] sm:$0xf] }
 0x27e   :  { %877 = vst [vmem:[#allocation1] ss:$9 sm:$0xff] %v6639_v13  ;;  %v816_v37 = vunpack.c.l.b16 %v783_v55  ;;  %v8807_v55 = vrot.slane %v6708_v52, 4 }
 0x280   :  { %v871_v0 = vrot.slane %v816_v37, 2  ;;  %2869 = vmatpush.bf16.msra.mxu3 %v6288_v25 }
 0x282   :  { %v872_v45 = vsel %vm641_vm13, %v871_v0, %v870_v48  ;;  %v7056_v0 = vpop.f32.mrf.mxu1 }
 0x283   :  { %v874_v30 = vpack.c.b16 %v872_v45, %v858_v53  ;;  %8911 = vst [vmem:[#allocation43_spill] sm:$0xff] %v7056_v0  ;;  %v8806_v53 = vrot.slane %v6753_v24, 4 }
 0x284   :  { %2870 = vmatpush.bf16.msra.mxu3 %v6287_v31 }
 0x285   :  { %v7000_v32 = vld [vmem:[#allocation1] sm:$0xf]  ;;  %2859 = vmatmul.bf16.gmra.mxu2 %v874_v30 }
 0x286   :  { %880 = vst [vmem:[#allocation1] ss:$9 sm:$0xff] %v6645_v15  ;;  %v980_v19 = vunpack.c.l.b16 %v7000_v32 }
 0x288   :  { %2871 = vmatpush.bf16.msra.mxu3 %v6286_v1  ;;  %v7062_v2 = vpop.f32.mrf.mxu2 }
 0x289   :  { %8912 = vst [vmem:[#allocation44_spill] sm:$0xff] %v7062_v2 }
 0x28c   :  { %2872 = vmatpush.bf16.msra.mxu3 %v6285_v54 }
 0x28d   :  { %v881_v10 = vld [vmem:[#allocation1] sm:$0xf] }
 0x28e   :  { %883 = vst [vmem:[#allocation1] ss:$9 sm:$0xff] %v6651_v17  ;;  %v981_v7 = vunpack.c.l.b16 %v881_v10 }
 0x290   :  { %v1012_v48 = vrot.slane %v981_v7, 7 }
 0x292   :  { %v1013_v10 = vsel %vm623_vm7, %v1012_v48, %v980_v19 }
 0x295   :  { %v884_v60 = vld [vmem:[#allocation1] sm:$0xf] }
 0x296   :  { %887 = vst [vmem:[#allocation1] ss:$9 sm:$0xff] %v401_v28  ;;  %v982_v59 = vunpack.c.l.b16 %v884_v60 }
 0x298   :  { %v1014_v6 = vrot.slane %v982_v59, 6 }
 0x29a   :  { %v1015_v7 = vsel %vm626_vm8, %v1014_v6, %v1013_v10 }
 0x29d   :  { %v888_v40 = vld [vmem:[#allocation1] sm:$0xf] }
 0x29e   :  { %890 = vst [vmem:[#allocation1] ss:$9 sm:$0xff] %v6685_v38  ;;  %v983_v45 = vunpack.c.l.b16 %v888_v40 }
 0x2a0   :  { %v1016_v54 = vrot.slane %v983_v45, 5 }
 0x2a5   :  { %v7008_v14 = vld [vmem:[#allocation1] sm:$0xf] }
 0x2a6   :  { %893 = vst [vmem:[#allocation1] ss:$9 sm:$0xff] %v6691_v42  ;;  %v984_v60 = vunpack.c.l.b16 %v7008_v14  ;;  %v7071_v14 = vpop.f32.mrf.mxu1 }
 0x2a7   :  { %8913 = vst [vmem:[#allocation45_spill] sm:$0xff] %v7071_v14 }
 0x2a8   :  { %v1018_v19 = vrot.slane %v984_v60, 4  ;;  %v7080_v60 = vpop.f32.mrf.mxu2 }
 0x2a9   :  { %8914 = vst [vmem:[#allocation46_spill] sm:$0xff] %v7080_v60 }
 0x2ad   :  { %v7011_v49 = vld [vmem:[#allocation1] sm:$0xf] }
 0x2ae   :  { %896 = vst [vmem:[#allocation1] ss:$9 sm:$0xff] %v6697_v47  ;;  %v985_v32 = vunpack.c.l.b16 %v7011_v49  ;;  %v1017_v49 = vsel %vm629_vm9, %v1016_v54, %v1015_v7  ;;  %v6500_v7 = vld [vmem:[%s8799_s4] sm:$0xff] }
 0x2b5   :  { %v7015_v36 = vld [vmem:[#allocation1] sm:$0xf] }
 0x2b6   :  { %900 = vst [vmem:[#allocation1] ss:$9 sm:$0xff] %v8810_v27 }
 0x2bd   :  { %v7019_v61 = vld [vmem:[#allocation1] sm:$0xf] }
 0x2be   :  { %903 = vst [vmem:[#allocation1] ss:$9 sm:$0xff] %v6715_v56 }
 0x2c5   :  { %v7022_v57 = vld [vmem:[#allocation1] sm:$0xf] }
 0x2c6   :  { %906 = vst [vmem:[#allocation1] ss:$9 sm:$0xff] %v6727_v62 }
 0x2cd   :  { %v907_v51 = vld [vmem:[#allocation1] sm:$0xf] }
 0x2ce   :  { %909 = vst [vmem:[#allocation1] ss:$9 sm:$0xff] %v6737_v5  ;;  %v989_v30 = vunpack.c.l.b16 %v907_v51  ;;  %v986_v51 = vunpack.c.l.b16 %v7015_v36 }
 0x2d0   :  { %v1026_v40 = vrot.slane %v989_v30, 7  ;;  %v1022_v30 = vrot.slane %v986_v51, 2  ;;  %v2841_v51 = vpop.f32.mrf.mxu1 }
 0x2d5   :  { %v910_v11 = vld [vmem:[#allocation1] sm:$0xf] }
 0x2d6   :  { %913 = vst [vmem:[#allocation1] ss:$9 sm:$0xff] %v8807_v55  ;;  %v990_v44 = vunpack.c.l.b16 %v910_v11 }
 0x2d8   :  { %v1028_v59 = vrot.slane %v990_v44, 6 }
 0x2dd   :  { %v914_v37 = vld [vmem:[#allocation1] sm:$0xf] }
 0x2de   :  { %916 = vst [vmem:[#allocation1] ss:$9 sm:$0xff] %v6762_v29  ;;  %v991_v25 = vunpack.c.l.b16 %v914_v37  ;;  %v988_v37 = vunpack.c.l.b16 %v7022_v57 }
 0x2e0   :  { %v1030_v55 = vrot.slane %v991_v25, 5  ;;  %v1019_v25 = vsel %vm632_vm10, %v1018_v19, %v1017_v49 }
 0x2e5   :  { %v917_v3 = vld [vmem:[#allocation1] sm:$0xf] }
 0x2e6   :  { %919 = vst [vmem:[#allocation1] ss:$9 sm:$0xff] %v6768_v33  ;;  %v992_v31 = vunpack.c.l.b16 %v917_v3  ;;  %v1020_v3 = vrot.slane %v985_v32, 3 }
 0x2e8   :  { %v1032_v48 = vrot.slane %v992_v31, 4  ;;  %v1021_v31 = vsel %vm635_vm11, %v1020_v3, %v1019_v25 }
 0x2e9   :  { %v1023_v54 = vsel %vm638_vm12, %v1022_v30, %v1021_v31 }
 0x2ed   :  { %v920_v39 = vld [vmem:[#allocation1] sm:$0xf] }
 0x2ee   :  { %922 = vst [vmem:[#allocation1] ss:$9 sm:$0xff] %v6776_v46  ;;  %v993_v1 = vunpack.c.l.b16 %v920_v39  ;;  %v1027_v39 = vsel %vm623_vm7, %v1026_v40, %v988_v37 }
 0x2f0   :  { %v1034_v45 = vrot.slane %v993_v1, 3 }
 0x2f5   :  { %v923_v35 = vld [vmem:[#allocation1] sm:$0xf] }
 0x2f6   :  { %926 = vst [vmem:[#allocation1] ss:$9 sm:$0xff] %v8806_v53  ;;  %v994_v11 = vunpack.c.l.b16 %v923_v35  ;;  %v987_v53 = vunpack.c.l.b16 %v7019_v61  ;;  %v1029_v35 = vsel %vm626_vm8, %v1028_v59, %v1027_v39  ;;  %v7091_v59 = vperm.slane %v6500_v7, 1 }
 0x2f7   :  { %v1031_v6 = vsel %vm629_vm9, %v1030_v55, %v1029_v35  ;;  %v8808_v35 = vrot.slane %v6849_v41, 4 }
 0x2f8   :  { %v1036_v44 = vrot.slane %v994_v11, 2  ;;  %v1024_v57 = vrot.slane %v987_v53, 1  ;;  %v1033_v10 = vsel %vm632_vm10, %v1032_v48, %v1031_v6  ;;  %8915 = vst [vmem:[#allocation47_spill] sm:$0xff] %v7091_v59  ;;  %v2842_v37 = vadd.f32 %v2841_v51, %v7091_v59 }
 0x2f9   :  { %v1035_v32 = vsel %vm635_vm11, %v1034_v45, %v1033_v10  ;;  %v8811_v51 = vrot.slane %v6869_v43, 4 }
 0x2fa   :  { %v1037_v40 = vsel %vm638_vm12, %v1036_v44, %v1035_v32 }
 0x2fd   :  { %v927_v36 = vld [vmem:[#allocation1] sm:$0xf] }
 0x2fe   :  { %929 = vst [vmem:[#allocation1] ss:$9 sm:$0xff] %v6639_v13  ;;  %v995_v61 = vunpack.c.l.b16 %v927_v36  ;;  %v1025_v13 = vsel %vm641_vm13, %v1024_v57, %v1023_v54  ;;  %v134_v57 = vadd.f32 %v6660_v20, %v6665_v22 }
 0x300   :  { %v1038_v1 = vrot.slane %v995_v61, 1  ;;  %v173_v25 = vmax.f32 %v134_v57, 0.0 }
 0x302   :  { %v1039_v53 = vsel %vm641_vm13, %v1038_v1, %v1037_v40  ;;  %v189_v10 = vpack.c.bf16 %v173_v25, %v173_v25 }
 0x303   :  { %v1068_v55 = vpack.c.b16 %v1039_v53, %v1025_v13 }
 0x304   :  { %v213_v32 = vshrl.u32 %v189_v10, 16 }
 0x305   :  { %v930_v11 = vld [vmem:[#allocation1] sm:$0xf]  ;;  %2873 = vmatmul.bf16.vlgmr.msra.gmra.mxu3 %v1068_v55  ;;  %v216_v55 = vshll.u32 %v189_v10, 16 }
 0x306   :  { %932 = vst [vmem:[#allocation1] ss:$9 sm:$0xff] %v6645_v15  ;;  %v8809_v15 = vrot.slane %v6817_v4, 4  ;;  %v215_v40 = vrot.slane %v213_v32, 7  ;;  %v996_v13 = vunpack.c.l.b16 %v930_v11 }
 0x308   :  { %v2860_v19 = vpop.f32.mrf.mxu2 }
 0x309   :  { %v7095_v48 = vadd.f32 %v2860_v19, %v2842_v37 }
 0x30d   :  { %v933_v49 = vld [vmem:[#allocation1] sm:$0xf] }
 0x30e   :  { %935 = vst [vmem:[#allocation1] ss:$9 sm:$0xff] %v6651_v17  ;;  %v997_v1 = vunpack.c.l.b16 %v933_v49 }
 0x310   :  { %v1040_v53 = vrot.slane %v997_v1, 7 }
 0x315   :  { %v936_v3 = vld [vmem:[#allocation1] sm:$0xf] }
 0x316   :  { %938 = vst [vmem:[#allocation1] ss:$9 sm:$0xff] %v401_v28  ;;  %v998_v54 = vunpack.c.l.b16 %v936_v3 }
 0x318   :  { %v1042_v57 = vrot.slane %v998_v54, 6 }
 0x31d   :  { %v939_v39 = vld [vmem:[#allocation1] sm:$0xf] }
 0x31e   :  { %941 = vst [vmem:[#allocation1] ss:$9 sm:$0xff] %v6824_v8  ;;  %v999_v7 = vunpack.c.l.b16 %v939_v39 }
 0x320   :  { %v1044_v1 = vrot.slane %v999_v7, 5 }
 0x325   :  { %v942_v45 = vld [vmem:[#allocation1] sm:$0xf] }
 0x326   :  { %944 = vst [vmem:[#allocation1] ss:$9 sm:$0xff] %v6830_v23  ;;  %v1000_v49 = vunpack.c.l.b16 %v942_v45 }
 0x32d   :  { %v945_v36 = vld [vmem:[#allocation1] sm:$0xf] }
 0x32e   :  { %947 = vst [vmem:[#allocation1] ss:$9 sm:$0xff] %v6836_v58  ;;  %v1001_v32 = vunpack.c.l.b16 %v945_v36 }
 0x335   :  { %v948_v30 = vld [vmem:[#allocation1] sm:$0xf] }
 0x336   :  { %951 = vst [vmem:[#allocation1] ss:$9 sm:$0xff] %v8809_v15  ;;  %v1041_v15 = vsel %vm623_vm7, %v1040_v53, %v996_v13  ;;  %v1002_v27 = vunpack.c.l.b16 %v948_v30 }
 0x337   :  { %v1043_v39 = vsel %vm626_vm8, %v1042_v57, %v1041_v15 }
 0x338   :  { %v1045_v45 = vsel %vm629_vm9, %v1044_v1, %v1043_v39  ;;  %v1050_v53 = vrot.slane %v1002_v27, 2 }
 0x33d   :  { %v952_v17 = vld [vmem:[#allocation1] sm:$0xf] }
 0x33e   :  { %954 = vst [vmem:[#allocation1] ss:$9 sm:$0xff] %v6854_v50  ;;  %v1003_v54 = vunpack.c.l.b16 %v952_v17 }
 0x345   :  { %v955_v12 = vld [vmem:[#allocation1] sm:$0xf] }
 0x346   :  { %957 = vst [vmem:[#allocation1] ss:$9 sm:$0xff] %v6858_v18 }
 0x34d   :  { %v958_v28 = vld [vmem:[#allocation1] sm:$0xf] }
 0x34e   :  { %960 = vst [vmem:[#allocation1] ss:$9 sm:$0xff] %v6862_v63  ;;  %v1005_v37 = vunpack.c.l.b16 %v958_v28 }
 0x350   :  { %v1054_v10 = vrot.slane %v1005_v37, 7 }
 0x355   :  { %v961_v44 = vld [vmem:[#allocation1] sm:$0xf] }
 0x356   :  { %964 = vst [vmem:[#allocation1] ss:$9 sm:$0xff] %v8808_v35  ;;  %v1006_v19 = vunpack.c.l.b16 %v961_v44  ;;  %v218_v35 = vor.u32 %v216_v55, %v215_v40  ;;  %v1004_v40 = vunpack.c.l.b16 %v955_v12  ;;  %v1052_v12 = vrot.slane %v1003_v54, 1  ;;  %v6300_v54 = vld [vmem:[%s8797_s2 + $0xf8] sm:$0xff] }
 0x357   :  { %2884 = vmatpush.bf16.msrb.mxu1 %v6300_v54 }
 0x358   :  { %v1056_v28 = vrot.slane %v1006_v19, 6  ;;  %v345_v44 = vsel %vm6620_vm3, 0, %v218_v35  ;;  %v1055_v36 = vsel %vm623_vm7, %v1054_v10, %v1004_v40  ;;  %v6299_v40 = vld [vmem:[%s8797_s2 + $0xf0] sm:$0xff] }
 0x359   :  { %v7128_v30 = vsel %vm6624_vm6, %v345_v44, 0  ;;  %v6266_v44 = vld [vmem:[%s8795_s0 + $0x38] sm:$0xff] }
 0x35a   :  { %v1057_v7 = vsel %vm626_vm8, %v1056_v28, %v1055_v36  ;;  %v7144_v39 = vrot.slane %v7128_v30, 1  ;;  %5362 = vmatmul.msk.bf16.gmra.mxu0 %vm99_vm0, %v6266_v44  ;;  %vm7935_vm0 = vmand %vm3108_vm14, %vm3109_vm15 }
 0x35b   :  { %2885 = vmatpush.bf16.msrb.mxu1 %v6299_v40 }
 0x35d   :  { %v965_v61 = vld [vmem:[#allocation1] sm:$0xf] }
 0x35e   :  { %967 = vst [vmem:[#allocation1] ss:$9 sm:$0xff] %v6873_v21  ;;  %v1007_v25 = vunpack.c.l.b16 %v965_v61  ;;  %v1046_v61 = vrot.slane %v1000_v49, 4 }
 0x360   :  { %v1058_v55 = vrot.slane %v1007_v25, 5 }
 0x362   :  { %v1059_v37 = vsel %vm629_vm9, %v1058_v55, %v1057_v7  ;;  %v7172_v7 = vrot.slane %v7128_v30, 3 }
 0x365   :  { %v968_v6 = vld [vmem:[#allocation1] sm:$0xf] }
 0x366   :  { %970 = vst [vmem:[#allocation1] ss:$9 sm:$0xff] %v6877_v26  ;;  %v1008_v3 = vunpack.c.l.b16 %v968_v6  ;;  %v1048_v6 = vrot.slane %v1001_v32, 3 }
 0x36d   :  { %v971_v31 = vld [vmem:[#allocation1] sm:$0xf] }
 0x36e   :  { %973 = vst [vmem:[#allocation1] ss:$9 sm:$0xff] %v6884_v16  ;;  %v1009_v11 = vunpack.c.l.b16 %v971_v31 }
 0x370   :  { %v1062_v31 = vrot.slane %v1009_v11, 3 }
 0x375   :  { %v974_v20 = vld [vmem:[#allocation1] sm:$0xf] }
 0x376   :  { %977 = vst [vmem:[#allocation1] ss:$9 sm:$0xff] %v8811_v51  ;;  %v1010_v60 = vunpack.c.l.b16 %v974_v20  ;;  %v1060_v51 = vrot.slane %v1008_v3, 4  ;;  %v1047_v20 = vsel %vm632_vm10, %v1046_v61, %v1045_v45  ;;  %v7160_v61 = vrot.slane %v7128_v30, 2  ;;  %v6298_v45 = vld [vmem:[%s8797_s2 + $0xe8] sm:$0xff] }
 0x377   :  { %v1049_v57 = vsel %vm635_vm11, %v1048_v6, %v1047_v20  ;;  %2886 = vmatpush.bf16.msrb.mxu1 %v6298_v45 }
 0x378   :  { %v1064_v35 = vrot.slane %v1010_v60, 2  ;;  %v1061_v19 = vsel %vm632_vm10, %v1060_v51, %v1059_v37  ;;  %v1051_v27 = vsel %vm638_vm12, %v1050_v53, %v1049_v57  ;;  %v8917_v60 = vld [vmem:[#allocation12_spill] sm:$0xff] }
 0x379   :  { %v1063_v25 = vsel %vm635_vm11, %v1062_v31, %v1061_v19  ;;  %v139_v32 = vadd.f32 %v8917_v60, %v6665_v22  ;;  %v1053_v11 = vsel %vm641_vm13, %v1052_v12, %v1051_v27  ;;  %v6297_v31 = vld [vmem:[%s8797_s2 + $0xe0] sm:$0xff]  ;;  %v6295_v37 = vld [vmem:[%s8797_s2 + $0xd0] sm:$0xff]  ;;  %v6294_v19 = vld [vmem:[%s8797_s2 + $0xc8] sm:$0xff] }
 0x37a   :  { %v1065_v3 = vsel %vm638_vm12, %v1064_v35, %v1063_v25  ;;  %v6296_v35 = vld [vmem:[%s8797_s2 + $0xd8] sm:$0xff] }
 0x37b   :  { %v175_v28 = vmax.f32 %v139_v32, 0.0  ;;  %2887 = vmatpush.bf16.msrb.mxu1 %v6297_v31  ;;  %v8918_v27 = vld [vmem:[#allocation17_spill] sm:$0xff] }
 0x37d   :  { %v978_v15 = vld [vmem:[#allocation1] sm:$0xf]  ;;  %v191_v55 = vpack.c.bf16 %v175_v28, %v175_v28 }
 0x37e   :  { %1073 = vst [vmem:[#allocation1] ss:$9 sm:$0xff] %v7128_v30  ;;  %v1011_v17 = vunpack.c.l.b16 %v978_v15 }
 0x37f   :  { %v227_v36 = vshrl.u32 %v191_v55, 16  ;;  %v230_v53 = vshll.u32 %v191_v55, 16  ;;  %2888 = vmatpush.bf16.msrb.mxu1 %v6296_v35  ;;  %v8919_v35 = vld [vmem:[#allocation23_spill] sm:$0xff] }
 0x380   :  { %v1066_v49 = vrot.slane %v1011_v17, 1 }
 0x381   :  { %v229_v15 = vrot.slane %v227_v36, 7 }
 0x382   :  { %v1067_v1 = vsel %vm641_vm13, %v1066_v49, %v1065_v3  ;;  %v6293_v49 = vld [vmem:[%s8797_s2 + $0xc0] sm:$0xff]  ;;  %v144_v3 = vadd.f32 %v8918_v27, %v6665_v22 }
 0x383   :  { %v1069_v10 = vpack.c.b16 %v1067_v1, %v1053_v11  ;;  %v232_v12 = vor.u32 %v230_v53, %v229_v15  ;;  %2889 = vmatpush.bf16.msrb.mxu1 %v6295_v37 }
 0x384   :  { %v177_v11 = vmax.f32 %v144_v3, 0.0 }
 0x385   :  { %v7146_v51 = vld [vmem:[#allocation1] sm:$0xf]  ;;  %2878 = vmatmul.bf16.gmra.mxu3 %v1069_v10  ;;  %v347_v20 = vsel %vm6620_vm3, 0, %v232_v12  ;;  %v149_v12 = vadd.f32 %v8919_v35, %v6665_v22 }
 0x386   :  { %1077 = vst [vmem:[#allocation1] ss:$9 sm:$0xff] %v7144_v39  ;;  %v7190_v57 = vsel %vm6624_vm6, %v347_v20, 0  ;;  %v193_v1 = vpack.c.bf16 %v177_v11, %v177_v11 }
 0x387   :  { %2890 = vmatpush.bf16.msrb.mxu1 %v6294_v19  ;;  %v7201_v60 = vrot.slane %v7190_v57, 1  ;;  %v7207_v10 = vrot.slane %v7190_v57, 2  ;;  %v7213_v55 = vrot.slane %v7190_v57, 3  ;;  %v179_v19 = vmax.f32 %v149_v12, 0.0 }
 0x388   :  { %v241_v44 = vshrl.u32 %v193_v1, 16  ;;  %v244_v40 = vshll.u32 %v193_v1, 16  ;;  %v7265_v63 = vpop.f32.mrf.mxu3 }
 0x389   :  { %8921 = vst [vmem:[#allocation12_spill] sm:$0xff] %v7265_v63 }
 0x38a   :  { %v243_v54 = vrot.slane %v241_v44, 7 }
 0x38b   :  { %2891 = vmatpush.bf16.msrb.mxu1 %v6293_v49  ;;  %v195_v49 = vpack.c.bf16 %v179_v19, %v179_v19  ;;  %v8920_v19 = vld [vmem:[#allocation28_spill] sm:$0xff] }
 0x38c   :  { %v246_v36 = vor.u32 %v244_v40, %v243_v54 }
 0x38d   :  { %v7165_v6 = vld [vmem:[#allocation1] sm:$0xf]  ;;  %v255_v11 = vshrl.u32 %v195_v49, 16  ;;  %v258_v44 = vshll.u32 %v195_v49, 16  ;;  %v154_v49 = vadd.f32 %v8920_v19, %v6665_v22 }
 0x38e   :  { %1081 = vst [vmem:[#allocation1] ss:$9 sm:$0xff] %v7160_v61  ;;  %v349_v31 = vsel %vm6620_vm3, 0, %v246_v36 }
 0x38f   :  { %v7222_v15 = vsel %vm6624_vm6, %v349_v31, 0  ;;  %v257_v1 = vrot.slane %v255_v11, 7  ;;  %v181_v11 = vmax.f32 %v154_v49, 0.0  ;;  %v1201_v49 = vunpack.c.l.b16 %v7165_v6 }
 0x390   :  { %v7230_v37 = vrot.slane %v7222_v15, 1  ;;  %v7236_v27 = vrot.slane %v7222_v15, 2  ;;  %v7240_v54 = vrot.slane %v7222_v15, 3 }
 0x391   :  { %v260_v36 = vor.u32 %v258_v44, %v257_v1  ;;  %v197_v44 = vpack.c.bf16 %v181_v11, %v181_v11 }
 0x393   :  { %v351_v31 = vsel %vm6620_vm3, 0, %v260_v36  ;;  %v269_v2 = vshrl.u32 %v197_v44, 16  ;;  %v272_v59 = vshll.u32 %v197_v44, 16 }
 0x394   :  { %v7247_v35 = vsel %vm6624_vm6, %v351_v31, 0 }
 0x395   :  { %v7177_v17 = vld [vmem:[#allocation1] sm:$0xf]  ;;  %v7253_v14 = vrot.slane %v7247_v35, 1  ;;  %v7257_v36 = vrot.slane %v7247_v35, 2  ;;  %v271_v0 = vrot.slane %v269_v2, 7  ;;  %v7261_v19 = vrot.slane %v7247_v35, 3 }
 0x396   :  { %1085 = vst [vmem:[#allocation1] ss:$9 sm:$0xff] %v7172_v7  ;;  %v1202_v43 = vunpack.c.l.b16 %v7177_v17  ;;  %v1200_v2 = vunpack.c.l.b16 %v7146_v51  ;;  %v1232_v17 = vrot.slane %v1201_v49, 7 }
 0x397   :  { %v274_v16 = vor.u32 %v272_v59, %v271_v0 }
 0x398   :  { %v1234_v58 = vrot.slane %v1202_v43, 6 }
 0x399   :  { %v353_v0 = vsel %vm6620_vm3, 0, %v274_v16 }
 0x39a   :  { %v7279_v51 = vsel %vm6624_vm6, %v353_v0, 0 }
 0x39d   :  { %v7192_v25 = vld [vmem:[#allocation1] sm:$0xf] }
 0x39e   :  { %1089 = vst [vmem:[#allocation1] ss:$9 sm:$0xff] %v7190_v57  ;;  %v1203_v18 = vunpack.c.l.b16 %v7192_v25 }
 0x3a0   :  { %v1236_v16 = vrot.slane %v1203_v18, 5 }
 0x3a5   :  { %v7203_v32 = vld [vmem:[#allocation1] sm:$0xf] }
 0x3a6   :  { %1093 = vst [vmem:[#allocation1] ss:$9 sm:$0xff] %v7201_v60  ;;  %v1204_v59 = vunpack.c.l.b16 %v7203_v32 }
 0x3a8   :  { %v1238_v32 = vrot.slane %v1204_v59, 4 }
 0x3ad   :  { %v7209_v28 = vld [vmem:[#allocation1] sm:$0xf] }
 0x3ae   :  { %1097 = vst [vmem:[#allocation1] ss:$9 sm:$0xff] %v7207_v10 }
 0x3b5   :  { %v7215_v45 = vld [vmem:[#allocation1] sm:$0xf] }
 0x3b6   :  { %1101 = vst [vmem:[#allocation1] ss:$9 sm:$0xff] %v7213_v55  ;;  %v1206_v63 = vunpack.c.l.b16 %v7215_v45 }
 0x3bd   :  { %v7224_v53 = vld [vmem:[#allocation1] sm:$0xf] }
 0x3be   :  { %1105 = vst [vmem:[#allocation1] ss:$9 sm:$0xff] %v7222_v15  ;;  %v1207_v25 = vunpack.c.l.b16 %v7224_v53  ;;  %v1242_v53 = vrot.slane %v1206_v63, 2 }
 0x3c5   :  { %v7232_v20 = vld [vmem:[#allocation1] sm:$0xf] }
 0x3c6   :  { %1109 = vst [vmem:[#allocation1] ss:$9 sm:$0xff] %v7230_v37 }
 0x3cd   :  { %v1110_v3 = vld [vmem:[#allocation1] sm:$0xf] }
 0x3ce   :  { %1113 = vst [vmem:[#allocation1] ss:$9 sm:$0xff] %v7236_v27  ;;  %v1209_v26 = vunpack.c.l.b16 %v1110_v3  ;;  %v1205_v3 = vunpack.c.l.b16 %v7209_v28 }
 0x3d5   :  { %v1114_v40 = vld [vmem:[#allocation1] sm:$0xf] }
 0x3d6   :  { %1117 = vst [vmem:[#allocation1] ss:$9 sm:$0xff] %v7240_v54  ;;  %v1210_v11 = vunpack.c.l.b16 %v1114_v40  ;;  %v1246_v40 = vrot.slane %v1209_v26, 7  ;;  %v1240_v26 = vrot.slane %v1205_v3, 3 }
 0x3d8   :  { %v1248_v23 = vrot.slane %v1210_v11, 6  ;;  %v1244_v11 = vrot.slane %v1207_v25, 1 }
 0x3dd   :  { %v1118_v12 = vld [vmem:[#allocation1] sm:$0xf] }
 0x3de   :  { %1121 = vst [vmem:[#allocation1] ss:$9 sm:$0xff] %v7247_v35  ;;  %v1211_v50 = vunpack.c.l.b16 %v1118_v12  ;;  %v1208_v12 = vunpack.c.l.b16 %v7232_v20 }
 0x3e0   :  { %v1250_v8 = vrot.slane %v1211_v50, 5  ;;  %v1247_v45 = vsel %vm623_vm7, %v1246_v40, %v1208_v12  ;;  %v7301_v12 = vrot.slane %v7279_v51, 1 }
 0x3e1   :  { %v1249_v20 = vsel %vm626_vm8, %v1248_v23, %v1247_v45  ;;  %v7310_v45 = vrot.slane %v7279_v51, 2 }
 0x3e2   :  { %v1251_v0 = vsel %vm629_vm9, %v1250_v8, %v1249_v20  ;;  %v7316_v20 = vrot.slane %v7279_v51, 3 }
 0x3e5   :  { %v1122_v1 = vld [vmem:[#allocation1] sm:$0xf] }
 0x3e6   :  { %1125 = vst [vmem:[#allocation1] ss:$9 sm:$0xff] %v7253_v14  ;;  %v1212_v6 = vunpack.c.l.b16 %v1122_v1  ;;  %v1233_v1 = vsel %vm623_vm7, %v1232_v17, %v1200_v2 }
 0x3e8   :  { %v1252_v28 = vrot.slane %v1212_v6, 4  ;;  %v7290_v6 = vpop.f32.mrf.mxu3 }
 0x3e9   :  { %8922 = vst [vmem:[#allocation17_spill] sm:$0xff] %v7290_v6 }
 0x3ea   :  { %v1253_v59 = vsel %vm632_vm10, %v1252_v28, %v1251_v0  ;;  %v8924_v0 = vld [vmem:[#allocation34_spill] sm:$0xff] }
 0x3ed   :  { %v1126_v31 = vld [vmem:[#allocation1] sm:$0xf] }
 0x3ee   :  { %1129 = vst [vmem:[#allocation1] ss:$9 sm:$0xff] %v7257_v36  ;;  %v1213_v44 = vunpack.c.l.b16 %v1126_v31  ;;  %v1235_v31 = vsel %vm626_vm8, %v1234_v58, %v1233_v1 }
 0x3ef   :  { %v1237_v49 = vsel %vm629_vm9, %v1236_v16, %v1235_v31 }
 0x3f0   :  { %v1239_v2 = vsel %vm632_vm10, %v1238_v32, %v1237_v49 }
 0x3f1   :  { %v1241_v58 = vsel %vm635_vm11, %v1240_v26, %v1239_v2  ;;  %v164_v2 = vadd.f32 %v8924_v0, %v6665_v22 }
 0x3f5   :  { %v1130_v21 = vld [vmem:[#allocation1] sm:$0xf] }
 0x3f6   :  { %1133 = vst [vmem:[#allocation1] ss:$9 sm:$0xff] %v7261_v19  ;;  %v1214_v41 = vunpack.c.l.b16 %v1130_v21  ;;  %v1254_v21 = vrot.slane %v1213_v44, 3  ;;  %v8923_v44 = vld [vmem:[#allocation29_spill] sm:$0xff] }
 0x3f7   :  { %v159_v8 = vadd.f32 %v8923_v44, %v6665_v22 }
 0x3f8   :  { %v1256_v18 = vrot.slane %v1214_v41, 2  ;;  %v1255_v63 = vsel %vm635_vm11, %v1254_v21, %v1253_v59  ;;  %v1243_v41 = vsel %vm638_vm12, %v1242_v53, %v1241_v58 }
 0x3f9   :  { %v1245_v17 = vsel %vm641_vm13, %v1244_v11, %v1243_v41  ;;  %v183_v32 = vmax.f32 %v159_v8, 0.0 }
 0x3fa   :  { %v1257_v3 = vsel %vm638_vm12, %v1256_v18, %v1255_v63  ;;  %v185_v63 = vmax.f32 %v164_v2, 0.0 }
 0x3fb   :  { %v199_v26 = vpack.c.bf16 %v183_v32, %v183_v32 }
 0x3fd   :  { %v1134_v43 = vld [vmem:[#allocation1] sm:$0xf]  ;;  %v286_v53 = vshll.u32 %v199_v26, 16 }
 0x3fe   :  { %v1215_v50 = vunpack.c.l.b16 %v1134_v43  ;;  %1137 = vst [vmem:[#allocation1] ss:$9 sm:$0xff] %v7279_v51  ;;  %v283_v43 = vshrl.u32 %v199_v26, 16 }
 0x400   :  { %v1258_v23 = vrot.slane %v1215_v50, 1  ;;  %v285_v31 = vrot.slane %v283_v43, 7 }
 0x402   :  { %v1259_v40 = vsel %vm641_vm13, %v1258_v23, %v1257_v3  ;;  %v288_v50 = vor.u32 %v286_v53, %v285_v31  ;;  %v201_v23 = vpack.c.bf16 %v185_v63, %v185_v63  ;;  %v168_v31 = vpop.f32.mrf.mxu0 }
 0x403   :  { %v1288_v25 = vpack.c.b16 %v1259_v40, %v1245_v17  ;;  %v169_v53 = vadd.f32 %v168_v31, %v6665_v22 }
 0x404   :  { %v297_v44 = vshrl.u32 %v201_v23, 16  ;;  %v300_v17 = vshll.u32 %v201_v23, 16 }
 0x405   :  { %2892 = vmatmul.bf16.vlgmr.msrb.gmra.mxu1 %v1288_v25  ;;  %v7303_v16 = vld [vmem:[#allocation1] sm:$0xf]  ;;  %v187_v0 = vmax.f32 %v169_v53, 0.0 }
 0x406   :  { %1141 = vst [vmem:[#allocation1] ss:$9 sm:$0xff] %v7301_v12  ;;  %v299_v8 = vrot.slane %v297_v44, 7  ;;  %v1216_v22 = vunpack.c.l.b16 %v7303_v16 }
 0x407   :  { %v203_v2 = vpack.c.bf16 %v187_v0, %v187_v0 }
 0x408   :  { %v2879_v28 = vpop.f32.mrf.mxu3  ;;  %v302_v32 = vor.u32 %v300_v17, %v299_v8 }
 0x409   :  { %v7307_v1 = vadd.f32 %v2879_v28, %v7095_v48  ;;  %v355_v48 = vsel %vm6620_vm3, 0, %v288_v50  ;;  %v311_v44 = vshrl.u32 %v203_v2, 16  ;;  %v314_v17 = vshll.u32 %v203_v2, 16 }
 0x40a   :  { %v7325_v49 = vsel %vm6624_vm6, %v355_v48, 0  ;;  %v357_v28 = vsel %vm6620_vm3, 0, %v302_v32 }
 0x40b   :  { %v7333_v59 = vrot.slane %v7325_v49, 1  ;;  %v7339_v41 = vrot.slane %v7325_v49, 2  ;;  %v7345_v40 = vrot.slane %v7325_v49, 3  ;;  %v7354_v26 = vsel %vm6624_vm6, %v357_v28, 0 }
 0x40c   :  { %v7361_v50 = vrot.slane %v7354_v26, 1  ;;  %v7365_v63 = vrot.slane %v7354_v26, 2  ;;  %v313_v8 = vrot.slane %v311_v44, 7  ;;  %v7369_v32 = vrot.slane %v7354_v26, 3 }
 0x40d   :  { %v7312_v21 = vld [vmem:[#allocation1] sm:$0xf] }
 0x40e   :  { %1145 = vst [vmem:[#allocation1] ss:$9 sm:$0xff] %v7310_v45  ;;  %v316_v31 = vor.u32 %v314_v17, %v313_v8 }
 0x410   :  { %v359_v53 = vsel %vm6620_vm3, 0, %v316_v31 }
 0x411   :  { %v7376_v0 = vsel %vm6624_vm6, %v359_v53, 0  ;;  %v1217_v53 = vunpack.c.l.b16 %v7312_v21 }
 0x412   :  { %8925 = vst [vmem:[#allocation23_spill] sm:$0xff] %v7376_v0  ;;  %v7380_v44 = vrot.slane %v7376_v0, 1  ;;  %v7384_v8 = vrot.slane %v7376_v0, 2  ;;  %v7388_v31 = vrot.slane %v7376_v0, 3 }
 0x413   :  { %v1260_v52 = vrot.slane %v1217_v53, 7 }
 0x415   :  { %v7318_v18 = vld [vmem:[#allocation1] sm:$0xf] }
 0x416   :  { %1149 = vst [vmem:[#allocation1] ss:$9 sm:$0xff] %v7316_v20  ;;  %v1218_v9 = vunpack.c.l.b16 %v7318_v18 }
 0x418   :  { %v1262_v18 = vrot.slane %v1218_v9, 6 }
 0x41d   :  { %v7327_v11 = vld [vmem:[#allocation1] sm:$0xf] }
 0x41e   :  { %1153 = vst [vmem:[#allocation1] ss:$9 sm:$0xff] %v7325_v49  ;;  %v1219_v33 = vunpack.c.l.b16 %v7327_v11 }
 0x420   :  { %v1264_v11 = vrot.slane %v1219_v33, 5 }
 0x425   :  { %v7335_v58 = vld [vmem:[#allocation1] sm:$0xf] }
 0x426   :  { %1157 = vst [vmem:[#allocation1] ss:$9 sm:$0xff] %v7333_v59  ;;  %v1220_v24 = vunpack.c.l.b16 %v7335_v58  ;;  %v1261_v58 = vsel %vm623_vm7, %v1260_v52, %v1216_v22 }
 0x428   :  { %v1266_v34 = vrot.slane %v1220_v24, 4 }
 0x42d   :  { %v7341_v3 = vld [vmem:[#allocation1] sm:$0xf] }
 0x42e   :  { %1161 = vst [vmem:[#allocation1] ss:$9 sm:$0xff] %v7339_v41  ;;  %v1221_v62 = vunpack.c.l.b16 %v7341_v3 }
 0x435   :  { %v7347_v25 = vld [vmem:[#allocation1] sm:$0xf] }
 0x436   :  { %1165 = vst [vmem:[#allocation1] ss:$9 sm:$0xff] %v7345_v40 }
 0x43d   :  { %v7356_v43 = vld [vmem:[#allocation1] sm:$0xf] }
 0x43e   :  { %1169 = vst [vmem:[#allocation1] ss:$9 sm:$0xff] %v7354_v26  ;;  %v1223_v42 = vunpack.c.l.b16 %v7356_v43 }
 0x440   :  { %v1272_v24 = vrot.slane %v1223_v42, 1 }
 0x445   :  { %v1170_v48 = vld [vmem:[#allocation1] sm:$0xf] }
 0x446   :  { %1173 = vst [vmem:[#allocation1] ss:$9 sm:$0xff] %v7361_v50  ;;  %v1224_v38 = vunpack.c.l.b16 %v1170_v48 }
 0x44d   :  { %v1174_v23 = vld [vmem:[#allocation1] sm:$0xf] }
 0x44e   :  { %1177 = vst [vmem:[#allocation1] ss:$9 sm:$0xff] %v7365_v63  ;;  %v1225_v4 = vunpack.c.l.b16 %v1174_v23  ;;  %v1222_v23 = vunpack.c.l.b16 %v7347_v25 }
 0x450   :  { %v1274_v21 = vrot.slane %v1225_v4, 7  ;;  %v1263_v4 = vsel %vm626_vm8, %v1262_v18, %v1261_v58  ;;  %v1270_v25 = vrot.slane %v1222_v23, 2 }
 0x452   :  { %v1275_v3 = vsel %vm623_vm7, %v1274_v21, %v1224_v38 }
 0x455   :  { %v1178_v28 = vld [vmem:[#allocation1] sm:$0xf] }
 0x456   :  { %1181 = vst [vmem:[#allocation1] ss:$9 sm:$0xff] %v7369_v32  ;;  %v1226_v46 = vunpack.c.l.b16 %v1178_v28 }
 0x458   :  { %v1276_v28 = vrot.slane %v1226_v46, 6 }
 0x45a   :  { %v1277_v9 = vsel %vm626_vm8, %v1276_v28, %v1275_v3  ;;  %v6307_v3 = vld [vmem:[%s8797_s2 + $0x130] sm:$0xff] }
 0x45d   :  { %v1182_v6 = vld [vmem:[#allocation1] sm:$0xf] }
 0x45e   :  { %1185 = vst [vmem:[#allocation1] ss:$9 sm:$0xff] %v7376_v0  ;;  %v1227_v29 = vunpack.c.l.b16 %v1182_v6 }
 0x460   :  { %v1278_v6 = vrot.slane %v1227_v29, 5  ;;  %v1265_v29 = vsel %vm629_vm9, %v1264_v11, %v1263_v4  ;;  %v6305_v4 = vld [vmem:[%s8797_s2 + $0x120] sm:$0xff] }
 0x461   :  { %v1267_v22 = vsel %vm632_vm10, %v1266_v34, %v1265_v29  ;;  %v6302_v29 = vld [vmem:[%s8797_s2 + $0x108] sm:$0xff] }
 0x465   :  { %v1186_v2 = vld [vmem:[#allocation1] sm:$0xf] }
 0x466   :  { %1189 = vst [vmem:[#allocation1] ss:$9 sm:$0xff] %v7380_v44  ;;  %v1228_v5 = vunpack.c.l.b16 %v1186_v2  ;;  %v1268_v2 = vrot.slane %v1221_v62, 3 }
 0x468   :  { %v1280_v16 = vrot.slane %v1228_v5, 4  ;;  %v1279_v5 = vsel %vm629_vm9, %v1278_v6, %v1277_v9  ;;  %v1269_v52 = vsel %vm635_vm11, %v1268_v2, %v1267_v22  ;;  %v6308_v2 = vld [vmem:[%s8797_s2 + $0x138] sm:$0xff]  ;;  %v7459_v22 = vpop.f32.mrf.mxu1 }
 0x469   :  { %v1271_v33 = vsel %vm638_vm12, %v1270_v25, %v1269_v52  ;;  %2903 = vmatpush.bf16.msrb.mxu2 %v6308_v2  ;;  %v6304_v9 = vld [vmem:[%s8797_s2 + $0x118] sm:$0xff]  ;;  %8926 = vst [vmem:[#allocation28_spill] sm:$0xff] %v7459_v22 }
 0x46a   :  { %v1281_v38 = vsel %vm632_vm10, %v1280_v16, %v1279_v5  ;;  %v1273_v43 = vsel %vm641_vm13, %v1272_v24, %v1271_v33  ;;  %v6301_v24 = vld [vmem:[%s8797_s2 + $0x100] sm:$0xff] }
 0x46d   :  { %v1190_v17 = vld [vmem:[#allocation1] sm:$0xf]  ;;  %2904 = vmatpush.bf16.msrb.mxu2 %v6307_v3 }
 0x46e   :  { %1193 = vst [vmem:[#allocation1] ss:$9 sm:$0xff] %v7384_v8  ;;  %v1229_v56 = vunpack.c.l.b16 %v1190_v17 }
 0x470   :  { %v1282_v17 = vrot.slane %v1229_v56, 3 }
 0x472   :  { %v1283_v56 = vsel %vm635_vm11, %v1282_v17, %v1281_v38 }
 0x475   :  { %v1194_v13 = vld [vmem:[#allocation1] sm:$0xf] }
 0x476   :  { %1197 = vst [vmem:[#allocation1] ss:$9 sm:$0xff] %v7388_v31  ;;  %v1230_v47 = vunpack.c.l.b16 %v1194_v13 }
 0x478   :  { %v1284_v46 = vrot.slane %v1230_v47, 2 }
 0x47a   :  { %v1285_v47 = vsel %vm638_vm12, %v1284_v46, %v1283_v56  ;;  %v6303_v46 = vld [vmem:[%s8797_s2 + $0x110] sm:$0xff] }
 0x47d   :  { %v1198_v53 = vld [vmem:[#allocation1] sm:$0xf] }
 0x47e   :  { %1292 = vst [vmem:[#allocation1] ss:$9 sm:$0xff] %v7128_v30  ;;  %v1231_v13 = vunpack.c.l.b16 %v1198_v53  ;;  %v6306_v53 = vld [vmem:[%s8797_s2 + $0x128] sm:$0xff] }
 0x47f   :  { %2905 = vmatpush.bf16.msrb.mxu2 %v6306_v53 }
 0x480   :  { %v1286_v62 = vrot.slane %v1231_v13, 1 }
 0x482   :  { %v1287_v48 = vsel %vm641_vm13, %v1286_v62, %v1285_v47  ;;  %v7462_v52 = vpop.f32.mrf.mxu1 }
 0x483   :  { %v1289_v42 = vpack.c.b16 %v1287_v48, %v1273_v43  ;;  %2906 = vmatpush.bf16.msrb.mxu2 %v6305_v4  ;;  %8927 = vst [vmem:[#allocation29_spill] sm:$0xff] %v7462_v52 }
 0x485   :  { %v1293_v21 = vld [vmem:[#allocation1] sm:$0xf]  ;;  %2897 = vmatmul.bf16.gmra.mxu1 %v1289_v42 }
 0x486   :  { %1295 = vst [vmem:[#allocation1] ss:$9 sm:$0xff] %v7144_v39  ;;  %v1388_v56 = vunpack.c.l.b16 %v1293_v21 }
 0x487   :  { %2907 = vmatpush.bf16.msrb.mxu2 %v6304_v9 }
 0x488   :  { %v1420_v53 = vrot.slane %v1388_v56, 1 }
 0x48b   :  { %2908 = vmatpush.bf16.msrb.mxu2 %v6303_v46 }
 0x48d   :  { %v7415_v34 = vld [vmem:[#allocation1] sm:$0xf] }
 0x48e   :  { %1298 = vst [vmem:[#allocation1] ss:$9 sm:$0xff] %v7160_v61  ;;  %v1389_v4 = vunpack.c.l.b16 %v7415_v34 }
 0x48f   :  { %2909 = vmatpush.bf16.msrb.mxu2 %v6302_v29 }
 0x490   :  { %v1421_v34 = vsel %vm623_vm7, %v1389_v4, %v1420_v53 }
 0x493   :  { %2910 = vmatpush.bf16.msrb.mxu2 %v6301_v24 }
 0x495   :  { %v1299_v23 = vld [vmem:[#allocation1] sm:$0xf] }
 0x496   :  { %1301 = vst [vmem:[#allocation1] ss:$9 sm:$0xff] %v7172_v7  ;;  %v1390_v33 = vunpack.c.l.b16 %v1299_v23 }
 0x498   :  { %v1422_v22 = vrot.slane %v1390_v33, 7 }
 0x49d   :  { %v1302_v18 = vld [vmem:[#allocation1] sm:$0xf] }
 0x49e   :  { %1304 = vst [vmem:[#allocation1] ss:$9 sm:$0xff] %v7190_v57  ;;  %v1391_v43 = vunpack.c.l.b16 %v1302_v18 }
 0x4a5   :  { %v1305_v28 = vld [vmem:[#allocation1] sm:$0xf] }
 0x4a6   :  { %1307 = vst [vmem:[#allocation1] ss:$9 sm:$0xff] %v7201_v60  ;;  %v1392_v2 = vunpack.c.l.b16 %v1305_v28 }
 0x4ad   :  { %v7421_v11 = vld [vmem:[#allocation1] sm:$0xf] }
 0x4ae   :  { %1310 = vst [vmem:[#allocation1] ss:$9 sm:$0xff] %v7207_v10  ;;  %v1393_v9 = vunpack.c.l.b16 %v7421_v11 }
 0x4b0   :  { %v1428_v52 = vrot.slane %v1393_v9, 4 }
 0x4b5   :  { %v7424_v6 = vld [vmem:[#allocation1] sm:$0xf] }
 0x4b6   :  { %1313 = vst [vmem:[#allocation1] ss:$9 sm:$0xff] %v7213_v55  ;;  %v1394_v24 = vunpack.c.l.b16 %v7424_v6  ;;  %v1423_v6 = vsel %vm626_vm8, %v1422_v22, %v1421_v34 }
 0x4bd   :  { %v7427_v16 = vld [vmem:[#allocation1] sm:$0xf] }
 0x4be   :  { %1316 = vst [vmem:[#allocation1] ss:$9 sm:$0xff] %v7222_v15  ;;  %v1395_v18 = vunpack.c.l.b16 %v7427_v16 }
 0x4c5   :  { %v1317_v58 = vld [vmem:[#allocation1] sm:$0xf] }
 0x4c6   :  { %1319 = vst [vmem:[#allocation1] ss:$9 sm:$0xff] %v7230_v37  ;;  %v1396_v48 = vunpack.c.l.b16 %v1317_v58  ;;  %v1424_v58 = vrot.slane %v1391_v43, 6 }
 0x4c8   :  { %v1425_v43 = vsel %vm629_vm9, %v1424_v58, %v1423_v6 }
 0x4cd   :  { %v1320_v17 = vld [vmem:[#allocation1] sm:$0xf] }
 0x4ce   :  { %1322 = vst [vmem:[#allocation1] ss:$9 sm:$0xff] %v7236_v27  ;;  %v1397_v46 = vunpack.c.l.b16 %v1320_v17 }
 0x4d5   :  { %v1323_v25 = vld [vmem:[#allocation1] sm:$0xf] }
 0x4d6   :  { %1325 = vst [vmem:[#allocation1] ss:$9 sm:$0xff] %v7240_v54  ;;  %v1398_v47 = vunpack.c.l.b16 %v1323_v25  ;;  %v7468_v25 = vpop.f32.mrf.mxu1 }
 0x4d7   :  { %8928 = vst [vmem:[#allocation34_spill] sm:$0xff] %v7468_v25 }
 0x4d8   :  { %v1436_v23 = vrot.slane %v1398_v47, 7 }
 0x4dd   :  { %v1326_v13 = vld [vmem:[#allocation1] sm:$0xf] }
 0x4de   :  { %1328 = vst [vmem:[#allocation1] ss:$9 sm:$0xff] %v7247_v35  ;;  %v1399_v42 = vunpack.c.l.b16 %v1326_v13  ;;  %v1434_v13 = vrot.slane %v1396_v48, 1  ;;  %v1432_v48 = vrot.slane %v1395_v18, 2 }
 0x4e0   :  { %v1438_v28 = vrot.slane %v1399_v42, 6  ;;  %v1435_v11 = vsel %vm623_vm7, %v1397_v46, %v1434_v13 }
 0x4e1   :  { %v1437_v33 = vsel %vm626_vm8, %v1436_v23, %v1435_v11 }
 0x4e2   :  { %v1439_v42 = vsel %vm629_vm9, %v1438_v28, %v1437_v33 }
 0x4e5   :  { %v1329_v5 = vld [vmem:[#allocation1] sm:$0xf] }
 0x4e6   :  { %1331 = vst [vmem:[#allocation1] ss:$9 sm:$0xff] %v7253_v14  ;;  %v1400_v3 = vunpack.c.l.b16 %v1329_v5  ;;  %v1426_v5 = vrot.slane %v1392_v2, 5 }
 0x4e8   :  { %v1440_v56 = vrot.slane %v1400_v3, 5  ;;  %v1427_v2 = vsel %vm632_vm10, %v1426_v5, %v1425_v43  ;;  %v6315_v43 = vld [vmem:[%s8797_s2 + $0x170] sm:$0xff] }
 0x4e9   :  { %v1429_v53 = vsel %vm635_vm11, %v1428_v52, %v1427_v2 }
 0x4ea   :  { %v1441_v3 = vsel %vm632_vm10, %v1440_v56, %v1439_v42 }
 0x4ed   :  { %v1332_v38 = vld [vmem:[#allocation1] sm:$0xf] }
 0x4ee   :  { %1334 = vst [vmem:[#allocation1] ss:$9 sm:$0xff] %v7257_v36  ;;  %v1401_v29 = vunpack.c.l.b16 %v1332_v38 }
 0x4f0   :  { %v1442_v17 = vrot.slane %v1401_v29, 4 }
 0x4f2   :  { %v1443_v22 = vsel %vm635_vm11, %v1442_v17, %v1441_v3 }
 0x4f5   :  { %v1335_v62 = vld [vmem:[#allocation1] sm:$0xf] }
 0x4f6   :  { %1337 = vst [vmem:[#allocation1] ss:$9 sm:$0xff] %v7261_v19  ;;  %v1402_v21 = vunpack.c.l.b16 %v1335_v62  ;;  %v1430_v62 = vrot.slane %v1394_v24, 3 }
 0x4f8   :  { %v1444_v47 = vrot.slane %v1402_v21, 3  ;;  %v1431_v9 = vsel %vm638_vm12, %v1430_v62, %v1429_v53 }
 0x4f9   :  { %v1433_v24 = vsel %vm641_vm13, %v1432_v48, %v1431_v9 }
 0x4fa   :  { %v1445_v46 = vsel %vm638_vm12, %v1444_v47, %v1443_v22  ;;  %v6316_v47 = vld [vmem:[%s8797_s2 + $0x178] sm:$0xff] }
 0x4fb   :  { %2922 = vmatpush.bf16.msrb.mxu3 %v6316_v47 }
 0x4fd   :  { %v1338_v38 = vld [vmem:[#allocation1] sm:$0xf] }
 0x4fe   :  { %1340 = vst [vmem:[#allocation1] ss:$9 sm:$0xff] %v7279_v51  ;;  %v1403_v16 = vunpack.c.l.b16 %v1338_v38 }
 0x4ff   :  { %2923 = vmatpush.bf16.msrb.mxu3 %v6315_v43 }
 0x500   :  { %v1446_v4 = vrot.slane %v1403_v16, 2 }
 0x502   :  { %v2898_v29 = vpop.f32.mrf.mxu1  ;;  %v1447_v21 = vsel %vm641_vm13, %v1446_v4, %v1445_v46 }
 0x503   :  { %v7487_v23 = vadd.f32 %v2898_v29, %v7307_v1  ;;  %v1476_v18 = vpack.c.b16 %v1447_v21, %v1433_v24  ;;  %v6314_v29 = vld [vmem:[%s8797_s2 + $0x168] sm:$0xff] }
 0x504   :  { %2924 = vmatpush.bf16.msrb.mxu3 %v6314_v29 }
 0x505   :  { %v1341_v58 = vld [vmem:[#allocation1] sm:$0xf]  ;;  %2911 = vmatmul.bf16.vlgmr.msrb.gmra.mxu2 %v1476_v18 }
 0x506   :  { %1343 = vst [vmem:[#allocation1] ss:$9 sm:$0xff] %v7301_v12  ;;  %v1404_v16 = vunpack.c.l.b16 %v1341_v58 }
 0x508   :  { %v1448_v46 = vrot.slane %v1404_v16, 1  ;;  %v6313_v16 = vld [vmem:[%s8797_s2 + $0x160] sm:$0xff] }
 0x509   :  { %2925 = vmatpush.bf16.msrb.mxu3 %v6313_v16 }
 0x50d   :  { %v1344_v52 = vld [vmem:[#allocation1] sm:$0xf] }
 0x50e   :  { %1346 = vst [vmem:[#allocation1] ss:$9 sm:$0xff] %v7310_v45  ;;  %v1405_v24 = vunpack.c.l.b16 %v1344_v52 }
 0x510   :  { %v1449_v52 = vsel %vm623_vm7, %v1405_v24, %v1448_v46  ;;  %v6312_v46 = vld [vmem:[%s8797_s2 + $0x158] sm:$0xff] }
 0x511   :  { %2926 = vmatpush.bf16.msrb.mxu3 %v6312_v46 }
 0x515   :  { %v1347_v13 = vld [vmem:[#allocation1] sm:$0xf] }
 0x516   :  { %1349 = vst [vmem:[#allocation1] ss:$9 sm:$0xff] %v7316_v20  ;;  %v1406_v42 = vunpack.c.l.b16 %v1347_v13 }
 0x51d   :  { %v1350_v28 = vld [vmem:[#allocation1] sm:$0xf] }
 0x51e   :  { %1352 = vst [vmem:[#allocation1] ss:$9 sm:$0xff] %v7325_v49  ;;  %v1407_v3 = vunpack.c.l.b16 %v1350_v28 }
 0x520   :  { %v1452_v28 = vrot.slane %v1407_v3, 6 }
 0x525   :  { %v1353_v5 = vld [vmem:[#allocation1] sm:$0xf] }
 0x526   :  { %1355 = vst [vmem:[#allocation1] ss:$9 sm:$0xff] %v7333_v59  ;;  %v1408_v4 = vunpack.c.l.b16 %v1353_v5 }
 0x528   :  { %v1454_v5 = vrot.slane %v1408_v4, 5 }
 0x52d   :  { %v1356_v56 = vld [vmem:[#allocation1] sm:$0xf] }
 0x52e   :  { %1358 = vst [vmem:[#allocation1] ss:$9 sm:$0xff] %v7339_v41  ;;  %v1409_v21 = vunpack.c.l.b16 %v1356_v56 }
 0x530   :  { %v1456_v56 = vrot.slane %v1409_v21, 4 }
 0x535   :  { %v1359_v1 = vld [vmem:[#allocation1] sm:$0xf] }
 0x536   :  { %1361 = vst [vmem:[#allocation1] ss:$9 sm:$0xff] %v7345_v40  ;;  %v1410_v47 = vunpack.c.l.b16 %v1359_v1 }
 0x53d   :  { %v1362_v34 = vld [vmem:[#allocation1] sm:$0xf] }
 0x53e   :  { %1364 = vst [vmem:[#allocation1] ss:$9 sm:$0xff] %v7354_v26 }
 0x545   :  { %v1365_v11 = vld [vmem:[#allocation1] sm:$0xf] }
 0x546   :  { %1367 = vst [vmem:[#allocation1] ss:$9 sm:$0xff] %v7361_v50  ;;  %v1412_v53 = vunpack.c.l.b16 %v1365_v11 }
 0x548   :  { %v1462_v11 = vrot.slane %v1412_v53, 1 }
 0x54d   :  { %v1368_v17 = vld [vmem:[#allocation1] sm:$0xf] }
 0x54e   :  { %1370 = vst [vmem:[#allocation1] ss:$9 sm:$0xff] %v7365_v63  ;;  %v1413_v18 = vunpack.c.l.b16 %v1368_v17 }
 0x550   :  { %v1463_v17 = vsel %vm623_vm7, %v1413_v18, %v1462_v11 }
 0x555   :  { %v1371_v38 = vld [vmem:[#allocation1] sm:$0xf] }
 0x556   :  { %1373 = vst [vmem:[#allocation1] ss:$9 sm:$0xff] %v7369_v32  ;;  %v1414_v2 = vunpack.c.l.b16 %v1371_v38  ;;  %v1450_v38 = vrot.slane %v1406_v42, 7 }
 0x558   :  { %v1464_v25 = vrot.slane %v1414_v2, 7  ;;  %v1451_v43 = vsel %vm626_vm8, %v1450_v38, %v1449_v52  ;;  %v6310_v38 = vld [vmem:[%s8797_s2 + $0x148] sm:$0xff]  ;;  %v413_v52 = vrot.slane %v7190_v57, 4 }
 0x559   :  { %v1453_v3 = vsel %vm629_vm9, %v1452_v28, %v1451_v43  ;;  %v6309_v28 = vld [vmem:[%s8797_s2 + $0x140] sm:$0xff] }
 0x55a   :  { %v1455_v4 = vsel %vm632_vm10, %v1454_v5, %v1453_v3 }
 0x55d   :  { %v1374_v6 = vld [vmem:[#allocation1] sm:$0xf] }
 0x55e   :  { %1376 = vst [vmem:[#allocation1] ss:$9 sm:$0xff] %v7376_v0  ;;  %v1415_v22 = vunpack.c.l.b16 %v1374_v6  ;;  %v1411_v0 = vunpack.c.l.b16 %v1362_v34  ;;  %v1458_v34 = vrot.slane %v1410_v47, 3  ;;  %v6311_v47 = vld [vmem:[%s8797_s2 + $0x150] sm:$0xff] }
 0x55f   :  { %2927 = vmatpush.bf16.msrb.mxu3 %v6311_v47 }
 0x560   :  { %v1466_v6 = vrot.slane %v1415_v22, 6  ;;  %v1460_v53 = vrot.slane %v1411_v0, 2 }
 0x563   :  { %2928 = vmatpush.bf16.msrb.mxu3 %v6310_v38 }
 0x565   :  { %v1377_v62 = vld [vmem:[#allocation1] sm:$0xf] }
 0x566   :  { %1379 = vst [vmem:[#allocation1] ss:$9 sm:$0xff] %v7380_v44  ;;  %v1416_v9 = vunpack.c.l.b16 %v1377_v62 }
 0x567   :  { %2929 = vmatpush.bf16.msrb.mxu3 %v6309_v28 }
 0x568   :  { %v1468_v62 = vrot.slane %v1416_v9, 5 }
 0x56d   :  { %v1380_v33 = vld [vmem:[#allocation1] sm:$0xf] }
 0x56e   :  { %1382 = vst [vmem:[#allocation1] ss:$9 sm:$0xff] %v7384_v8  ;;  %v1417_v58 = vunpack.c.l.b16 %v1380_v33 }
 0x570   :  { %v1470_v1 = vrot.slane %v1417_v58, 4 }
 0x575   :  { %v1383_v48 = vld [vmem:[#allocation1] sm:$0xf] }
 0x576   :  { %1385 = vst [vmem:[#allocation1] ss:$9 sm:$0xff] %v7388_v31  ;;  %v1418_v13 = vunpack.c.l.b16 %v1383_v48  ;;  %v1465_v48 = vsel %vm626_vm8, %v1464_v25, %v1463_v17  ;;  %v1457_v25 = vsel %vm635_vm11, %v1456_v56, %v1455_v4 }
 0x577   :  { %v1467_v22 = vsel %vm629_vm9, %v1466_v6, %v1465_v48  ;;  %v1459_v0 = vsel %vm638_vm12, %v1458_v34, %v1457_v25  ;;  %v405_v6 = vrot.slane %v7128_v30, 4 }
 0x578   :  { %v1472_v42 = vrot.slane %v1418_v13, 3  ;;  %v1469_v9 = vsel %vm632_vm10, %v1468_v62, %v1467_v22 }
 0x579   :  { %v1471_v29 = vsel %vm635_vm11, %v1470_v1, %v1469_v9 }
 0x57a   :  { %v1473_v21 = vsel %vm638_vm12, %v1472_v42, %v1471_v29 }
 0x57d   :  { %v1386_v33 = vld [vmem:[#allocation1] sm:$0xf] }
 0x57e   :  { %v1419_v2 = vunpack.c.l.b16 %v1386_v33  ;;  %1480 = vst [vmem:[#allocation1] ss:$9 sm:$0xff] %v7144_v39  ;;  %v1461_v39 = vsel %vm641_vm13, %v1460_v53, %v1459_v0  ;;  %v7558_v33 = vpop.f32.mrf.mxu2 }
 0x57f   :  { %8929 = vst [vmem:[#allocation48_spill] sm:$0xff] %v7558_v33 }
 0x580   :  { %v1474_v24 = vrot.slane %v1419_v2, 2 }
 0x582   :  { %v1475_v18 = vsel %vm641_vm13, %v1474_v24, %v1473_v21 }
 0x583   :  { %v1477_v58 = vpack.c.b16 %v1475_v18, %v1461_v39 }
 0x585   :  { %2916 = vmatmul.bf16.gmra.mxu2 %v1477_v58  ;;  %v7537_v13 = vld [vmem:[#allocation1] sm:$0xf] }
 0x586   :  { %1483 = vst [vmem:[#allocation1] ss:$9 sm:$0xff] %v7160_v61  ;;  %v1584_v2 = vunpack.c.l.b16 %v7537_v13 }
 0x588   :  { %v7562_v48 = vpop.f32.mrf.mxu2 }
 0x589   :  { %8930 = vst [vmem:[#allocation49_spill] sm:$0xff] %v7562_v48 }
 0x58d   :  { %v1484_v11 = vld [vmem:[#allocation1] sm:$0xf] }
 0x58e   :  { %1486 = vst [vmem:[#allocation1] ss:$9 sm:$0xff] %v7172_v7 }
 0x595   :  { %v1487_v5 = vld [vmem:[#allocation1] sm:$0xf] }
 0x596   :  { %1490 = vst [vmem:[#allocation1] ss:$9 sm:$0xff] %v405_v6  ;;  %v1586_v34 = vunpack.c.l.b16 %v1487_v5 }
 0x598   :  { %v1618_v46 = vrot.slane %v1586_v34, 6 }
 0x59d   :  { %v1491_v62 = vld [vmem:[#allocation1] sm:$0xf] }
 0x59e   :  { %1493 = vst [vmem:[#allocation1] ss:$9 sm:$0xff] %v7201_v60  ;;  %v421_v60 = vrot.slane %v7222_v15, 4  ;;  %v1587_v42 = vunpack.c.l.b16 %v1491_v62 }
 0x5a0   :  { %v1620_v0 = vrot.slane %v1587_v42, 5  ;;  %v437_v42 = vrot.slane %v7279_v51, 4 }
 0x5a5   :  { %v1494_v61 = vld [vmem:[#allocation1] sm:$0xf] }
 0x5a6   :  { %1496 = vst [vmem:[#allocation1] ss:$9 sm:$0xff] %v7207_v10 }
 0x5ad   :  { %v1497_v16 = vld [vmem:[#allocation1] sm:$0xf] }
 0x5ae   :  { %1499 = vst [vmem:[#allocation1] ss:$9 sm:$0xff] %v7213_v55  ;;  %v1589_v53 = vunpack.c.l.b16 %v1497_v16 }
 0x5b0   :  { %v1624_v47 = vrot.slane %v1589_v53, 3 }
 0x5b5   :  { %v1500_v56 = vld [vmem:[#allocation1] sm:$0xf] }
 0x5b6   :  { %1503 = vst [vmem:[#allocation1] ss:$9 sm:$0xff] %v413_v52  ;;  %v1590_v9 = vunpack.c.l.b16 %v1500_v56 }
 0x5b8   :  { %v1626_v6 = vrot.slane %v1590_v9, 2 }
 0x5bd   :  { %v1504_v17 = vld [vmem:[#allocation1] sm:$0xf] }
 0x5be   :  { %1506 = vst [vmem:[#allocation1] ss:$9 sm:$0xff] %v7230_v37  ;;  %v429_v37 = vrot.slane %v7247_v35, 4  ;;  %v1591_v29 = vunpack.c.l.b16 %v1504_v17 }
 0x5c0   :  { %v1628_v52 = vrot.slane %v1591_v29, 1 }
 0x5c5   :  { %v1507_v7 = vld [vmem:[#allocation1] sm:$0xf] }
 0x5c6   :  { %1509 = vst [vmem:[#allocation1] ss:$9 sm:$0xff] %v7236_v27  ;;  %v1585_v27 = vunpack.c.l.b16 %v1484_v11  ;;  %v1592_v24 = vunpack.c.l.b16 %v1507_v7 }
 0x5c8   :  { %v1616_v4 = vrot.slane %v1585_v27, 7 }
 0x5ca   :  { %v1617_v58 = vsel %vm623_vm7, %v1616_v4, %v1584_v2 }
 0x5cb   :  { %v1619_v11 = vsel %vm626_vm8, %v1618_v46, %v1617_v58 }
 0x5cc   :  { %v1621_v16 = vsel %vm629_vm9, %v1620_v0, %v1619_v11 }
 0x5cd   :  { %v1510_v30 = vld [vmem:[#allocation1] sm:$0xf] }
 0x5ce   :  { %1512 = vst [vmem:[#allocation1] ss:$9 sm:$0xff] %v7240_v54  ;;  %v1593_v43 = vunpack.c.l.b16 %v1510_v30  ;;  %v7574_v30 = vpop.f32.mrf.mxu2 }
 0x5cf   :  { %8931 = vst [vmem:[#allocation50_spill] sm:$0xff] %v7574_v30 }
 0x5d5   :  { %v1513_v1 = vld [vmem:[#allocation1] sm:$0xf] }
 0x5d6   :  { %1516 = vst [vmem:[#allocation1] ss:$9 sm:$0xff] %v421_v60  ;;  %v1594_v15 = vunpack.c.l.b16 %v1513_v1 }
 0x5d8   :  { %v1632_v25 = vrot.slane %v1594_v15, 6 }
 0x5dd   :  { %v1517_v10 = vld [vmem:[#allocation1] sm:$0xf] }
 0x5de   :  { %1519 = vst [vmem:[#allocation1] ss:$9 sm:$0xff] %v7253_v14  ;;  %v1595_v14 = vunpack.c.l.b16 %v1517_v10 }
 0x5e0   :  { %v1634_v21 = vrot.slane %v1595_v14, 5 }
 0x5e5   :  { %v1520_v55 = vld [vmem:[#allocation1] sm:$0xf] }
 0x5e6   :  { %1522 = vst [vmem:[#allocation1] ss:$9 sm:$0xff] %v7257_v36  ;;  %v1588_v36 = vunpack.c.l.b16 %v1494_v61  ;;  %v1596_v3 = vunpack.c.l.b16 %v1520_v55 }
 0x5e8   :  { %v1622_v39 = vrot.slane %v1588_v36, 4  ;;  %v1636_v18 = vrot.slane %v1596_v3, 4 }
 0x5ea   :  { %v1623_v17 = vsel %vm632_vm10, %v1622_v39, %v1621_v16  ;;  %v6321_v16 = vld [vmem:[%s8797_s2 + $0x1a0] sm:$0xff] }
 0x5eb   :  { %v1625_v60 = vsel %vm635_vm11, %v1624_v47, %v1623_v17 }
 0x5ec   :  { %v1627_v55 = vsel %vm638_vm12, %v1626_v6, %v1625_v60 }
 0x5ed   :  { %v1523_v57 = vld [vmem:[#allocation1] sm:$0xf] }
 0x5ee   :  { %1525 = vst [vmem:[#allocation1] ss:$9 sm:$0xff] %v7261_v19  ;;  %v1597_v22 = vunpack.c.l.b16 %v1523_v57  ;;  %v1630_v19 = vrot.slane %v1593_v43, 7 }
 0x5f0   :  { %v1631_v13 = vsel %vm623_vm7, %v1630_v19, %v1592_v24  ;;  %v1638_v38 = vrot.slane %v1597_v22, 3  ;;  %v6322_v24 = vld [vmem:[%s8797_s2 + $0x1a8] sm:$0xff] }
 0x5f1   :  { %v1633_v5 = vsel %vm626_vm8, %v1632_v25, %v1631_v13 }
 0x5f2   :  { %v1635_v56 = vsel %vm629_vm9, %v1634_v21, %v1633_v5 }
 0x5f3   :  { %v1637_v7 = vsel %vm632_vm10, %v1636_v18, %v1635_v56 }
 0x5f4   :  { %v1639_v1 = vsel %vm635_vm11, %v1638_v38, %v1637_v7 }
 0x5f5   :  { %v1526_v54 = vld [vmem:[#allocation1] sm:$0xf] }
 0x5f6   :  { %1529 = vst [vmem:[#allocation1] ss:$9 sm:$0xff] %v429_v37  ;;  %v1598_v35 = vunpack.c.l.b16 %v1526_v54  ;;  %v1629_v37 = vsel %vm641_vm13, %v1628_v52, %v1627_v55 }
 0x5f8   :  { %v1640_v62 = vrot.slane %v1598_v35, 2 }
 0x5fa   :  { %v1641_v57 = vsel %vm638_vm12, %v1640_v62, %v1639_v1 }
 0x5fd   :  { %v1530_v28 = vld [vmem:[#allocation1] sm:$0xf] }
 0x5fe   :  { %v1599_v61 = vunpack.c.l.b16 %v1530_v28  ;;  %1532 = vst [vmem:[#allocation1] ss:$9 sm:$0xff] %v7301_v12 }
 0x600   :  { %v1642_v10 = vrot.slane %v1599_v61, 1 }
 0x602   :  { %v1643_v27 = vsel %vm641_vm13, %v1642_v10, %v1641_v57 }
 0x603   :  { %v1672_v12 = vpack.c.b16 %v1643_v27, %v1629_v37 }
 0x605   :  { %2930 = vmatmul.bf16.vlgmr.msrb.gmra.mxu3 %v1672_v12  ;;  %v7582_v43 = vld [vmem:[#allocation1] sm:$0xf] }
 0x606   :  { %1535 = vst [vmem:[#allocation1] ss:$9 sm:$0xff] %v7310_v45  ;;  %v445_v45 = vrot.slane %v7325_v49, 4 }
 0x608   :  { %v2917_v54 = vpop.f32.mrf.mxu2 }
 0x609   :  { %v7586_v34 = vadd.f32 %v2917_v54, %v7487_v23  ;;  %v8933_v54 = vld [vmem:[#allocation13_spill] sm:$0xff] }
 0x60d   :  { %v1536_v15 = vld [vmem:[#allocation1] sm:$0xf] }
 0x60e   :  { %1538 = vst [vmem:[#allocation1] ss:$9 sm:$0xff] %v7316_v20  ;;  %v1601_v4 = vunpack.c.l.b16 %v1536_v15 }
 0x610   :  { %v1644_v39 = vrot.slane %v1601_v4, 7 }
 0x615   :  { %v1539_v14 = vld [vmem:[#allocation1] sm:$0xf] }
 0x616   :  { %1542 = vst [vmem:[#allocation1] ss:$9 sm:$0xff] %v437_v42  ;;  %v1602_v9 = vunpack.c.l.b16 %v1539_v14  ;;  %v6320_v14 = vld [vmem:[%s8797_s2 + $0x198] sm:$0xff] }
 0x618   :  { %v1646_v13 = vrot.slane %v1602_v9, 6  ;;  %v8938_v9 = vld [vmem:[#allocation19_spill] sm:$0xff] }
 0x61d   :  { %v1543_v2 = vld [vmem:[#allocation1] sm:$0xf] }
 0x61e   :  { %1545 = vst [vmem:[#allocation1] ss:$9 sm:$0xff] %v7333_v59  ;;  %v453_v59 = vrot.slane %v7354_v26, 4  ;;  %v6323_v26 = vld [vmem:[%s8797_s2 + $0x1b0] sm:$0xff] }
 0x625   :  { %v1546_v36 = vld [vmem:[#allocation1] sm:$0xf] }
 0x626   :  { %1548 = vst [vmem:[#allocation1] ss:$9 sm:$0xff] %v7339_v41  ;;  %v1604_v25 = vunpack.c.l.b16 %v1546_v36 }
 0x628   :  { %v1650_v62 = vrot.slane %v1604_v25, 4 }
 0x62d   :  { %v1549_v3 = vld [vmem:[#allocation1] sm:$0xf] }
 0x62e   :  { %1551 = vst [vmem:[#allocation1] ss:$9 sm:$0xff] %v7345_v40  ;;  %v1605_v0 = vunpack.c.l.b16 %v1549_v3 }
 0x630   :  { %v1652_v56 = vrot.slane %v1605_v0, 3  ;;  %v8943_v0 = vld [vmem:[#allocation25_spill] sm:$0xff] }
 0x635   :  { %v1552_v23 = vld [vmem:[#allocation1] sm:$0xf] }
 0x636   :  { %1555 = vst [vmem:[#allocation1] ss:$9 sm:$0xff] %v445_v45  ;;  %v1606_v58 = vunpack.c.l.b16 %v1552_v23 }
 0x638   :  { %v1654_v10 = vrot.slane %v1606_v58, 2  ;;  %v8944_v58 = vld [vmem:[#allocation24_spill] sm:$0xff] }
 0x63d   :  { %v1556_v53 = vld [vmem:[#allocation1] sm:$0xf] }
 0x63e   :  { %1558 = vst [vmem:[#allocation1] ss:$9 sm:$0xff] %v7361_v50  ;;  %v6324_v50 = vld [vmem:[%s8797_s2 + $0x1b8] sm:$0xff]  ;;  %v1607_v28 = vunpack.c.l.b16 %v1556_v53 }
 0x63f   :  { %2941 = vmatpush.bf16.msra.mxu1 %v6324_v50 }
 0x640   :  { %v1656_v12 = vrot.slane %v1607_v28, 1  ;;  %v8945_v28 = vld [vmem:[#allocation26_spill] sm:$0xff] }
 0x643   :  { %2942 = vmatpush.bf16.msra.mxu1 %v6323_v26  ;;  %v8935_v26 = vld [vmem:[#allocation15_spill] sm:$0xff] }
 0x645   :  { %v1559_v20 = vld [vmem:[#allocation1] sm:$0xf] }
 0x646   :  { %1561 = vst [vmem:[#allocation1] ss:$9 sm:$0xff] %v7365_v63  ;;  %v8932_v63 = vld [vmem:[#allocation23_spill] sm:$0xff]  ;;  %v1608_v11 = vunpack.c.l.b16 %v1559_v20 }
 0x647   :  { %2943 = vmatpush.bf16.msra.mxu1 %v6322_v24  ;;  %v8942_v24 = vld [vmem:[#allocation11_spill] sm:$0xff] }
 0x64b   :  { %2944 = vmatpush.bf16.msra.mxu1 %v6321_v16 }
 0x64d   :  { %v1562_v51 = vld [vmem:[#allocation1] sm:$0xf] }
 0x64e   :  { %1564 = vst [vmem:[#allocation1] ss:$9 sm:$0xff] %v7369_v32  ;;  %v461_v32 = vrot.slane %v8932_v63, 4  ;;  %v1609_v19 = vunpack.c.l.b16 %v1562_v51 }
 0x64f   :  { %2945 = vmatpush.bf16.msra.mxu1 %v6320_v14 }
 0x650   :  { %v1658_v18 = vrot.slane %v1609_v19, 7  ;;  %v8937_v19 = vld [vmem:[#allocation18_spill] sm:$0xff] }
 0x652   :  { %v1659_v17 = vsel %vm623_vm7, %v1658_v18, %v1608_v11 }
 0x655   :  { %v1565_v22 = vld [vmem:[#allocation1] sm:$0xf] }
 0x656   :  { %1568 = vst [vmem:[#allocation1] ss:$9 sm:$0xff] %v453_v59  ;;  %v1610_v35 = vunpack.c.l.b16 %v1565_v22  ;;  %v6319_v59 = vld [vmem:[%s8797_s2 + $0x190] sm:$0xff] }
 0x657   :  { %2946 = vmatpush.bf16.msra.mxu1 %v6319_v59 }
 0x658   :  { %v1660_v38 = vrot.slane %v1610_v35, 6 }
 0x65a   :  { %v1661_v55 = vsel %vm626_vm8, %v1660_v38, %v1659_v17 }
 0x65d   :  { %v1569_v41 = vld [vmem:[#allocation1] sm:$0xf] }
 0x65e   :  { %1571 = vst [vmem:[#allocation1] ss:$9 sm:$0xff] %v7380_v44  ;;  %v1611_v46 = vunpack.c.l.b16 %v1569_v41  ;;  %v8934_v41 = vld [vmem:[#allocation14_spill] sm:$0xff] }
 0x660   :  { %v1662_v5 = vrot.slane %v1611_v46, 5 }
 0x665   :  { %v1572_v40 = vld [vmem:[#allocation1] sm:$0xf] }
 0x666   :  { %1574 = vst [vmem:[#allocation1] ss:$9 sm:$0xff] %v7384_v8  ;;  %v1603_v8 = vunpack.c.l.b16 %v1543_v2  ;;  %v1612_v29 = vunpack.c.l.b16 %v1572_v40  ;;  %v6318_v40 = vld [vmem:[%s8797_s2 + $0x188] sm:$0xff] }
 0x667   :  { %2947 = vmatpush.bf16.msra.mxu1 %v6318_v40 }
 0x668   :  { %v1648_v6 = vrot.slane %v1603_v8, 5  ;;  %v1664_v61 = vrot.slane %v1612_v29, 4  ;;  %v8939_v8 = vld [vmem:[#allocation20_spill] sm:$0xff]  ;;  %v8941_v29 = vld [vmem:[#allocation22_spill] sm:$0xff] }
 0x66d   :  { %v1575_v49 = vld [vmem:[#allocation1] sm:$0xf] }
 0x66e   :  { %1577 = vst [vmem:[#allocation1] ss:$9 sm:$0xff] %v7388_v31  ;;  %v1600_v31 = vunpack.c.l.b16 %v7582_v43  ;;  %v1613_v21 = vunpack.c.l.b16 %v1575_v49  ;;  %v1663_v43 = vsel %vm629_vm9, %v1662_v5, %v1661_v55  ;;  %v6317_v49 = vld [vmem:[%s8797_s2 + $0x180] sm:$0xff] }
 0x66f   :  { %v1665_v42 = vsel %vm632_vm10, %v1664_v61, %v1663_v43  ;;  %2948 = vmatpush.bf16.msra.mxu1 %v6317_v49  ;;  %v8946_v61 = vld [vmem:[#allocation27_spill] sm:$0xff] }
 0x670   :  { %v1645_v52 = vsel %vm623_vm7, %v1644_v39, %v1600_v31  ;;  %v1666_v7 = vrot.slane %v1613_v21, 3  ;;  %v8940_v31 = vld [vmem:[#allocation21_spill] sm:$0xff]  ;;  %v151_v21 = vadd.f32 %v8943_v0, %v8942_v24 }
 0x671   :  { %v1647_v1 = vsel %vm626_vm8, %v1646_v13, %v1645_v52 }
 0x672   :  { %v1649_v27 = vsel %vm629_vm9, %v1648_v6, %v1647_v1  ;;  %v1667_v36 = vsel %vm635_vm11, %v1666_v7, %v1665_v42  ;;  %v180_v18 = vmax.f32 %v151_v21, 0.0 }
 0x673   :  { %v1651_v15 = vsel %vm632_vm10, %v1650_v62, %v1649_v27 }
 0x674   :  { %v1653_v2 = vsel %vm635_vm11, %v1652_v56, %v1651_v15  ;;  %v6331_v56 = vld [vmem:[%s8797_s2 + $0x1f0] sm:$0xff] }
 0x675   :  { %v1578_v44 = vld [vmem:[#allocation1] sm:$0xf]  ;;  %v1655_v45 = vsel %vm638_vm12, %v1654_v10, %v1653_v2 }
 0x676   :  { %1581 = vst [vmem:[#allocation1] ss:$9 sm:$0xff] %v461_v32  ;;  %v1614_v47 = vunpack.c.l.b16 %v1578_v44  ;;  %v1657_v53 = vsel %vm641_vm13, %v1656_v12, %v1655_v45  ;;  %v8936_v32 = vld [vmem:[#allocation16_spill] sm:$0xff] }
 0x678   :  { %v1668_v57 = vrot.slane %v1614_v47, 2  ;;  %v196_v47 = vpack.c.bf16 %v180_v18, %v180_v18 }
 0x67a   :  { %v1669_v23 = vsel %vm638_vm12, %v1668_v57, %v1667_v36  ;;  %v262_v38 = vshrl.u32 %v196_v47, 16  ;;  %v265_v6 = vshll.u32 %v196_v47, 16  ;;  %v7673_v57 = vpop.f32.mrf.mxu3 }
 0x67b   :  { %8951 = vst [vmem:[#allocation14_spill] sm:$0xff] %v7673_v57 }
 0x67c   :  { %v264_v11 = vrot.slane %v262_v38, 7 }
 0x67d   :  { %v1582_v60 = vld [vmem:[#allocation1] sm:$0xf] }
 0x67e   :  { %v1615_v37 = vunpack.c.l.b16 %v1582_v60  ;;  %1676 = vst [vmem:[#allocation1] ss:$9 sm:$0xff] %v8933_v54  ;;  %v267_v62 = vor.u32 %v265_v6, %v264_v11 }
 0x680   :  { %v1670_v3 = vrot.slane %v1615_v37, 1  ;;  %v352_v52 = vsel %vm6620_vm3, 0, %v267_v62 }
 0x681   :  { %v7663_v17 = vsel %vm6624_vm6, %v352_v52, 0 }
 0x682   :  { %v1671_v20 = vsel %vm641_vm13, %v1670_v3, %v1669_v23  ;;  %8949 = vst [vmem:[#allocation23_spill] sm:$0xff] %v7663_v17  ;;  %v7667_v60 = vrot.slane %v7663_v17, 1  ;;  %v7671_v10 = vrot.slane %v7663_v17, 2  ;;  %v7677_v37 = vrot.slane %v7663_v17, 3 }
 0x683   :  { %v1673_v51 = vpack.c.b16 %v1671_v20, %v1657_v53 }
 0x684   :  { %8950 = vst [vmem:[#allocation13_spill] sm:$0xff] %v7671_v10 }
 0x685   :  { %2935 = vmatmul.bf16.gmra.mxu3 %v1673_v51  ;;  %v7636_v22 = vld [vmem:[#allocation1] sm:$0xf]  ;;  %8952 = vst [vmem:[#allocation15_spill] sm:$0xff] %v7677_v37 }
 0x686   :  { %1679 = vst [vmem:[#allocation1] ss:$9 sm:$0xff] %v8934_v41  ;;  %v1780_v3 = vunpack.c.l.b16 %v7636_v22 }
 0x688   :  { %v7679_v14 = vpop.f32.mrf.mxu3 }
 0x689   :  { %8953 = vst [vmem:[#allocation16_spill] sm:$0xff] %v7679_v14 }
 0x68d   :  { %v1680_v50 = vld [vmem:[#allocation1] sm:$0xf] }
 0x68e   :  { %1682 = vst [vmem:[#allocation1] ss:$9 sm:$0xff] %v8935_v26  ;;  %v1781_v27 = vunpack.c.l.b16 %v1680_v50 }
 0x690   :  { %v1812_v51 = vrot.slane %v1781_v27, 7 }
 0x692   :  { %v1813_v38 = vsel %vm623_vm7, %v1812_v51, %v1780_v3 }
 0x695   :  { %v1683_v63 = vld [vmem:[#allocation1] sm:$0xf] }
 0x696   :  { %1685 = vst [vmem:[#allocation1] ss:$9 sm:$0xff] %v8936_v32  ;;  %v1782_v15 = vunpack.c.l.b16 %v1683_v63 }
 0x698   :  { %v1814_v50 = vrot.slane %v1782_v15, 6 }
 0x69a   :  { %v1815_v6 = vsel %vm626_vm8, %v1814_v50, %v1813_v38  ;;  %v8963_v38 = vld [vmem:[#allocation38_spill] sm:$0xff] }
 0x69d   :  { %v1686_v4 = vld [vmem:[#allocation1] sm:$0xf] }
 0x69e   :  { %1688 = vst [vmem:[#allocation1] ss:$9 sm:$0xff] %v8937_v19  ;;  %v1783_v2 = vunpack.c.l.b16 %v1686_v4 }
 0x6a0   :  { %v1816_v18 = vrot.slane %v1783_v2, 5 }
 0x6a5   :  { %v1689_v44 = vld [vmem:[#allocation1] sm:$0xf] }
 0x6a6   :  { %1691 = vst [vmem:[#allocation1] ss:$9 sm:$0xff] %v8938_v9  ;;  %v1784_v45 = vunpack.c.l.b16 %v1689_v44 }
 0x6ad   :  { %v1692_v35 = vld [vmem:[#allocation1] sm:$0xf] }
 0x6ae   :  { %1694 = vst [vmem:[#allocation1] ss:$9 sm:$0xff] %v8939_v8  ;;  %v1785_v53 = vunpack.c.l.b16 %v1692_v35 }
 0x6b0   :  { %v1820_v22 = vrot.slane %v1785_v53, 3 }
 0x6b5   :  { %v1695_v46 = vld [vmem:[#allocation1] sm:$0xf] }
 0x6b6   :  { %1697 = vst [vmem:[#allocation1] ss:$9 sm:$0xff] %v8940_v31  ;;  %v1786_v40 = vunpack.c.l.b16 %v1695_v46 }
 0x6b8   :  { %v1822_v46 = vrot.slane %v1786_v40, 2 }
 0x6bd   :  { %v7651_v25 = vld [vmem:[#allocation1] sm:$0xf] }
 0x6be   :  { %1700 = vst [vmem:[#allocation1] ss:$9 sm:$0xff] %v8941_v29  ;;  %v1787_v63 = vunpack.c.l.b16 %v7651_v25  ;;  %v1817_v25 = vsel %vm629_vm9, %v1816_v18, %v1815_v6 }
 0x6c5   :  { %v1701_v39 = vld [vmem:[#allocation1] sm:$0xf] }
 0x6c6   :  { %1703 = vst [vmem:[#allocation1] ss:$9 sm:$0xff] %v8944_v58  ;;  %v1788_v21 = vunpack.c.l.b16 %v1701_v39  ;;  %v1824_v39 = vrot.slane %v1787_v63, 1 }
 0x6cd   :  { %v1704_v13 = vld [vmem:[#allocation1] sm:$0xf] }
 0x6ce   :  { %1706 = vst [vmem:[#allocation1] ss:$9 sm:$0xff] %v8945_v28  ;;  %v1789_v12 = vunpack.c.l.b16 %v1704_v13  ;;  %v1818_v13 = vrot.slane %v1784_v45, 4 }
 0x6d0   :  { %v1826_v59 = vrot.slane %v1789_v12, 7  ;;  %v7693_v12 = vpop.f32.mrf.mxu3 }
 0x6d1   :  { %8955 = vst [vmem:[#allocation18_spill] sm:$0xff] %v7693_v12 }
 0x6d2   :  { %v1827_v44 = vsel %vm623_vm7, %v1826_v59, %v1788_v21  ;;  %v8960_v21 = vld [vmem:[#allocation35_spill] sm:$0xff] }
 0x6d5   :  { %v1707_v5 = vld [vmem:[#allocation1] sm:$0xf] }
 0x6d6   :  { %1709 = vst [vmem:[#allocation1] ss:$9 sm:$0xff] %v8946_v61  ;;  %v1790_v42 = vunpack.c.l.b16 %v1707_v5 }
 0x6d8   :  { %v1828_v0 = vrot.slane %v1790_v42, 6 }
 0x6da   :  { %v1829_v5 = vsel %vm626_vm8, %v1828_v0, %v1827_v44  ;;  %v8959_v0 = vld [vmem:[#allocation33_spill] sm:$0xff]  ;;  %v8964_v44 = vld [vmem:[#allocation39_spill] sm:$0xff] }
 0x6dd   :  { %v1710_v7 = vld [vmem:[#allocation1] sm:$0xf] }
 0x6de   :  { %1713 = vst [vmem:[#allocation1] ss:$9 sm:$0xff] %v7663_v17  ;;  %v1791_v36 = vunpack.c.l.b16 %v1710_v7 }
 0x6e0   :  { %v1830_v47 = vrot.slane %v1791_v36, 5 }
 0x6e2   :  { %v1831_v7 = vsel %vm629_vm9, %v1830_v47, %v1829_v5  ;;  %v8961_v47 = vld [vmem:[#allocation36_spill] sm:$0xff] }
 0x6e3   :  { %v8965_v5 = vld [vmem:[#allocation40_spill] sm:$0xff] }
 0x6e5   :  { %v1714_v1 = vld [vmem:[#allocation1] sm:$0xf] }
 0x6e6   :  { %1717 = vst [vmem:[#allocation1] ss:$9 sm:$0xff] %v7667_v60  ;;  %v1792_v23 = vunpack.c.l.b16 %v1714_v1  ;;  %v8954_v1 = vld [vmem:[#allocation30_spill] sm:$0xff] }
 0x6e8   :  { %v1832_v4 = vrot.slane %v1792_v23, 4 }
 0x6ea   :  { %v1833_v27 = vsel %vm632_vm10, %v1832_v4, %v1831_v7  ;;  %v8962_v4 = vld [vmem:[#allocation37_spill] sm:$0xff] }
 0x6ed   :  { %v1718_v55 = vld [vmem:[#allocation1] sm:$0xf] }
 0x6ee   :  { %1721 = vst [vmem:[#allocation1] ss:$9 sm:$0xff] %v7671_v10  ;;  %v1793_v20 = vunpack.c.l.b16 %v1718_v55  ;;  %v1819_v55 = vsel %vm632_vm10, %v1818_v13, %v1817_v25 }
 0x6f0   :  { %v1834_v35 = vrot.slane %v1793_v20, 3  ;;  %v8956_v20 = vld [vmem:[#allocation31_spill] sm:$0xff] }
 0x6f2   :  { %v1835_v15 = vsel %vm635_vm11, %v1834_v35, %v1833_v27  ;;  %v170_v35 = vpop.f32.mrf.mxu0 }
 0x6f5   :  { %v1722_v43 = vld [vmem:[#allocation1] sm:$0xf] }
 0x6f6   :  { %1725 = vst [vmem:[#allocation1] ss:$9 sm:$0xff] %v7677_v37  ;;  %v1794_v49 = vunpack.c.l.b16 %v1722_v43  ;;  %v1821_v43 = vsel %vm635_vm11, %v1820_v22, %v1819_v55 }
 0x6f7   :  { %v1823_v2 = vsel %vm638_vm12, %v1822_v46, %v1821_v43 }
 0x6f8   :  { %v1836_v62 = vrot.slane %v1794_v49, 2  ;;  %v1825_v3 = vsel %vm641_vm13, %v1824_v39, %v1823_v2  ;;  %v8958_v49 = vld [vmem:[#allocation32_spill] sm:$0xff]  ;;  %v8966_v39 = vld [vmem:[#allocation41_spill] sm:$0xff] }
 0x6fa   :  { %v1837_v36 = vsel %vm638_vm12, %v1836_v62, %v1835_v15  ;;  %v8967_v15 = vld [vmem:[#allocation42_spill] sm:$0xff] }
 0x6fd   :  { %v1726_v11 = vld [vmem:[#allocation1] sm:$0xf] }
 0x6fe   :  { %v1795_v52 = vunpack.c.l.b16 %v1726_v11  ;;  %1728 = vst [vmem:[#allocation1] ss:$9 sm:$0xff] %v8954_v1  ;;  %v171_v11 = vadd.f32 %v170_v35, %v8942_v24  ;;  %v6330_v35 = vld [vmem:[%s8797_s2 + $0x1e8] sm:$0xff] }
 0x700   :  { %v1838_v42 = vrot.slane %v1795_v52, 1  ;;  %v188_v46 = vmax.f32 %v171_v11, 0.0 }
 0x702   :  { %v1839_v45 = vsel %vm641_vm13, %v1838_v42, %v1837_v36  ;;  %v204_v62 = vpack.c.bf16 %v188_v46, %v188_v46 }
 0x703   :  { %v1868_v23 = vpack.c.b16 %v1839_v45, %v1825_v3  ;;  %v6332_v45 = vld [vmem:[%s8797_s2 + $0x1f8] sm:$0xff] }
 0x704   :  { %v318_v25 = vshrl.u32 %v204_v62, 16  ;;  %v321_v55 = vshll.u32 %v204_v62, 16  ;;  %2960 = vmatpush.bf16.msra.mxu2 %v6332_v45 }
 0x705   :  { %2949 = vmatmul.bf16.vlgmr.msra.gmra.mxu1 %v1868_v23  ;;  %v7701_v53 = vld [vmem:[#allocation1] sm:$0xf] }
 0x706   :  { %1731 = vst [vmem:[#allocation1] ss:$9 sm:$0xff] %v8956_v20  ;;  %v320_v7 = vrot.slane %v318_v25, 7 }
 0x708   :  { %v2936_v51 = vpop.f32.mrf.mxu3  ;;  %v323_v43 = vor.u32 %v321_v55, %v320_v7  ;;  %2961 = vmatpush.bf16.msra.mxu2 %v6331_v56  ;;  %v1796_v56 = vunpack.c.l.b16 %v7701_v53 }
 0x709   :  { %v7705_v59 = vadd.f32 %v2936_v51, %v7586_v34 }
 0x70a   :  { %v360_v42 = vsel %vm6620_vm3, 0, %v323_v43  ;;  %v6329_v43 = vld [vmem:[%s8797_s2 + $0x1e0] sm:$0xff] }
 0x70b   :  { %8957 = vst [vmem:[#allocation19_spill] sm:$0xff] %v7705_v59  ;;  %v7732_v24 = vsel %vm6624_vm6, %v360_v42, 0  ;;  %vm8473_vm6 = vmand %vm3014_vm2, %vm4353_vm5 }
 0x70c   :  { %v7736_v36 = vrot.slane %v7732_v24, 1  ;;  %v7743_v23 = vrot.slane %v7732_v24, 2  ;;  %v7753_v11 = vrot.slane %v7732_v24, 3  ;;  %2962 = vmatpush.bf16.msra.mxu2 %v6330_v35 }
 0x70d   :  { %v1732_v40 = vld [vmem:[#allocation1] sm:$0xf] }
 0x70e   :  { %1734 = vst [vmem:[#allocation1] ss:$9 sm:$0xff] %v8958_v49  ;;  %v1797_v46 = vunpack.c.l.b16 %v1732_v40 }
 0x710   :  { %2963 = vmatpush.bf16.msra.mxu2 %v6329_v43 }
 0x715   :  { %v1735_v50 = vld [vmem:[#allocation1] sm:$0xf] }
 0x716   :  { %1737 = vst [vmem:[#allocation1] ss:$9 sm:$0xff] %v8959_v0  ;;  %v1798_v7 = vunpack.c.l.b16 %v1735_v50  ;;  %v1840_v50 = vrot.slane %v1797_v46, 7 }
 0x718   :  { %v1842_v16 = vrot.slane %v1798_v7, 6 }
 0x71d   :  { %v7709_v63 = vld [vmem:[#allocation1] sm:$0xf] }
 0x71e   :  { %1740 = vst [vmem:[#allocation1] ss:$9 sm:$0xff] %v8960_v21  ;;  %v1799_v42 = vunpack.c.l.b16 %v7709_v63  ;;  %v6328_v63 = vld [vmem:[%s8797_s2 + $0x1d8] sm:$0xff] }
 0x71f   :  { %2964 = vmatpush.bf16.msra.mxu2 %v6328_v63 }
 0x725   :  { %v7712_v18 = vld [vmem:[#allocation1] sm:$0xf] }
 0x726   :  { %1743 = vst [vmem:[#allocation1] ss:$9 sm:$0xff] %v8961_v47  ;;  %v1800_v59 = vunpack.c.l.b16 %v7712_v18  ;;  %v1844_v18 = vrot.slane %v1799_v42, 5 }
 0x728   :  { %v1846_v30 = vrot.slane %v1800_v59, 4 }
 0x72d   :  { %v7715_v13 = vld [vmem:[#allocation1] sm:$0xf] }
 0x72e   :  { %1746 = vst [vmem:[#allocation1] ss:$9 sm:$0xff] %v8962_v4  ;;  %v1801_v40 = vunpack.c.l.b16 %v7715_v13 }
 0x730   :  { %v1848_v46 = vrot.slane %v1801_v40, 3 }
 0x735   :  { %v7718_v34 = vld [vmem:[#allocation1] sm:$0xf] }
 0x736   :  { %1749 = vst [vmem:[#allocation1] ss:$9 sm:$0xff] %v8963_v38  ;;  %v1802_v35 = vunpack.c.l.b16 %v7718_v34 }
 0x73d   :  { %v7721_v22 = vld [vmem:[#allocation1] sm:$0xf] }
 0x73e   :  { %1752 = vst [vmem:[#allocation1] ss:$9 sm:$0xff] %v8964_v44  ;;  %v1803_v53 = vunpack.c.l.b16 %v7721_v22  ;;  %v6327_v22 = vld [vmem:[%s8797_s2 + $0x1d0] sm:$0xff] }
 0x73f   :  { %2965 = vmatpush.bf16.msra.mxu2 %v6327_v22 }
 0x745   :  { %v1753_v6 = vld [vmem:[#allocation1] sm:$0xf] }
 0x746   :  { %1755 = vst [vmem:[#allocation1] ss:$9 sm:$0xff] %v8965_v5 }
 0x74d   :  { %v1756_v52 = vld [vmem:[#allocation1] sm:$0xf] }
 0x74e   :  { %1758 = vst [vmem:[#allocation1] ss:$9 sm:$0xff] %v8966_v39  ;;  %v1805_v62 = vunpack.c.l.b16 %v1756_v52 }
 0x755   :  { %v1759_v27 = vld [vmem:[#allocation1] sm:$0xf] }
 0x756   :  { %1761 = vst [vmem:[#allocation1] ss:$9 sm:$0xff] %v8967_v15  ;;  %v1806_v55 = vunpack.c.l.b16 %v1759_v27  ;;  %v1854_v27 = vrot.slane %v1805_v62, 7 }
 0x758   :  { %v1856_v12 = vrot.slane %v1806_v55, 6  ;;  %v1850_v55 = vrot.slane %v1802_v35, 2 }
 0x75d   :  { %v1762_v2 = vld [vmem:[#allocation1] sm:$0xf] }
 0x75e   :  { %1765 = vst [vmem:[#allocation1] ss:$9 sm:$0xff] %v7732_v24  ;;  %v1807_v45 = vunpack.c.l.b16 %v1762_v2  ;;  %v1804_v2 = vunpack.c.l.b16 %v1753_v6  ;;  %v1852_v6 = vrot.slane %v1803_v53, 1 }
 0x760   :  { %v1855_v34 = vsel %vm623_vm7, %v1854_v27, %v1804_v2 }
 0x761   :  { %v1857_v43 = vsel %vm626_vm8, %v1856_v12, %v1855_v34 }
 0x765   :  { %v1766_v3 = vld [vmem:[#allocation1] sm:$0xf] }
 0x766   :  { %1769 = vst [vmem:[#allocation1] ss:$9 sm:$0xff] %v7736_v36  ;;  %v1808_v57 = vunpack.c.l.b16 %v1766_v3  ;;  %v1858_v3 = vrot.slane %v1807_v45, 5 }
 0x768   :  { %v1860_v13 = vrot.slane %v1808_v57, 4  ;;  %v1859_v42 = vsel %vm629_vm9, %v1858_v3, %v1857_v43 }
 0x76d   :  { %v1770_v51 = vld [vmem:[#allocation1] sm:$0xf] }
 0x76e   :  { %1773 = vst [vmem:[#allocation1] ss:$9 sm:$0xff] %v7743_v23  ;;  %v1809_v52 = vunpack.c.l.b16 %v1770_v51  ;;  %v1841_v51 = vsel %vm623_vm7, %v1840_v50, %v1796_v56  ;;  %v6326_v50 = vld [vmem:[%s8797_s2 + $0x1c8] sm:$0xff] }
 0x76f   :  { %v1843_v7 = vsel %vm626_vm8, %v1842_v16, %v1841_v51  ;;  %v1861_v16 = vsel %vm632_vm10, %v1860_v13, %v1859_v42  ;;  %2966 = vmatpush.bf16.msra.mxu2 %v6326_v50 }
 0x770   :  { %v1862_v62 = vrot.slane %v1809_v52, 3  ;;  %v1845_v57 = vsel %vm629_vm9, %v1844_v18, %v1843_v7  ;;  %v6325_v7 = vld [vmem:[%s8797_s2 + $0x1c0] sm:$0xff] }
 0x771   :  { %v1847_v45 = vsel %vm632_vm10, %v1846_v30, %v1845_v57 }
 0x772   :  { %v1849_v12 = vsel %vm635_vm11, %v1848_v46, %v1847_v45 }
 0x773   :  { %v1851_v40 = vsel %vm638_vm12, %v1850_v55, %v1849_v12  ;;  %2967 = vmatpush.bf16.msra.mxu2 %v6325_v7 }
 0x774   :  { %v1853_v27 = vsel %vm641_vm13, %v1852_v6, %v1851_v40 }
 0x775   :  { %v1774_v25 = vld [vmem:[#allocation1] sm:$0xf] }
 0x776   :  { %1777 = vst [vmem:[#allocation1] ss:$9 sm:$0xff] %v7753_v11  ;;  %v1810_v33 = vunpack.c.l.b16 %v1774_v25 }
 0x778   :  { %v1864_v14 = vrot.slane %v1810_v33, 2  ;;  %v1863_v33 = vsel %vm635_vm11, %v1862_v62, %v1861_v16 }
 0x77a   :  { %v1865_v52 = vsel %vm638_vm12, %v1864_v14, %v1863_v33 }
 0x77d   :  { %v1778_v25 = vld [vmem:[#allocation1] sm:$0xf] }
 0x77e   :  { %v1811_v59 = vunpack.c.l.b16 %v1778_v25  ;;  %1872 = vst [vmem:[#allocation1] ss:$9 sm:$0xff] %v8933_v54 }
 0x780   :  { %v1866_v56 = vrot.slane %v1811_v59, 1 }
 0x782   :  { %v1867_v30 = vsel %vm641_vm13, %v1866_v56, %v1865_v52 }
 0x783   :  { %v1869_v35 = vpack.c.b16 %v1867_v30, %v1853_v27 }
 0x785   :  { %2954 = vmatmul.bf16.gmra.mxu1 %v1869_v35  ;;  %v1873_v63 = vld [vmem:[#allocation1] sm:$0xf] }
 0x786   :  { %1875 = vst [vmem:[#allocation1] ss:$9 sm:$0xff] %v8934_v41  ;;  %v1968_v22 = vunpack.c.l.b16 %v1873_v63 }
 0x788   :  { %v2000_v56 = vrot.slane %v1968_v22, 1 }
 0x78d   :  { %v1876_v53 = vld [vmem:[#allocation1] sm:$0xf] }
 0x78e   :  { %1878 = vst [vmem:[#allocation1] ss:$9 sm:$0xff] %v8935_v26  ;;  %v1969_v40 = vunpack.c.l.b16 %v1876_v53 }
 0x795   :  { %v1879_v2 = vld [vmem:[#allocation1] sm:$0xf] }
 0x796   :  { %1881 = vst [vmem:[#allocation1] ss:$9 sm:$0xff] %v8936_v32  ;;  %v1970_v57 = vunpack.c.l.b16 %v1879_v2 }
 0x798   :  { %v2002_v7 = vrot.slane %v1970_v57, 7 }
 0x79d   :  { %v1882_v14 = vld [vmem:[#allocation1] sm:$0xf] }
 0x79e   :  { %1884 = vst [vmem:[#allocation1] ss:$9 sm:$0xff] %v8937_v19  ;;  %v1971_v42 = vunpack.c.l.b16 %v1882_v14  ;;  %v2001_v14 = vsel %vm623_vm7, %v1969_v40, %v2000_v56 }
 0x7a5   :  { %v1885_v18 = vld [vmem:[#allocation1] sm:$0xf] }
 0x7a6   :  { %1887 = vst [vmem:[#allocation1] ss:$9 sm:$0xff] %v8938_v9  ;;  %v1972_v12 = vunpack.c.l.b16 %v1885_v18 }
 0x7ad   :  { %v1888_v3 = vld [vmem:[#allocation1] sm:$0xf] }
 0x7ae   :  { %1890 = vst [vmem:[#allocation1] ss:$9 sm:$0xff] %v8939_v8  ;;  %v1973_v52 = vunpack.c.l.b16 %v1888_v3  ;;  %v2003_v3 = vsel %vm626_vm8, %v2002_v7, %v2001_v14 }
 0x7b5   :  { %v1891_v13 = vld [vmem:[#allocation1] sm:$0xf] }
 0x7b6   :  { %1893 = vst [vmem:[#allocation1] ss:$9 sm:$0xff] %v8940_v31  ;;  %v1974_v30 = vunpack.c.l.b16 %v1891_v13 }
 0x7bd   :  { %v1894_v51 = vld [vmem:[#allocation1] sm:$0xf] }
 0x7be   :  { %1896 = vst [vmem:[#allocation1] ss:$9 sm:$0xff] %v8941_v29  ;;  %v1975_v63 = vunpack.c.l.b16 %v1894_v51 }
 0x7c0   :  { %v2012_v22 = vrot.slane %v1975_v63, 2 }
 0x7c5   :  { %v1897_v46 = vld [vmem:[#allocation1] sm:$0xf] }
 0x7c6   :  { %1899 = vst [vmem:[#allocation1] ss:$9 sm:$0xff] %v8944_v58  ;;  %v1976_v45 = vunpack.c.l.b16 %v1897_v46  ;;  %v2008_v46 = vrot.slane %v1973_v52, 4 }
 0x7c8   :  { %v2014_v2 = vrot.slane %v1976_v45, 1 }
 0x7cd   :  { %v1900_v34 = vld [vmem:[#allocation1] sm:$0xf] }
 0x7ce   :  { %1902 = vst [vmem:[#allocation1] ss:$9 sm:$0xff] %v8945_v28  ;;  %v1977_v50 = vunpack.c.l.b16 %v1900_v34  ;;  %v2010_v34 = vrot.slane %v1974_v30, 3 }
 0x7d0   :  { %v2015_v18 = vsel %vm623_vm7, %v1977_v50, %v2014_v2 }
 0x7d5   :  { %v1903_v62 = vld [vmem:[#allocation1] sm:$0xf] }
 0x7d6   :  { %1905 = vst [vmem:[#allocation1] ss:$9 sm:$0xff] %v8946_v61  ;;  %v1978_v6 = vunpack.c.l.b16 %v1903_v62 }
 0x7d8   :  { %v2016_v48 = vrot.slane %v1978_v6, 7 }
 0x7da   :  { %v2017_v13 = vsel %vm626_vm8, %v2016_v48, %v2015_v18  ;;  %v6340_v18 = vld [vmem:[%s8797_s2 + $0x238] sm:$0xff] }
 0x7db   :  { %2979 = vmatpush.bf16.msra.mxu3 %v6340_v18 }
 0x7dd   :  { %v1906_v25 = vld [vmem:[#allocation1] sm:$0xf] }
 0x7de   :  { %1908 = vst [vmem:[#allocation1] ss:$9 sm:$0xff] %v7663_v17  ;;  %v1979_v16 = vunpack.c.l.b16 %v1906_v25  ;;  %v2004_v17 = vrot.slane %v1971_v42, 6 }
 0x7e0   :  { %v2018_v62 = vrot.slane %v1979_v16, 6  ;;  %v2005_v51 = vsel %vm629_vm9, %v2004_v17, %v2003_v3 }
 0x7e5   :  { %v1909_v55 = vld [vmem:[#allocation1] sm:$0xf] }
 0x7e6   :  { %1911 = vst [vmem:[#allocation1] ss:$9 sm:$0xff] %v7667_v60  ;;  %v1980_v33 = vunpack.c.l.b16 %v1909_v55 }
 0x7ed   :  { %v1912_v43 = vld [vmem:[#allocation1] sm:$0xf] }
 0x7ee   :  { %1914 = vst [vmem:[#allocation1] ss:$9 sm:$0xff] %v7671_v10  ;;  %v1981_v27 = vunpack.c.l.b16 %v1912_v43  ;;  %v2006_v10 = vrot.slane %v1972_v12, 5 }
 0x7f0   :  { %v2022_v25 = vrot.slane %v1981_v27, 4  ;;  %v2007_v57 = vsel %vm632_vm10, %v2006_v10, %v2005_v51 }
 0x7f1   :  { %v2009_v42 = vsel %vm635_vm11, %v2008_v46, %v2007_v57 }
 0x7f2   :  { %v2011_v48 = vsel %vm638_vm12, %v2010_v34, %v2009_v42 }
 0x7f3   :  { %v2013_v17 = vsel %vm641_vm13, %v2012_v22, %v2011_v48 }
 0x7f5   :  { %v1915_v59 = vld [vmem:[#allocation1] sm:$0xf] }
 0x7f6   :  { %1917 = vst [vmem:[#allocation1] ss:$9 sm:$0xff] %v7677_v37  ;;  %v1982_v35 = vunpack.c.l.b16 %v1915_v59  ;;  %v2020_v37 = vrot.slane %v1980_v33, 5  ;;  %v2019_v59 = vsel %vm629_vm9, %v2018_v62, %v2017_v13 }
 0x7f8   :  { %v2024_v55 = vrot.slane %v1982_v35, 3  ;;  %v2021_v6 = vsel %vm632_vm10, %v2020_v37, %v2019_v59 }
 0x7f9   :  { %v2023_v45 = vsel %vm635_vm11, %v2022_v25, %v2021_v6  ;;  %v6338_v6 = vld [vmem:[%s8797_s2 + $0x228] sm:$0xff] }
 0x7fa   :  { %v2025_v12 = vsel %vm638_vm12, %v2024_v55, %v2023_v45 }
 0x7fd   :  { %v1918_v53 = vld [vmem:[#allocation1] sm:$0xf] }
 0x7fe   :  { %v1983_v43 = vunpack.c.l.b16 %v1918_v53  ;;  %1920 = vst [vmem:[#allocation1] ss:$9 sm:$0xff] %v8954_v1  ;;  %v6339_v53 = vld [vmem:[%s8797_s2 + $0x230] sm:$0xff] }
 0x7ff   :  { %2980 = vmatpush.bf16.msra.mxu3 %v6339_v53 }
 0x800   :  { %v2026_v16 = vrot.slane %v1983_v43, 2 }
 0x802   :  { %v2027_v33 = vsel %vm641_vm13, %v2026_v16, %v2025_v12 }
 0x803   :  { %v2056_v56 = vpack.c.b16 %v2027_v33, %v2013_v17  ;;  %2981 = vmatpush.bf16.msra.mxu3 %v6338_v6 }
 0x805   :  { %2968 = vmatmul.bf16.vlgmr.msra.gmra.mxu2 %v2056_v56  ;;  %v1921_v40 = vld [vmem:[#allocation1] sm:$0xf] }
 0x806   :  { %1923 = vst [vmem:[#allocation1] ss:$9 sm:$0xff] %v8956_v20  ;;  %v1984_v25 = vunpack.c.l.b16 %v1921_v40 }
 0x808   :  { %v2028_v57 = vrot.slane %v1984_v25, 1 }
 0x80d   :  { %v1924_v10 = vld [vmem:[#allocation1] sm:$0xf] }
 0x80e   :  { %1926 = vst [vmem:[#allocation1] ss:$9 sm:$0xff] %v8958_v49  ;;  %v1985_v42 = vunpack.c.l.b16 %v1924_v10 }
 0x810   :  { %v2029_v10 = vsel %vm623_vm7, %v1985_v42, %v2028_v57 }
 0x815   :  { %v1927_v37 = vld [vmem:[#allocation1] sm:$0xf] }
 0x816   :  { %1929 = vst [vmem:[#allocation1] ss:$9 sm:$0xff] %v8959_v0  ;;  %v1986_v34 = vunpack.c.l.b16 %v1927_v37 }
 0x818   :  { %v2030_v33 = vrot.slane %v1986_v34, 7 }
 0x81d   :  { %v1930_v52 = vld [vmem:[#allocation1] sm:$0xf] }
 0x81e   :  { %1932 = vst [vmem:[#allocation1] ss:$9 sm:$0xff] %v8960_v21  ;;  %v1987_v55 = vunpack.c.l.b16 %v1930_v52 }
 0x820   :  { %v2032_v37 = vrot.slane %v1987_v55, 6 }
 0x825   :  { %v1933_v50 = vld [vmem:[#allocation1] sm:$0xf] }
 0x826   :  { %1935 = vst [vmem:[#allocation1] ss:$9 sm:$0xff] %v8961_v47  ;;  %v1988_v22 = vunpack.c.l.b16 %v1933_v50 }
 0x828   :  { %v2034_v50 = vrot.slane %v1988_v22, 5 }
 0x82d   :  { %v1936_v27 = vld [vmem:[#allocation1] sm:$0xf] }
 0x82e   :  { %1938 = vst [vmem:[#allocation1] ss:$9 sm:$0xff] %v8962_v4  ;;  %v1989_v45 = vunpack.c.l.b16 %v1936_v27 }
 0x830   :  { %v2036_v27 = vrot.slane %v1989_v45, 4 }
 0x835   :  { %v1939_v30 = vld [vmem:[#allocation1] sm:$0xf] }
 0x836   :  { %1941 = vst [vmem:[#allocation1] ss:$9 sm:$0xff] %v8963_v38  ;;  %v1990_v12 = vunpack.c.l.b16 %v1939_v30 }
 0x83d   :  { %v1942_v35 = vld [vmem:[#allocation1] sm:$0xf] }
 0x83e   :  { %1944 = vst [vmem:[#allocation1] ss:$9 sm:$0xff] %v8964_v44  ;;  %v1991_v40 = vunpack.c.l.b16 %v1942_v35  ;;  %v2038_v35 = vrot.slane %v1990_v12, 3 }
 0x840   :  { %v2040_v34 = vrot.slane %v1991_v40, 2 }
 0x845   :  { %v1945_v7 = vld [vmem:[#allocation1] sm:$0xf] }
 0x846   :  { %1947 = vst [vmem:[#allocation1] ss:$9 sm:$0xff] %v8965_v5  ;;  %v1992_v43 = vunpack.c.l.b16 %v1945_v7 }
 0x848   :  { %v2042_v52 = vrot.slane %v1992_v43, 1 }
 0x84d   :  { %v1948_v63 = vld [vmem:[#allocation1] sm:$0xf] }
 0x84e   :  { %1950 = vst [vmem:[#allocation1] ss:$9 sm:$0xff] %v8966_v39  ;;  %v1993_v16 = vunpack.c.l.b16 %v1948_v63 }
 0x850   :  { %v2043_v63 = vsel %vm623_vm7, %v1993_v16, %v2042_v52 }
 0x855   :  { %v1951_v2 = vld [vmem:[#allocation1] sm:$0xf] }
 0x856   :  { %1953 = vst [vmem:[#allocation1] ss:$9 sm:$0xff] %v8967_v15  ;;  %v1994_v13 = vunpack.c.l.b16 %v1951_v2 }
 0x858   :  { %v2044_v56 = vrot.slane %v1994_v13, 7 }
 0x85a   :  { %v2045_v18 = vsel %vm626_vm8, %v2044_v56, %v2043_v63  ;;  %v8972_v63 = vld [vmem:[#allocation15_spill] sm:$0xff] }
 0x85d   :  { %v1954_v62 = vld [vmem:[#allocation1] sm:$0xf] }
 0x85e   :  { %1956 = vst [vmem:[#allocation1] ss:$9 sm:$0xff] %v7732_v24  ;;  %v1995_v51 = vunpack.c.l.b16 %v1954_v62  ;;  %v6337_v62 = vld [vmem:[%s8797_s2 + $0x220] sm:$0xff] }
 0x85f   :  { %2982 = vmatpush.bf16.msra.mxu3 %v6337_v62 }
 0x860   :  { %v2046_v7 = vrot.slane %v1995_v51, 6  ;;  %v6336_v51 = vld [vmem:[%s8797_s2 + $0x218] sm:$0xff] }
 0x862   :  { %v2047_v13 = vsel %vm629_vm9, %v2046_v7, %v2045_v18 }
 0x863   :  { %2983 = vmatpush.bf16.msra.mxu3 %v6336_v51 }
 0x865   :  { %v1957_v14 = vld [vmem:[#allocation1] sm:$0xf] }
 0x866   :  { %1959 = vst [vmem:[#allocation1] ss:$9 sm:$0xff] %v7736_v36  ;;  %v1996_v59 = vunpack.c.l.b16 %v1957_v14 }
 0x868   :  { %v2048_v2 = vrot.slane %v1996_v59, 5 }
 0x86a   :  { %v2049_v43 = vsel %vm632_vm10, %v2048_v2, %v2047_v13  ;;  %v8969_v2 = vrot.slane %v8937_v19, 4 }
 0x86d   :  { %v1960_v46 = vld [vmem:[#allocation1] sm:$0xf] }
 0x86e   :  { %1962 = vst [vmem:[#allocation1] ss:$9 sm:$0xff] %v7743_v23  ;;  %v1997_v48 = vunpack.c.l.b16 %v1960_v46  ;;  %v2031_v46 = vsel %vm626_vm8, %v2030_v33, %v2029_v10  ;;  %v6333_v33 = vld [vmem:[%s8797_s2 + $0x200] sm:$0xff]  ;;  %v8970_v10 = vrot.slane %v8941_v29, 4 }
 0x870   :  { %v2050_v30 = vrot.slane %v1997_v48, 4  ;;  %v6335_v48 = vld [vmem:[%s8797_s2 + $0x210] sm:$0xff] }
 0x871   :  { %2984 = vmatpush.bf16.msra.mxu3 %v6335_v48 }
 0x872   :  { %v2051_v59 = vsel %vm635_vm11, %v2050_v30, %v2049_v43 }
 0x875   :  { %v1963_v3 = vld [vmem:[#allocation1] sm:$0xf] }
 0x876   :  { %1965 = vst [vmem:[#allocation1] ss:$9 sm:$0xff] %v7753_v11  ;;  %v1998_v17 = vunpack.c.l.b16 %v1963_v3  ;;  %v2033_v3 = vsel %vm629_vm9, %v2032_v37, %v2031_v46  ;;  %v8968_v37 = vrot.slane %v8933_v54, 4 }
 0x877   :  { %v2035_v55 = vsel %vm632_vm10, %v2034_v50, %v2033_v3 }
 0x878   :  { %v2052_v25 = vrot.slane %v1998_v17, 3  ;;  %v2037_v22 = vsel %vm635_vm11, %v2036_v27, %v2035_v55  ;;  %v6334_v17 = vld [vmem:[%s8797_s2 + $0x208] sm:$0xff]  ;;  %v8971_v27 = vld [vmem:[#allocation13_spill] sm:$0xff] }
 0x879   :  { %v2039_v6 = vsel %vm638_vm12, %v2038_v35, %v2037_v22  ;;  %2985 = vmatpush.bf16.msra.mxu3 %v6334_v17 }
 0x87a   :  { %v2053_v42 = vsel %vm638_vm12, %v2052_v25, %v2051_v59 }
 0x87d   :  { %v1966_v14 = vld [vmem:[#allocation1] sm:$0xf]  ;;  %2986 = vmatpush.bf16.msra.mxu3 %v6333_v33 }
 0x87e   :  { %v1999_v53 = vunpack.c.l.b16 %v1966_v14  ;;  %2060 = vst [vmem:[#allocation1] ss:$9 sm:$0xff] %v8934_v41  ;;  %v2041_v41 = vsel %vm641_vm13, %v2040_v34, %v2039_v6 }
 0x880   :  { %v2054_v57 = vrot.slane %v1999_v53, 2 }
 0x882   :  { %v2055_v45 = vsel %vm641_vm13, %v2054_v57, %v2053_v42 }
 0x883   :  { %v2057_v16 = vpack.c.b16 %v2055_v45, %v2041_v41 }
 0x885   :  { %2973 = vmatmul.bf16.gmra.mxu2 %v2057_v16  ;;  %v2061_v12 = vld [vmem:[#allocation1] sm:$0xf] }
 0x886   :  { %2063 = vst [vmem:[#allocation1] ss:$9 sm:$0xff] %v8935_v26  ;;  %v2158_v25 = vunpack.c.l.b16 %v2061_v12 }
 0x88d   :  { %v2064_v56 = vld [vmem:[#allocation1] sm:$0xf] }
 0x88e   :  { %2066 = vst [vmem:[#allocation1] ss:$9 sm:$0xff] %v8936_v32  ;;  %v2159_v14 = vunpack.c.l.b16 %v2064_v56 }
 0x890   :  { %v2190_v13 = vrot.slane %v2159_v14, 7 }
 0x892   :  { %v2191_v48 = vsel %vm623_vm7, %v2190_v13, %v2158_v25  ;;  %v8976_v25 = vrot.slane %v8964_v44, 4 }
 0x895   :  { %v2067_v40 = vld [vmem:[#allocation1] sm:$0xf] }
 0x896   :  { %2069 = vst [vmem:[#allocation1] ss:$9 sm:$0xff] %v8968_v37  ;;  %v2160_v35 = vunpack.c.l.b16 %v2067_v40 }
 0x898   :  { %v2192_v22 = vrot.slane %v2160_v35, 6 }
 0x89a   :  { %v2193_v40 = vsel %vm626_vm8, %v2192_v22, %v2191_v48 }
 0x89d   :  { %v2070_v52 = vld [vmem:[#allocation1] sm:$0xf] }
 0x89e   :  { %2072 = vst [vmem:[#allocation1] ss:$9 sm:$0xff] %v8938_v9  ;;  %v2161_v18 = vunpack.c.l.b16 %v2070_v52 }
 0x8a0   :  { %v2194_v42 = vrot.slane %v2161_v18, 5 }
 0x8a5   :  { %v2073_v26 = vld [vmem:[#allocation1] sm:$0xf] }
 0x8a6   :  { %2075 = vst [vmem:[#allocation1] ss:$9 sm:$0xff] %v8939_v8  ;;  %v2162_v53 = vunpack.c.l.b16 %v2073_v26 }
 0x8a8   :  { %v2196_v45 = vrot.slane %v2162_v53, 4  ;;  %v8978_v53 = vld [vmem:[#allocation43_spill] sm:$0xff] }
 0x8ad   :  { %v2076_v7 = vld [vmem:[#allocation1] sm:$0xf] }
 0x8ae   :  { %2078 = vst [vmem:[#allocation1] ss:$9 sm:$0xff] %v8940_v31 }
 0x8b5   :  { %v2079_v50 = vld [vmem:[#allocation1] sm:$0xf] }
 0x8b6   :  { %2081 = vst [vmem:[#allocation1] ss:$9 sm:$0xff] %v8969_v2  ;;  %v2164_v43 = vunpack.c.l.b16 %v2079_v50  ;;  %v2195_v50 = vsel %vm629_vm9, %v2194_v42, %v2193_v40 }
 0x8b8   :  { %v2200_v37 = vrot.slane %v2164_v43, 2  ;;  %v8979_v43 = vld [vmem:[#allocation44_spill] sm:$0xff] }
 0x8bd   :  { %v2082_v62 = vld [vmem:[#allocation1] sm:$0xf] }
 0x8be   :  { %2084 = vst [vmem:[#allocation1] ss:$9 sm:$0xff] %v8944_v58  ;;  %v8973_v58 = vld [vmem:[#allocation23_spill] sm:$0xff]  ;;  %v2165_v57 = vunpack.c.l.b16 %v2082_v62 }
 0x8bf   :  { %v433_v30 = vrot.slane %v8973_v58, 4 }
 0x8c0   :  { %v2202_v2 = vrot.slane %v2165_v57, 1 }
 0x8c5   :  { %v2085_v32 = vld [vmem:[#allocation1] sm:$0xf] }
 0x8c6   :  { %2087 = vst [vmem:[#allocation1] ss:$9 sm:$0xff] %v8945_v28  ;;  %v2166_v6 = vunpack.c.l.b16 %v2085_v32  ;;  %v2197_v32 = vsel %vm632_vm10, %v2196_v45, %v2195_v50 }
 0x8cd   :  { %v2088_v54 = vld [vmem:[#allocation1] sm:$0xf] }
 0x8ce   :  { %2090 = vst [vmem:[#allocation1] ss:$9 sm:$0xff] %v8946_v61  ;;  %v2167_v28 = vunpack.c.l.b16 %v2088_v54 }
 0x8d0   :  { %v2204_v55 = vrot.slane %v2167_v28, 7  ;;  %v8974_v28 = vrot.slane %v8954_v1, 4 }
 0x8d2   :  { %v2205_v12 = vsel %vm623_vm7, %v2204_v55, %v2166_v6 }
 0x8d5   :  { %v2091_v9 = vld [vmem:[#allocation1] sm:$0xf] }
 0x8d6   :  { %2093 = vst [vmem:[#allocation1] ss:$9 sm:$0xff] %v8970_v10  ;;  %v2168_v61 = vunpack.c.l.b16 %v2091_v9 }
 0x8d8   :  { %v2206_v59 = vrot.slane %v2168_v61, 6 }
 0x8da   :  { %v2207_v52 = vsel %vm626_vm8, %v2206_v59, %v2205_v12  ;;  %v7933_v59 = vpop.f32.mrf.mxu1  ;;  %v7939_v12 = vpop.f32.mrf.mxu2 }
 0x8dd   :  { %v2094_v8 = vld [vmem:[#allocation1] sm:$0xf] }
 0x8de   :  { %2096 = vst [vmem:[#allocation1] ss:$9 sm:$0xff] %v7667_v60  ;;  %v2169_v29 = vunpack.c.l.b16 %v2094_v8  ;;  %v2163_v60 = vunpack.c.l.b16 %v2076_v7 }
 0x8e0   :  { %v2208_v41 = vrot.slane %v2169_v29, 5  ;;  %v2198_v17 = vrot.slane %v2163_v60, 3  ;;  %v8975_v29 = vrot.slane %v8960_v21, 4 }
 0x8e2   :  { %v2209_v62 = vsel %vm629_vm9, %v2208_v41, %v2207_v52  ;;  %v2199_v9 = vsel %vm635_vm11, %v2198_v17, %v2197_v32  ;;  %v8982_v52 = vld [vmem:[#allocation12_spill] sm:$0xff] }
 0x8e5   :  { %v2097_v31 = vld [vmem:[#allocation1] sm:$0xf] }
 0x8e6   :  { %2099 = vst [vmem:[#allocation1] ss:$9 sm:$0xff] %v8971_v27  ;;  %v2170_v3 = vunpack.c.l.b16 %v2097_v31  ;;  %v2201_v31 = vsel %vm638_vm12, %v2200_v37, %v2199_v9 }
 0x8e8   :  { %v2210_v16 = vrot.slane %v2170_v3, 4 }
 0x8ea   :  { %v2211_v54 = vsel %vm632_vm10, %v2210_v16, %v2209_v62 }
 0x8ed   :  { %v2100_v19 = vld [vmem:[#allocation1] sm:$0xf] }
 0x8ee   :  { %2102 = vst [vmem:[#allocation1] ss:$9 sm:$0xff] %v8972_v63  ;;  %v2171_v34 = vunpack.c.l.b16 %v2100_v19  ;;  %v2203_v19 = vsel %vm641_vm13, %v2202_v2, %v2201_v31  ;;  %v8983_v2 = vld [vmem:[#allocation10_spill] sm:$0xff] }
 0x8ef   :  { %v7945_v62 = vsel %vm7935_vm0, %v8983_v2, 0 }
 0x8f0   :  { %v2212_v33 = vrot.slane %v2171_v34, 3 }
 0x8f2   :  { %v2213_v10 = vsel %vm635_vm11, %v2212_v33, %v2211_v54 }
 0x8f5   :  { %v2103_v46 = vld [vmem:[#allocation1] sm:$0xf] }
 0x8f6   :  { %2106 = vst [vmem:[#allocation1] ss:$9 sm:$0xff] %v433_v30  ;;  %v2172_v51 = vunpack.c.l.b16 %v2103_v46 }
 0x8f8   :  { %v2214_v26 = vrot.slane %v2172_v51, 2 }
 0x8fa   :  { %v2215_v27 = vsel %vm638_vm12, %v2214_v26, %v2213_v10 }
 0x8fd   :  { %v2107_v56 = vld [vmem:[#allocation1] sm:$0xf] }
 0x8fe   :  { %v2173_v7 = vunpack.c.l.b16 %v2107_v56  ;;  %2109 = vst [vmem:[#allocation1] ss:$9 sm:$0xff] %v8956_v20 }
 0x900   :  { %v2216_v8 = vrot.slane %v2173_v7, 1 }
 0x902   :  { %v2217_v63 = vsel %vm641_vm13, %v2216_v8, %v2215_v27 }
 0x903   :  { %v2246_v58 = vpack.c.b16 %v2217_v63, %v2203_v19 }
 0x905   :  { %2987 = vmatmul.bf16.vlgmr.msra.gmra.mxu3 %v2246_v58  ;;  %v7909_v20 = vld [vmem:[#allocation1] sm:$0xf] }
 0x906   :  { %2112 = vst [vmem:[#allocation1] ss:$9 sm:$0xff] %v8958_v49  ;;  %v2174_v51 = vunpack.c.l.b16 %v7909_v20 }
 0x90d   :  { %v2113_v30 = vld [vmem:[#allocation1] sm:$0xf] }
 0x90e   :  { %2115 = vst [vmem:[#allocation1] ss:$9 sm:$0xff] %v8959_v0  ;;  %v2175_v60 = vunpack.c.l.b16 %v2113_v30 }
 0x910   :  { %v2218_v6 = vrot.slane %v2175_v60, 7 }
 0x912   :  { %v2219_v32 = vsel %vm623_vm7, %v2218_v6, %v2174_v51 }
 0x915   :  { %v2116_v14 = vld [vmem:[#allocation1] sm:$0xf] }
 0x916   :  { %2118 = vst [vmem:[#allocation1] ss:$9 sm:$0xff] %v8974_v28  ;;  %v2176_v13 = vunpack.c.l.b16 %v2116_v14  ;;  %v8984_v28 = vld [vmem:[#allocation29_spill] sm:$0xff] }
 0x918   :  { %v2220_v48 = vrot.slane %v2176_v13, 6 }
 0x91a   :  { %v2221_v31 = vsel %vm626_vm8, %v2220_v48, %v2219_v32 }
 0x91d   :  { %v2119_v46 = vld [vmem:[#allocation1] sm:$0xf] }
 0x91e   :  { %2121 = vst [vmem:[#allocation1] ss:$9 sm:$0xff] %v8961_v47 }
 0x925   :  { %v2122_v35 = vld [vmem:[#allocation1] sm:$0xf] }
 0x926   :  { %2124 = vst [vmem:[#allocation1] ss:$9 sm:$0xff] %v8962_v4 }
 0x92d   :  { %v2125_v61 = vld [vmem:[#allocation1] sm:$0xf] }
 0x92e   :  { %2127 = vst [vmem:[#allocation1] ss:$9 sm:$0xff] %v8963_v38  ;;  %v2179_v57 = vunpack.c.l.b16 %v2125_v61 }
 0x930   :  { %v2226_v54 = vrot.slane %v2179_v57, 3 }
 0x935   :  { %v2128_v18 = vld [vmem:[#allocation1] sm:$0xf] }
 0x936   :  { %2130 = vst [vmem:[#allocation1] ss:$9 sm:$0xff] %v8975_v29  ;;  %v2180_v45 = vunpack.c.l.b16 %v2128_v18  ;;  %v7957_v18 = vpop.f32.mrf.mxu3  ;;  %v2950_v29 = vpop.f32.mrf.mxu1 }
 0x938   :  { %v2228_v27 = vrot.slane %v2180_v45, 2 }
 0x93d   :  { %v2131_v49 = vld [vmem:[#allocation1] sm:$0xf] }
 0x93e   :  { %2133 = vst [vmem:[#allocation1] ss:$9 sm:$0xff] %v8965_v5  ;;  %v8977_v5 = vld [vmem:[#allocation47_spill] sm:$0xff]  ;;  %v2181_v33 = vunpack.c.l.b16 %v2131_v49  ;;  %v2952_v48 = vpop.f32.mrf.mxu1 }
 0x93f   :  { %v2837_v3 = vadd.f32 %v8978_v53, %v8977_v5 }
 0x940   :  { %v2230_v30 = vrot.slane %v2181_v33, 1 }
 0x945   :  { %v2134_v0 = vld [vmem:[#allocation1] sm:$0xf] }
 0x946   :  { %2136 = vst [vmem:[#allocation1] ss:$9 sm:$0xff] %v8966_v39  ;;  %v465_v39 = vrot.slane %v7732_v24, 4  ;;  %v2182_v56 = vunpack.c.l.b16 %v2134_v0 }
 0x94d   :  { %v2137_v1 = vld [vmem:[#allocation1] sm:$0xf] }
 0x94e   :  { %2139 = vst [vmem:[#allocation1] ss:$9 sm:$0xff] %v8967_v15  ;;  %v2183_v15 = vunpack.c.l.b16 %v2137_v1 }
 0x950   :  { %v2232_v42 = vrot.slane %v2183_v15, 7  ;;  %v7969_v15 = vrot.slane %v7945_v62, 1 }
 0x952   :  { %v2233_v9 = vsel %vm623_vm7, %v2232_v42, %v2182_v56  ;;  %v8991_v42 = vld [vmem:[#allocation50_spill] sm:$0xff] }
 0x955   :  { %v2140_v47 = vld [vmem:[#allocation1] sm:$0xf] }
 0x956   :  { %2142 = vst [vmem:[#allocation1] ss:$9 sm:$0xff] %v8976_v25  ;;  %v2184_v44 = vunpack.c.l.b16 %v2140_v47  ;;  %v8985_v47 = vld [vmem:[#allocation45_spill] sm:$0xff] }
 0x957   :  { %v2839_v25 = vadd.f32 %v8985_v47, %v8977_v5  ;;  %v6347_v47 = vld [vmem:[%s8797_s2 + $0x270] sm:$0xff] }
 0x958   :  { %v2234_v17 = vrot.slane %v2184_v44, 6  ;;  %v8988_v44 = vld [vmem:[#allocation16_spill] sm:$0xff] }
 0x95a   :  { %v2235_v19 = vsel %vm626_vm8, %v2234_v17, %v2233_v9  ;;  %v8992_v17 = vld [vmem:[#allocation18_spill] sm:$0xff] }
 0x95d   :  { %v2143_v4 = vld [vmem:[#allocation1] sm:$0xf] }
 0x95e   :  { %2145 = vst [vmem:[#allocation1] ss:$9 sm:$0xff] %v7736_v36  ;;  %v2177_v36 = vunpack.c.l.b16 %v2119_v46  ;;  %v2185_v55 = vunpack.c.l.b16 %v2143_v4  ;;  %v8986_v4 = vld [vmem:[#allocation49_spill] sm:$0xff] }
 0x960   :  { %v2222_v40 = vrot.slane %v2177_v36, 5  ;;  %v2236_v37 = vrot.slane %v2185_v55, 5 }
 0x962   :  { %v2223_v20 = vsel %vm629_vm9, %v2222_v40, %v2221_v31  ;;  %v2237_v14 = vsel %vm629_vm9, %v2236_v37, %v2235_v19 }
 0x965   :  { %v2146_v38 = vld [vmem:[#allocation1] sm:$0xf] }
 0x966   :  { %2148 = vst [vmem:[#allocation1] ss:$9 sm:$0xff] %v7743_v23  ;;  %v2856_v23 = vadd.f32 %v8979_v43, %v2837_v3  ;;  %v2186_v22 = vunpack.c.l.b16 %v2146_v38  ;;  %v2969_v3 = vpop.f32.mrf.mxu2  ;;  %v8989_v43 = vld [vmem:[#allocation17_spill] sm:$0xff] }
 0x968   :  { %v2875_v26 = vadd.f32 %v8982_v52, %v2856_v23  ;;  %v2238_v50 = vrot.slane %v2186_v22, 4  ;;  %v8990_v22 = vld [vmem:[#allocation34_spill] sm:$0xff] }
 0x96a   :  { %v2894_v46 = vadd.f32 %v8984_v28, %v2875_v26  ;;  %v2239_v61 = vsel %vm632_vm10, %v2238_v50, %v2237_v14  ;;  %v6479_v28 = vld [vmem:[%s8797_s2 + $0x690] sm:$0xff] }
 0x96c   :  { %v2913_v38 = vadd.f32 %v8986_v4, %v2894_v46  ;;  %v6345_v4 = vld [vmem:[%s8797_s2 + $0x260] sm:$0xff] }
 0x96d   :  { %v2149_v21 = vld [vmem:[#allocation1] sm:$0xf] }
 0x96e   :  { %2151 = vst [vmem:[#allocation1] ss:$9 sm:$0xff] %v7753_v11  ;;  %v2178_v11 = vunpack.c.l.b16 %v2122_v35  ;;  %v2187_v24 = vunpack.c.l.b16 %v2149_v21  ;;  %v2932_v36 = vadd.f32 %v8988_v44, %v2913_v38  ;;  %v2971_v40 = vpop.f32.mrf.mxu2  ;;  %v2955_v38 = vpop.f32.mrf.mxu1 }
 0x970   :  { %v2224_v7 = vrot.slane %v2178_v11, 4  ;;  %v2240_v10 = vrot.slane %v2187_v24, 3  ;;  %v2951_v51 = vadd.f32 %v2950_v29, %v2932_v36  ;;  %v8997_v36 = vld [vmem:[#allocation19_spill] sm:$0xff] }
 0x972   :  { %v2225_v35 = vsel %vm632_vm10, %v2224_v7, %v2223_v20  ;;  %v2241_v0 = vsel %vm635_vm11, %v2240_v10, %v2239_v61  ;;  %v2970_v24 = vadd.f32 %v2969_v3, %v2951_v51 }
 0x973   :  { %v2227_v49 = vsel %vm635_vm11, %v2226_v54, %v2225_v35 }
 0x974   :  { %v2229_v21 = vsel %vm638_vm12, %v2228_v27, %v2227_v49 }
 0x975   :  { %v2152_v34 = vld [vmem:[#allocation1] sm:$0xf] }
 0x976   :  { %2155 = vst [vmem:[#allocation1] ss:$9 sm:$0xff] %v465_v39  ;;  %v2188_v16 = vunpack.c.l.b16 %v2152_v34  ;;  %v2231_v39 = vsel %vm641_vm13, %v2230_v30, %v2229_v21  ;;  %v8987_v34 = vld [vmem:[#allocation46_spill] sm:$0xff]  ;;  %v8994_v21 = vld [vmem:[#allocation28_spill] sm:$0xff]  ;;  %v2974_v3 = vpop.f32.mrf.mxu2 }
 0x977   :  { %v2858_v13 = vadd.f32 %v8987_v34, %v2839_v25  ;;  %v6346_v25 = vld [vmem:[%s8797_s2 + $0x268] sm:$0xff]  ;;  %v6344_v34 = vld [vmem:[%s8797_s2 + $0x258] sm:$0xff] }
 0x978   :  { %v2242_v63 = vrot.slane %v2188_v16, 2 }
 0x979   :  { %v2877_v23 = vadd.f32 %v8989_v43, %v2858_v13  ;;  %v8996_v13 = vld [vmem:[#allocation14_spill] sm:$0xff]  ;;  %v6343_v43 = vld [vmem:[%s8797_s2 + $0x250] sm:$0xff] }
 0x97a   :  { %v2243_v53 = vsel %vm638_vm12, %v2242_v63, %v2241_v0 }
 0x97b   :  { %v2896_v57 = vadd.f32 %v8990_v22, %v2877_v23 }
 0x97d   :  { %v2156_v8 = vld [vmem:[#allocation1] sm:$0xf]  ;;  %v2915_v45 = vadd.f32 %v8991_v42, %v2896_v57 }
 0x97e   :  { %v2189_v58 = vunpack.c.l.b16 %v2156_v8  ;;  %3148 = vst [vmem:[#allocation1] ss:$9 sm:$0xff] %v7945_v62 }
 0x97f   :  { %v2934_v33 = vadd.f32 %v8992_v17, %v2915_v45 }
 0x980   :  { %v2244_v1 = vrot.slane %v2189_v58, 1 }
 0x981   :  { %v2953_v37 = vadd.f32 %v2952_v48, %v2934_v33 }
 0x982   :  { %v2245_v60 = vsel %vm641_vm13, %v2244_v1, %v2243_v53  ;;  %v6348_v1 = vld [vmem:[%s8797_s2 + $0x278] sm:$0xff]  ;;  %v2844_v53 = vadd.f32 %v8994_v21, %v8977_v5 }
 0x983   :  { %v2247_v55 = vpack.c.b16 %v2245_v60, %v2231_v39  ;;  %v2972_v26 = vadd.f32 %v2971_v40, %v2953_v37  ;;  %4183 = vmatpush.bf16.msrb.mxu1 %v6348_v1  ;;  %v8995_v39 = vld [vmem:[#allocation48_spill] sm:$0xff] }
 0x984   :  { %v2863_v60 = vadd.f32 %v8995_v39, %v2844_v53 }
 0x985   :  { %2992 = vmatmul.bf16.gmra.mxu3 %v2247_v55  ;;  %v7974_v11 = vld [vmem:[#allocation1] sm:$0xf]  ;;  %v2956_v55 = vadd.f32 %v2955_v38, %v8997_v36  ;;  %v6352_v38 = vld [vmem:[%s8797_s2 + $0x298] sm:$0xff] }
 0x986   :  { %3152 = vst [vmem:[#allocation1] ss:$9 sm:$0xff] %v7969_v15  ;;  %v2882_v44 = vadd.f32 %v8996_v13, %v2863_v60  ;;  %v3177_v39 = vunpack.c.l.b16 %v7974_v11  ;;  %v6351_v13 = vld [vmem:[%s8797_s2 + $0x290] sm:$0xff]  ;;  %v6350_v11 = vld [vmem:[%s8797_s2 + $0x288] sm:$0xff] }
 0x987   :  { %4184 = vmatpush.bf16.msrb.mxu1 %v6347_v47  ;;  %v2975_v5 = vadd.f32 %v2974_v3, %v2956_v55 }
 0x988   :  { %v2988_v6 = vpop.f32.mrf.mxu3  ;;  %v2901_v23 = vadd.f32 %v7933_v59, %v2882_v44  ;;  %v6341_v59 = vld [vmem:[%s8797_s2 + $0x240] sm:$0xff] }
 0x989   :  { %v2989_v16 = vadd.f32 %v2988_v6, %v2970_v24  ;;  %v6342_v24 = vld [vmem:[%s8797_s2 + $0x248] sm:$0xff]  ;;  %v2957_v6 = vpop.f32.mrf.mxu1 }
 0x98a   :  { %v2920_v22 = vadd.f32 %v7939_v12, %v2901_v23 }
 0x98b   :  { %v2998_v56 = vmax.f32 %v2989_v16, 0.0  ;;  %4185 = vmatpush.bf16.msrb.mxu1 %v6346_v25  ;;  %v2976_v16 = vpop.f32.mrf.mxu2  ;;  %v6353_v25 = vld [vmem:[%s8797_s2 + $0x2a0] sm:$0xff] }
 0x98c   :  { %v2939_v42 = vadd.f32 %v7957_v18, %v2920_v22 }
 0x98d   :  { %v3002_v52 = vpack.c.bf16 %v2998_v56, %v2998_v56  ;;  %v7993_v14 = vld [vmem:[#allocation1] sm:$0xf] }
 0x98e   :  { %v2958_v48 = vadd.f32 %v2957_v6, %v2939_v42  ;;  %v6349_v6 = vld [vmem:[%s8797_s2 + $0x280] sm:$0xff] }
 0x98f   :  { %v3010_v7 = vrot.slane %v3002_v52, 2  ;;  %4186 = vmatpush.bf16.msrb.mxu1 %v6345_v4  ;;  %v3178_v4 = vunpack.c.l.b16 %v7993_v14 }
 0x990   :  { %v2990_v50 = vpop.f32.mrf.mxu3  ;;  %v2977_v33 = vadd.f32 %v2976_v16, %v2958_v48 }
 0x991   :  { %v7981_v32 = vsel %vm3014_vm2, %v3002_v52, %v3010_v7  ;;  %v3019_v54 = vsel %vm3018_vm4, %v3002_v52, %v3010_v7  ;;  %v2991_v9 = vadd.f32 %v2990_v50, %v2972_v26  ;;  %v6356_v7 = vld [vmem:[%s8797_s2 + $0x2b8] sm:$0xff] }
 0x992   :  { %v3021_v10 = vrot.slane %v3019_v54, 2  ;;  %4196 = vmatpush.bf16.msrb.mxu2 %v6356_v7 }
 0x993   :  { %v2999_v8 = vmax.f32 %v2991_v9, 0.0  ;;  %4187 = vmatpush.bf16.msrb.mxu1 %v6344_v34  ;;  %v6355_v9 = vld [vmem:[%s8797_s2 + $0x2b0] sm:$0xff]  ;;  %v3185_v34 = vrot.slane %v3178_v4, 7 }
 0x994   :  { %v3047_v31 = vshrl.u32 %v3021_v10, 16  ;;  %v3050_v63 = vshll.u32 %v3021_v10, 16  ;;  %v6359_v4 = vld [vmem:[%s8797_s2 + $0x2d0] sm:$0xff] }
 0x995   :  { %v7984_v27 = vpack.c.bf16 %v2999_v8, %v2999_v8 }
 0x996   :  { %v3049_v19 = vrot.slane %v3047_v31, 7  ;;  %4197 = vmatpush.bf16.msrb.mxu2 %v6355_v9 }
 0x997   :  { %v3011_v58 = vrot.slane %v7984_v27, 2  ;;  %4188 = vmatpush.bf16.msrb.mxu1 %v6343_v43  ;;  %v3186_v43 = vsel %vm623_vm7, %v3185_v34, %v3177_v39 }
 0x998   :  { %v3052_v20 = vor.u32 %v3050_v63, %v3049_v19 }
 0x999   :  { %v7991_v30 = vsel %vm3018_vm4, %v7984_v27, %v3011_v58 }
 0x99a   :  { %v3101_v46 = vsel %vm6620_vm3, 0, %v3052_v20  ;;  %v6354_v20 = vld [vmem:[%s8797_s2 + $0x2a8] sm:$0xff] }
 0x99b   :  { %v7999_v35 = vsel %vm7935_vm0, %v3101_v46, 0  ;;  %4189 = vmatpush.bf16.msrb.mxu1 %v6342_v24  ;;  %4198 = vmatpush.bf16.msrb.mxu2 %v6354_v20 }
 0x99c   :  { %3156 = vst [vmem:[#allocation1] ss:$9 sm:$0xff] %v7999_v35  ;;  %v8003_v61 = vrot.slane %v7999_v35, 1 }
 0x99f   :  { %4190 = vmatpush.bf16.msrb.mxu1 %v6341_v59  ;;  %4199 = vmatpush.bf16.msrb.mxu2 %v6353_v25 }
 0x9a3   :  { %v8005_v29 = vld [vmem:[#allocation1] sm:$0xf]  ;;  %4200 = vmatpush.bf16.msrb.mxu2 %v6352_v38 }
 0x9a4   :  { %3160 = vst [vmem:[#allocation1] ss:$9 sm:$0xff] %v8003_v61  ;;  %v3179_v3 = vunpack.c.l.b16 %v8005_v29 }
 0x9a6   :  { %v3187_v55 = vrot.slane %v3179_v3, 6 }
 0x9a7   :  { %4201 = vmatpush.bf16.msrb.mxu2 %v6351_v13 }
 0x9ab   :  { %v8008_v49 = vld [vmem:[#allocation1] sm:$0xf]  ;;  %4202 = vmatpush.bf16.msrb.mxu2 %v6350_v11 }
 0x9ac   :  { %3163 = vst [vmem:[#allocation1] ss:$9 sm:$0xff] %v7945_v62  ;;  %v3180_v60 = vunpack.c.l.b16 %v8008_v49 }
 0x9ae   :  { %v3189_v29 = vrot.slane %v3180_v60, 5 }
 0x9af   :  { %4203 = vmatpush.bf16.msrb.mxu2 %v6349_v6  ;;  %v3134_v6 = vrot.slane %v7999_v35, 2 }
 0x9b3   :  { %v8011_v0 = vld [vmem:[#allocation1] sm:$0xf] }
 0x9b4   :  { %3166 = vst [vmem:[#allocation1] ss:$9 sm:$0xff] %v7969_v15  ;;  %v3181_v14 = vunpack.c.l.b16 %v8011_v0  ;;  %v3188_v0 = vsel %vm626_vm8, %v3187_v55, %v3186_v43 }
 0x9b6   :  { %v3191_v23 = vrot.slane %v3181_v14, 4  ;;  %v6358_v14 = vld [vmem:[%s8797_s2 + $0x2c8] sm:$0xff] }
 0x9bb   :  { %v3167_v47 = vld [vmem:[#allocation1] sm:$0xf] }
 0x9bc   :  { %v3182_v44 = vunpack.c.l.b16 %v3167_v47 }
 0x9be   :  { %v3193_v49 = vrot.slane %v3182_v44, 3 }
 0xa08   :  { %v2993_v51 = vpop.f32.mrf.mxu3 }
 0xa09   :  { %v2994_v57 = vadd.f32 %v2993_v51, %v2975_v5 }
 0xa0b   :  { %v3000_v45 = vmax.f32 %v2994_v57, 0.0  ;;  %v3190_v57 = vsel %vm629_vm9, %v3189_v29, %v3188_v0  ;;  %v3130_v0 = vrot.slane %v7945_v62, 2 }
 0xa0c   :  { %v3192_v24 = vsel %vm632_vm10, %v3191_v23, %v3190_v57 }
 0xa0d   :  { %v3004_v17 = vpack.c.bf16 %v3000_v45, %v3000_v45  ;;  %v3194_v42 = vsel %vm635_vm11, %v3193_v49, %v3192_v24 }
 0xa0f   :  { %v3012_v12 = vrot.slane %v3004_v17, 2 }
 0xa10   :  { %v2995_v56 = vpop.f32.mrf.mxu3 }
 0xa11   :  { %v8047_v40 = vsel %vm3014_vm2, %v3004_v17, %v3012_v12  ;;  %v3031_v37 = vsel %vm3018_vm4, %v3004_v17, %v3012_v12  ;;  %v2996_v52 = vadd.f32 %v2995_v56, %v2977_v33 }
 0xa12   :  { %v3033_v18 = vrot.slane %v3031_v37, 2 }
 0xa13   :  { %v3001_v26 = vmax.f32 %v2996_v52, 0.0  ;;  %v6364_v52 = vld [vmem:[%s8797_s2 + $0x2f8] sm:$0xff] }
 0xa14   :  { %v3073_v50 = vshrl.u32 %v3033_v18, 16  ;;  %v3076_v8 = vshll.u32 %v3033_v18, 16  ;;  %4209 = vmatpush.bf16.msrb.mxu3 %v6364_v52  ;;  %v6363_v18 = vld [vmem:[%s8797_s2 + $0x2f0] sm:$0xff] }
 0xa15   :  { %v8053_v54 = vpack.c.bf16 %v3001_v26, %v3001_v26  ;;  %v6362_v26 = vld [vmem:[%s8797_s2 + $0x2e8] sm:$0xff] }
 0xa16   :  { %v3075_v10 = vrot.slane %v3073_v50, 7  ;;  %v6361_v50 = vld [vmem:[%s8797_s2 + $0x2e0] sm:$0xff] }
 0xa17   :  { %v3013_v31 = vrot.slane %v8053_v54, 2 }
 0xa18   :  { %v3078_v19 = vor.u32 %v3076_v8, %v3075_v10  ;;  %4210 = vmatpush.bf16.msrb.mxu3 %v6363_v18  ;;  %v6360_v10 = vld [vmem:[%s8797_s2 + $0x2d8] sm:$0xff]  ;;  %v6369_v18 = vld [vmem:[%s8797_s2 + $0x320] sm:$0xff] }
 0xa19   :  { %v8063_v63 = vsel %vm3018_vm4, %v8053_v54, %v3013_v31 }
 0xa1a   :  { %v3105_v46 = vsel %vm6620_vm3, 0, %v3078_v19 }
 0xa1b   :  { %v8072_v1 = vsel %vm7935_vm0, %v3105_v46, 0 }
 0xa1c   :  { %3170 = vst [vmem:[#allocation1] ss:$9 sm:$0xff] %v8072_v1  ;;  %v8083_v21 = vrot.slane %v8072_v1, 1  ;;  %4211 = vmatpush.bf16.msrb.mxu3 %v6362_v26  ;;  %v3142_v52 = vrot.slane %v8072_v1, 2 }
 0xa20   :  { %4212 = vmatpush.bf16.msrb.mxu3 %v6361_v50 }
 0xa23   :  { %v3171_v53 = vld [vmem:[#allocation1] sm:$0xf] }
 0xa24   :  { %3174 = vst [vmem:[#allocation1] ss:$9 sm:$0xff] %v8083_v21  ;;  %v3183_v36 = vunpack.c.l.b16 %v3171_v53  ;;  %4213 = vmatpush.bf16.msrb.mxu3 %v6360_v10 }
 0xa26   :  { %v3195_v51 = vrot.slane %v3183_v36, 2 }
 0xa28   :  { %v3196_v16 = vsel %vm638_vm12, %v3195_v51, %v3194_v42  ;;  %4214 = vmatpush.bf16.msrb.mxu3 %v6359_v4 }
 0xa2b   :  { %v3175_v5 = vld [vmem:[#allocation1] sm:$0xf] }
 0xa2c   :  { %v3184_v22 = vunpack.c.l.b16 %v3175_v5  ;;  %3201 = vst [vmem:[#allocation1] ss:$9 sm:$0xff] %v7945_v62  ;;  %4215 = vmatpush.bf16.msrb.mxu3 %v6358_v14 }
 0xa2e   :  { %v3197_v45 = vrot.slane %v3184_v22, 1 }
 0xa30   :  { %v3198_v48 = vsel %vm641_vm13, %v3197_v45, %v3196_v16 }
 0xa31   :  { %v3199_v17 = vpack.c.b16 %v3198_v48, %v3198_v48  ;;  %v6372_v48 = vld [vmem:[%s8797_s2 + $0x338] sm:$0xff] }
 0xa32   :  { %4222 = vmatpush.bf16.msrb.mxu0 %v6372_v48 }
 0xa33   :  { %4191 = vmatmul.bf16.vlgmr.msrb.gmra.mxu1 %v3199_v17  ;;  %v3202_v59 = vld [vmem:[#allocation1] sm:$0xf]  ;;  %v6371_v17 = vld [vmem:[%s8797_s2 + $0x330] sm:$0xff] }
 0xa34   :  { %3204 = vst [vmem:[#allocation1] ss:$9 sm:$0xff] %v7969_v15  ;;  %v3225_v9 = vunpack.c.l.b16 %v3202_v59 }
 0xa36   :  { %v3233_v47 = vrot.slane %v3225_v9, 1  ;;  %4223 = vmatpush.bf16.msrb.mxu0 %v6371_v17 }
 0xa3b   :  { %v3205_v33 = vld [vmem:[#allocation1] sm:$0xf] }
 0xa3c   :  { %3207 = vst [vmem:[#allocation1] ss:$9 sm:$0xff] %v7999_v35  ;;  %v3226_v20 = vunpack.c.l.b16 %v3205_v33  ;;  %v3040_v33 = vshrl.u32 %v7981_v32, 16 }
 0xa3e   :  { %v3234_v39 = vsel %vm623_vm7, %v3226_v20, %v3233_v47 }
 0xa43   :  { %v3208_v12 = vld [vmem:[#allocation1] sm:$0xf] }
 0xa44   :  { %3210 = vst [vmem:[#allocation1] ss:$9 sm:$0xff] %v8003_v61  ;;  %v3227_v19 = vunpack.c.l.b16 %v3208_v12  ;;  %v3042_v12 = vrot.slane %v3040_v33, 7 }
 0xa46   :  { %v3235_v3 = vrot.slane %v3227_v19, 7 }
 0xa48   :  { %v3236_v36 = vsel %vm626_vm8, %v3235_v3, %v3234_v39 }
 0xa4b   :  { %v3211_v56 = vld [vmem:[#allocation1] sm:$0xf] }
 0xa4c   :  { %3213 = vst [vmem:[#allocation1] ss:$9 sm:$0xff] %v7945_v62  ;;  %v3228_v46 = vunpack.c.l.b16 %v3211_v56  ;;  %v6357_v62 = vld [vmem:[%s8797_s2 + $0x2c0] sm:$0xff] }
 0xa4d   :  { %4216 = vmatpush.bf16.msrb.mxu3 %v6357_v62 }
 0xa4e   :  { %v3237_v60 = vrot.slane %v3228_v46, 6 }
 0xa50   :  { %v3238_v29 = vsel %vm629_vm9, %v3237_v60, %v3236_v36  ;;  %v6367_v60 = vld [vmem:[%s8797_s2 + $0x310] sm:$0xff] }
 0xa53   :  { %v3214_v37 = vld [vmem:[#allocation1] sm:$0xf] }
 0xa54   :  { %3216 = vst [vmem:[#allocation1] ss:$9 sm:$0xff] %v7969_v15  ;;  %v3229_v25 = vunpack.c.l.b16 %v3214_v37  ;;  %v3043_v37 = vshll.u32 %v7981_v32, 16  ;;  %v6368_v32 = vld [vmem:[%s8797_s2 + $0x318] sm:$0xff] }
 0xa56   :  { %v3239_v34 = vrot.slane %v3229_v25, 5  ;;  %v3045_v50 = vor.u32 %v3043_v37, %v3042_v12  ;;  %v3069_v12 = vshll.u32 %v8047_v40, 16 }
 0xa58   :  { %v3240_v23 = vsel %vm632_vm10, %v3239_v34, %v3238_v29  ;;  %v3100_v25 = vsel %vm6620_vm3, 0, %v3045_v50 }
 0xa59   :  { %v8185_v34 = vsel %vm7935_vm0, %v3100_v25, 0 }
 0xa5b   :  { %v3217_v7 = vld [vmem:[#allocation1] sm:$0xf] }
 0xa5c   :  { %3219 = vst [vmem:[#allocation1] ss:$9 sm:$0xff] %v8072_v1  ;;  %v3230_v38 = vunpack.c.l.b16 %v3217_v7 }
 0xa5e   :  { %v3241_v13 = vrot.slane %v3230_v38, 4 }
 0xa60   :  { %v3242_v11 = vsel %vm635_vm11, %v3241_v13, %v3240_v23  ;;  %v6366_v23 = vld [vmem:[%s8797_s2 + $0x308] sm:$0xff] }
 0xa63   :  { %v3220_v8 = vld [vmem:[#allocation1] sm:$0xf] }
 0xa64   :  { %3222 = vst [vmem:[#allocation1] ss:$9 sm:$0xff] %v8083_v21  ;;  %v3231_v53 = vunpack.c.l.b16 %v3220_v8 }
 0xa66   :  { %v3243_v55 = vrot.slane %v3231_v53, 3  ;;  %v3024_v53 = vsel %vm3014_vm2, %v7984_v27, %v3011_v58 }
 0xa67   :  { %v3053_v36 = vshrl.u32 %v3024_v53, 16 }
 0xa68   :  { %v3244_v5 = vsel %vm638_vm12, %v3243_v55, %v3242_v11 }
 0xa6b   :  { %v3223_v44 = vld [vmem:[#allocation1] sm:$0xf] }
 0xa6c   :  { %v3232_v43 = vunpack.c.l.b16 %v3223_v44  ;;  %3249 = vst [vmem:[#allocation1] ss:$9 sm:$0xff] %v7969_v15 }
 0xa6e   :  { %v3245_v49 = vrot.slane %v3232_v43, 2 }
 0xa70   :  { %v3246_v51 = vsel %vm641_vm13, %v3245_v49, %v3244_v5  ;;  %v3055_v49 = vrot.slane %v3053_v36, 7 }
 0xa71   :  { %v3247_v22 = vpack.c.b16 %v3246_v51, %v3246_v51 }
 0xa73   :  { %4204 = vmatmul.bf16.vlgmr.msrb.gmra.mxu2 %v3247_v22  ;;  %v3250_v57 = vld [vmem:[#allocation1] sm:$0xf]  ;;  %v8200_v22 = vrot.slane %v8185_v34, 1 }
 0xa74   :  { %3253 = vst [vmem:[#allocation1] ss:$9 sm:$0xff] %v3130_v0  ;;  %v3276_v9 = vunpack.c.l.b16 %v3250_v57  ;;  %v3056_v57 = vshll.u32 %v3024_v53, 16 }
 0xa7b   :  { %v3254_v24 = vld [vmem:[#allocation1] sm:$0xf] }
 0xa7c   :  { %3256 = vst [vmem:[#allocation1] ss:$9 sm:$0xff] %v8003_v61  ;;  %v3277_v56 = vunpack.c.l.b16 %v3254_v24  ;;  %v6365_v24 = vld [vmem:[%s8797_s2 + $0x300] sm:$0xff] }
 0xa7e   :  { %v3284_v8 = vrot.slane %v3277_v56, 7 }
 0xa80   :  { %v3285_v4 = vsel %vm623_vm7, %v3284_v8, %v3276_v9 }
 0xa83   :  { %v3257_v42 = vld [vmem:[#allocation1] sm:$0xf] }
 0xa84   :  { %3260 = vst [vmem:[#allocation1] ss:$9 sm:$0xff] %v3134_v6  ;;  %v3278_v7 = vunpack.c.l.b16 %v3257_v42 }
 0xa86   :  { %v3286_v47 = vrot.slane %v3278_v7, 6 }
 0xa88   :  { %v3287_v13 = vsel %vm626_vm8, %v3286_v47, %v3285_v4  ;;  %v6379_v47 = vld [vmem:[%s8797_s2 + $0x370] sm:$0xff] }
 0xa8b   :  { %v3261_v45 = vld [vmem:[#allocation1] sm:$0xf] }
 0xa8c   :  { %3263 = vst [vmem:[#allocation1] ss:$9 sm:$0xff] %v7969_v15  ;;  %v6370_v15 = vld [vmem:[%s8797_s2 + $0x328] sm:$0xff]  ;;  %v3279_v10 = vunpack.c.l.b16 %v3261_v45  ;;  %v3058_v45 = vor.u32 %v3056_v57, %v3055_v49 }
 0xa8d   :  { %4224 = vmatpush.bf16.msrb.mxu0 %v6370_v15 }
 0xa8e   :  { %v3288_v38 = vrot.slane %v3279_v10, 5  ;;  %v3102_v62 = vsel %vm6620_vm3, 0, %v3058_v45 }
 0xa8f   :  { %v8210_v48 = vsel %vm7935_vm0, %v3102_v62, 0 }
 0xa90   :  { %v3289_v43 = vsel %vm629_vm9, %v3288_v38, %v3287_v13  ;;  %v8215_v15 = vrot.slane %v8210_v48, 1 }
 0xa91   :  { %4225 = vmatpush.bf16.msrb.mxu0 %v6369_v18 }
 0xa93   :  { %v3264_v16 = vld [vmem:[#allocation1] sm:$0xf] }
 0xa94   :  { %3266 = vst [vmem:[#allocation1] ss:$9 sm:$0xff] %v3130_v0  ;;  %v3280_v19 = vunpack.c.l.b16 %v3264_v16 }
 0xa95   :  { %4226 = vmatpush.bf16.msrb.mxu0 %v6368_v32 }
 0xa96   :  { %v3290_v3 = vrot.slane %v3280_v19, 4 }
 0xa98   :  { %v3291_v27 = vsel %vm632_vm10, %v3290_v3, %v3289_v43 }
 0xa99   :  { %4227 = vmatpush.bf16.msrb.mxu0 %v6367_v60 }
 0xa9b   :  { %v3267_v59 = vld [vmem:[#allocation1] sm:$0xf] }
 0xa9c   :  { %3269 = vst [vmem:[#allocation1] ss:$9 sm:$0xff] %v8083_v21  ;;  %v3281_v20 = vunpack.c.l.b16 %v3267_v59  ;;  %v3066_v59 = vshrl.u32 %v8047_v40, 16 }
 0xa9d   :  { %4228 = vmatpush.bf16.msrb.mxu0 %v6366_v23 }
 0xa9e   :  { %v3292_v39 = vrot.slane %v3281_v20, 3  ;;  %v3068_v33 = vrot.slane %v3066_v59, 7  ;;  %v6375_v59 = vld [vmem:[%s8797_s2 + $0x350] sm:$0xff] }
 0xaa0   :  { %v3293_v58 = vsel %vm635_vm11, %v3292_v39, %v3291_v27  ;;  %v3071_v37 = vor.u32 %v3069_v12, %v3068_v33  ;;  %v6378_v39 = vld [vmem:[%s8797_s2 + $0x368] sm:$0xff]  ;;  %v6377_v27 = vld [vmem:[%s8797_s2 + $0x360] sm:$0xff] }
 0xaa1   :  { %4229 = vmatpush.bf16.msrb.mxu0 %v6365_v24  ;;  %v6376_v24 = vld [vmem:[%s8797_s2 + $0x358] sm:$0xff]  ;;  %v6501_v33 = vld [vmem:[%s8799_s4] sm:$0xff] }
 0xaa2   :  { %v3104_v18 = vsel %vm6620_vm3, 0, %v3071_v37  ;;  %v3750_v12 = vperm.slane %v6501_v33, 2  ;;  %v3132_v33 = vrot.slane %v8185_v34, 2 }
 0xaa3   :  { %v3270_v26 = vld [vmem:[#allocation1] sm:$0xf]  ;;  %v8227_v7 = vsel %vm7935_vm0, %v3104_v18, 0  ;;  %v6374_v18 = vld [vmem:[%s8797_s2 + $0x348] sm:$0xff] }
 0xaa4   :  { %3273 = vst [vmem:[#allocation1] ss:$9 sm:$0xff] %v3142_v52  ;;  %v3282_v46 = vunpack.c.l.b16 %v3270_v26  ;;  %v3036_v26 = vsel %vm3014_vm2, %v8053_v54, %v3013_v31  ;;  %v8231_v10 = vrot.slane %v8227_v7, 1 }
 0xaa5   :  { %v3079_v9 = vshrl.u32 %v3036_v26, 16  ;;  %v3082_v8 = vshll.u32 %v3036_v26, 16 }
 0xaa6   :  { %v3294_v44 = vrot.slane %v3282_v46, 2  ;;  %v6380_v46 = vld [vmem:[%s8797_s2 + $0x378] sm:$0xff] }
 0xaa7   :  { %v3081_v40 = vrot.slane %v3079_v9, 7  ;;  %4235 = vmatpush.bf16.msra.mxu1 %v6380_v46  ;;  %v6388_v46 = vld [vmem:[%s8797_s2 + $0x3b8] sm:$0xff] }
 0xaa8   :  { %v3295_v11 = vsel %vm638_vm12, %v3294_v44, %v3293_v58  ;;  %4248 = vmatpush.bf16.msra.mxu2 %v6388_v46 }
 0xaa9   :  { %v3084_v20 = vor.u32 %v3082_v8, %v3081_v40  ;;  %v6373_v40 = vld [vmem:[%s8797_s2 + $0x340] sm:$0xff] }
 0xaab   :  { %v3274_v14 = vld [vmem:[#allocation1] sm:$0xf]  ;;  %v3106_v54 = vsel %vm6620_vm3, 0, %v3084_v20  ;;  %4236 = vmatpush.bf16.msra.mxu1 %v6379_v47  ;;  %v6387_v47 = vld [vmem:[%s8797_s2 + $0x3b0] sm:$0xff] }
 0xaac   :  { %v3283_v55 = vunpack.c.l.b16 %v3274_v14  ;;  %3301 = vst [vmem:[#allocation1] ss:$9 sm:$0xff] %v8185_v34  ;;  %v8238_v31 = vsel %vm7935_vm0, %v3106_v54, 0  ;;  %4249 = vmatpush.bf16.msra.mxu2 %v6387_v47 }
 0xaad   :  { %v8248_v25 = vrot.slane %v8238_v31, 1 }
 0xaae   :  { %v3296_v29 = vrot.slane %v3283_v55, 1 }
 0xaaf   :  { %4237 = vmatpush.bf16.msra.mxu1 %v6378_v39  ;;  %v6386_v39 = vld [vmem:[%s8797_s2 + $0x3a8] sm:$0xff] }
 0xab0   :  { %v8196_v5 = vpop.f32.mrf.mxu1  ;;  %v3297_v0 = vsel %vm641_vm13, %v3296_v29, %v3295_v11  ;;  %4250 = vmatpush.bf16.msra.mxu2 %v6386_v39 }
 0xab1   :  { %v3298_v51 = vpack.c.b16 %v3297_v0, %v3297_v0  ;;  %v4193_v26 = vadd.f32 %v8196_v5, %v3750_v12 }
 0xab3   :  { %4217 = vmatmul.bf16.vlgmr.msrb.gmra.mxu3 %v3298_v51  ;;  %v3302_v42 = vld [vmem:[#allocation1] sm:$0xf]  ;;  %4238 = vmatpush.bf16.msra.mxu1 %v6377_v27 }
 0xab4   :  { %3305 = vst [vmem:[#allocation1] ss:$9 sm:$0xff] %v8200_v22  ;;  %v3332_v55 = vunpack.c.l.b16 %v3302_v42  ;;  %v6385_v27 = vld [vmem:[%s8797_s2 + $0x3a0] sm:$0xff] }
 0xab5   :  { %4251 = vmatpush.bf16.msra.mxu2 %v6385_v27 }
 0xab7   :  { %4239 = vmatpush.bf16.msra.mxu1 %v6376_v24  ;;  %v6384_v24 = vld [vmem:[%s8797_s2 + $0x398] sm:$0xff] }
 0xab8   :  { %v4194_v16 = vpop.f32.mrf.mxu1 }
 0xab9   :  { %4252 = vmatpush.bf16.msra.mxu2 %v6384_v24 }
 0xabb   :  { %v3306_v17 = vld [vmem:[#allocation1] sm:$0xf]  ;;  %4240 = vmatpush.bf16.msra.mxu1 %v6375_v59  ;;  %v6383_v59 = vld [vmem:[%s8797_s2 + $0x390] sm:$0xff] }
 0xabc   :  { %3309 = vst [vmem:[#allocation1] ss:$9 sm:$0xff] %v8210_v48  ;;  %v3333_v4 = vunpack.c.l.b16 %v3306_v17 }
 0xabd   :  { %4253 = vmatpush.bf16.msra.mxu2 %v6383_v59 }
 0xabe   :  { %v3340_v13 = vrot.slane %v3333_v4, 7 }
 0xabf   :  { %4241 = vmatpush.bf16.msra.mxu1 %v6374_v18 }
 0xac0   :  { %v3341_v29 = vsel %vm623_vm7, %v3340_v13, %v3332_v55 }
 0xac3   :  { %v3310_v56 = vld [vmem:[#allocation1] sm:$0xf]  ;;  %4242 = vmatpush.bf16.msra.mxu1 %v6373_v40  ;;  %v3136_v40 = vrot.slane %v8210_v48, 2 }
 0xac4   :  { %3313 = vst [vmem:[#allocation1] ss:$9 sm:$0xff] %v8215_v15  ;;  %v3334_v53 = vunpack.c.l.b16 %v3310_v56 }
 0xac6   :  { %v3342_v36 = vrot.slane %v3334_v53, 6 }
 0xac8   :  { %v3343_v49 = vsel %vm626_vm8, %v3342_v36, %v3341_v29 }
 0xacb   :  { %v3314_v50 = vld [vmem:[#allocation1] sm:$0xf] }
 0xacc   :  { %3317 = vst [vmem:[#allocation1] ss:$9 sm:$0xff] %v8227_v7  ;;  %v3335_v3 = vunpack.c.l.b16 %v3314_v50 }
 0xace   :  { %v3344_v43 = vrot.slane %v3335_v3, 5 }
 0xad0   :  { %v3345_v57 = vsel %vm629_vm9, %v3344_v43, %v3343_v49 }
 0xad3   :  { %v3318_v19 = vld [vmem:[#allocation1] sm:$0xf] }
 0xad4   :  { %3321 = vst [vmem:[#allocation1] ss:$9 sm:$0xff] %v8231_v10  ;;  %v3336_v60 = vunpack.c.l.b16 %v3318_v19 }
 0xad6   :  { %v3346_v58 = vrot.slane %v3336_v60, 4 }
 0xad8   :  { %v3347_v42 = vsel %vm632_vm10, %v3346_v58, %v3345_v57 }
 0xadb   :  { %v3322_v32 = vld [vmem:[#allocation1] sm:$0xf] }
 0xadc   :  { %3325 = vst [vmem:[#allocation1] ss:$9 sm:$0xff] %v8238_v31  ;;  %v3337_v14 = vunpack.c.l.b16 %v3322_v32 }
 0xade   :  { %v3348_v23 = vrot.slane %v3337_v14, 3 }
 0xae0   :  { %v3349_v45 = vsel %vm635_vm11, %v3348_v23, %v3347_v42 }
 0xae3   :  { %v3326_v38 = vld [vmem:[#allocation1] sm:$0xf] }
 0xae4   :  { %3329 = vst [vmem:[#allocation1] ss:$9 sm:$0xff] %v8248_v25  ;;  %v3338_v44 = vunpack.c.l.b16 %v3326_v38 }
 0xae6   :  { %v3350_v0 = vrot.slane %v3338_v44, 2 }
 0xae8   :  { %v3351_v16 = vsel %vm638_vm12, %v3350_v0, %v3349_v45 }
 0xaeb   :  { %v3330_v11 = vld [vmem:[#allocation1] sm:$0xf] }
 0xaec   :  { %v3339_v51 = vunpack.c.l.b16 %v3330_v11  ;;  %3356 = vst [vmem:[#allocation1] ss:$9 sm:$0xff] %v8185_v34 }
 0xaee   :  { %v3352_v62 = vrot.slane %v3339_v51, 1 }
 0xaf0   :  { %v3353_v17 = vsel %vm641_vm13, %v3352_v62, %v3351_v16 }
 0xaf1   :  { %v3354_v56 = vpack.c.b16 %v3353_v17, %v3353_v17 }
 0xaf3   :  { %4230 = vmatmul.bf16.vlgmr.msrb.gmra.mxu0 %v3354_v56  ;;  %v3357_v37 = vld [vmem:[#allocation1] sm:$0xf]  ;;  %v6382_v56 = vld [vmem:[%s8797_s2 + $0x388] sm:$0xff] }
 0xaf4   :  { %3359 = vst [vmem:[#allocation1] ss:$9 sm:$0xff] %v8200_v22  ;;  %v3380_v53 = vunpack.c.l.b16 %v3357_v37  ;;  %4254 = vmatpush.bf16.msra.mxu2 %v6382_v56 }
 0xaf6   :  { %v4205_v50 = vpop.f32.mrf.mxu2  ;;  %v3388_v55 = vrot.slane %v3380_v53, 1 }
 0xaf7   :  { %v4206_v9 = vadd.f32 %v4205_v50, %v4193_v26 }
 0xafb   :  { %v3360_v8 = vld [vmem:[#allocation1] sm:$0xf] }
 0xafc   :  { %3362 = vst [vmem:[#allocation1] ss:$9 sm:$0xff] %v8210_v48  ;;  %v3381_v14 = vunpack.c.l.b16 %v3360_v8  ;;  %v6395_v48 = vld [vmem:[%s8797_s2 + $0x3f0] sm:$0xff] }
 0xafe   :  { %v4207_v19 = vpop.f32.mrf.mxu2  ;;  %v3389_v29 = vsel %vm623_vm7, %v3381_v14, %v3388_v55 }
 0xaff   :  { %v6381_v19 = vld [vmem:[%s8797_s2 + $0x380] sm:$0xff] }
 0xb00   :  { %4255 = vmatpush.bf16.msra.mxu2 %v6381_v19  ;;  %v6389_v19 = vld [vmem:[%s8797_s2 + $0x3c0] sm:$0xff] }
 0xb03   :  { %v3363_v20 = vld [vmem:[#allocation1] sm:$0xf] }
 0xb04   :  { %3365 = vst [vmem:[#allocation1] ss:$9 sm:$0xff] %v8215_v15  ;;  %v3382_v38 = vunpack.c.l.b16 %v3363_v20  ;;  %v3140_v20 = vrot.slane %v8227_v7, 2 }
 0xb06   :  { %v3390_v36 = vrot.slane %v3382_v38, 7 }
 0xb08   :  { %v3391_v49 = vsel %vm626_vm8, %v3390_v36, %v3389_v29 }
 0xb0b   :  { %v3366_v54 = vld [vmem:[#allocation1] sm:$0xf] }
 0xb0c   :  { %3368 = vst [vmem:[#allocation1] ss:$9 sm:$0xff] %v8227_v7  ;;  %v3383_v3 = vunpack.c.l.b16 %v3366_v54  ;;  %v3144_v7 = vrot.slane %v8238_v31, 2 }
 0xb0e   :  { %v3392_v43 = vrot.slane %v3383_v3, 6  ;;  %v6392_v3 = vld [vmem:[%s8797_s2 + $0x3d8] sm:$0xff] }
 0xb10   :  { %v3393_v57 = vsel %vm629_vm9, %v3392_v43, %v3391_v49  ;;  %v6391_v43 = vld [vmem:[%s8797_s2 + $0x3d0] sm:$0xff] }
 0xb13   :  { %v3369_v32 = vld [vmem:[#allocation1] sm:$0xf] }
 0xb14   :  { %3371 = vst [vmem:[#allocation1] ss:$9 sm:$0xff] %v8231_v10  ;;  %v3384_v60 = vunpack.c.l.b16 %v3369_v32 }
 0xb16   :  { %v3394_v58 = vrot.slane %v3384_v60, 5  ;;  %v3027_v60 = vrot.slane %v7991_v30, 2 }
 0xb18   :  { %v3395_v42 = vsel %vm632_vm10, %v3394_v58, %v3393_v57  ;;  %v6390_v57 = vld [vmem:[%s8797_s2 + $0x3c8] sm:$0xff]  ;;  %v3063_v59 = vshll.u32 %v3027_v60, 16 }
 0xb1b   :  { %v3372_v5 = vld [vmem:[#allocation1] sm:$0xf] }
 0xb1c   :  { %3374 = vst [vmem:[#allocation1] ss:$9 sm:$0xff] %v8238_v31  ;;  %v3385_v13 = vunpack.c.l.b16 %v3372_v5  ;;  %v6393_v5 = vld [vmem:[%s8797_s2 + $0x3e0] sm:$0xff] }
 0xb1e   :  { %v3396_v23 = vrot.slane %v3385_v13, 4 }
 0xb20   :  { %v3397_v45 = vsel %vm635_vm11, %v3396_v23, %v3395_v42  ;;  %v3060_v23 = vshrl.u32 %v3027_v60, 16 }
 0xb22   :  { %v3062_v42 = vrot.slane %v3060_v23, 7 }
 0xb23   :  { %v3375_v4 = vld [vmem:[#allocation1] sm:$0xf] }
 0xb24   :  { %3377 = vst [vmem:[#allocation1] ss:$9 sm:$0xff] %v8248_v25  ;;  %v3386_v44 = vunpack.c.l.b16 %v3375_v4 }
 0xb26   :  { %v3398_v0 = vrot.slane %v3386_v44, 3 }
 0xb28   :  { %v3399_v16 = vsel %vm638_vm12, %v3398_v0, %v3397_v45 }
 0xb2b   :  { %v3378_v11 = vld [vmem:[#allocation1] sm:$0xf] }
 0xb2c   :  { %v3387_v51 = vunpack.c.l.b16 %v3378_v11  ;;  %3404 = vst [vmem:[#allocation1] ss:$9 sm:$0xff] %v8200_v22 }
 0xb2e   :  { %v3400_v62 = vrot.slane %v3387_v51, 2 }
 0xb30   :  { %v3401_v17 = vsel %vm641_vm13, %v3400_v62, %v3399_v16 }
 0xb31   :  { %v3402_v22 = vpack.c.b16 %v3401_v17, %v3401_v17 }
 0xb33   :  { %4243 = vmatmul.bf16.vlgmr.msra.gmra.mxu1 %v3402_v22  ;;  %v3405_v12 = vld [vmem:[#allocation1] sm:$0xf] }
 0xb34   :  { %3408 = vst [vmem:[#allocation1] ss:$9 sm:$0xff] %v3132_v33  ;;  %v3432_v14 = vunpack.c.l.b16 %v3405_v12  ;;  %v3065_v33 = vor.u32 %v3063_v59, %v3062_v42  ;;  %v6397_v59 = vld [vmem:[%s8797_s2 + $0x400] sm:$0xff] }
 0xb36   :  { %v4218_v37 = vpop.f32.mrf.mxu3  ;;  %v3103_v12 = vsel %vm6620_vm3, 0, %v3065_v33 }
 0xb37   :  { %v4219_v18 = vadd.f32 %v4218_v37, %v4206_v9  ;;  %v8364_v37 = vsel %vm7935_vm0, %v3103_v12, 0 }
 0xb3b   :  { %v3409_v26 = vld [vmem:[#allocation1] sm:$0xf] }
 0xb3c   :  { %3411 = vst [vmem:[#allocation1] ss:$9 sm:$0xff] %v8215_v15  ;;  %v6396_v15 = vld [vmem:[%s8797_s2 + $0x3f8] sm:$0xff]  ;;  %v3433_v32 = vunpack.c.l.b16 %v3409_v26 }
 0xb3d   :  { %4261 = vmatpush.bf16.msra.mxu3 %v6396_v15 }
 0xb3e   :  { %v4220_v50 = vpop.f32.mrf.mxu3 }
 0xb41   :  { %4262 = vmatpush.bf16.msra.mxu3 %v6395_v48 }
 0xb43   :  { %v3412_v8 = vld [vmem:[#allocation1] sm:$0xf] }
 0xb44   :  { %3415 = vst [vmem:[#allocation1] ss:$9 sm:$0xff] %v3136_v40  ;;  %v3434_v47 = vunpack.c.l.b16 %v3412_v8  ;;  %v3039_v40 = vrot.slane %v8063_v63, 2  ;;  %v6404_v63 = vld [vmem:[%s8797_s2 + $0x438] sm:$0xff] }
 0xb45   :  { %4274 = vmatpush.bf16.msra.mxu0 %v6404_v63 }
 0xb46   :  { %v3442_v31 = vrot.slane %v3434_v47, 6 }
 0xb4b   :  { %v3416_v34 = vld [vmem:[#allocation1] sm:$0xf] }
 0xb4c   :  { %3418 = vst [vmem:[#allocation1] ss:$9 sm:$0xff] %v8231_v10  ;;  %v6394_v10 = vld [vmem:[%s8797_s2 + $0x3e8] sm:$0xff]  ;;  %v3435_v4 = vunpack.c.l.b16 %v3416_v34  ;;  %v3086_v34 = vshrl.u32 %v3039_v40, 16 }
 0xb4d   :  { %4263 = vmatpush.bf16.msra.mxu3 %v6394_v10  ;;  %v6403_v10 = vld [vmem:[%s8797_s2 + $0x430] sm:$0xff] }
 0xb4e   :  { %v3444_v13 = vrot.slane %v3435_v4, 5  ;;  %4275 = vmatpush.bf16.msra.mxu0 %v6403_v10  ;;  %v6401_v4 = vld [vmem:[%s8797_s2 + $0x420] sm:$0xff] }
 0xb51   :  { %4264 = vmatpush.bf16.msra.mxu3 %v6393_v5  ;;  %v6402_v5 = vld [vmem:[%s8797_s2 + $0x428] sm:$0xff] }
 0xb52   :  { %4276 = vmatpush.bf16.msra.mxu0 %v6402_v5 }
 0xb53   :  { %v3419_v9 = vld [vmem:[#allocation1] sm:$0xf] }
 0xb54   :  { %3422 = vst [vmem:[#allocation1] ss:$9 sm:$0xff] %v3140_v20  ;;  %v3436_v38 = vunpack.c.l.b16 %v3419_v9  ;;  %v3088_v20 = vrot.slane %v3086_v34, 7  ;;  %v3089_v9 = vshll.u32 %v3039_v40, 16  ;;  %v6412_v40 = vld [vmem:[%s8797_s2 + $0x478] sm:$0xff] }
 0xb55   :  { %4265 = vmatpush.bf16.msra.mxu3 %v6392_v3  ;;  %4287 = vmatpush.bf16.msrb.mxu1 %v6412_v40 }
 0xb56   :  { %v3446_v44 = vrot.slane %v3436_v38, 4  ;;  %v3091_v48 = vor.u32 %v3089_v9, %v3088_v20  ;;  %4277 = vmatpush.bf16.msra.mxu0 %v6401_v4  ;;  %v6409_v4 = vld [vmem:[%s8797_s2 + $0x460] sm:$0xff] }
 0xb59   :  { %4266 = vmatpush.bf16.msra.mxu3 %v6391_v43 }
 0xb5b   :  { %v3423_v54 = vld [vmem:[#allocation1] sm:$0xf] }
 0xb5c   :  { %3425 = vst [vmem:[#allocation1] ss:$9 sm:$0xff] %v8248_v25  ;;  %v3437_v53 = vunpack.c.l.b16 %v3423_v54  ;;  %v3440_v25 = vrot.slane %v3433_v32, 7  ;;  %v3107_v54 = vsel %vm6620_vm3, 0, %v3091_v48 }
 0xb5d   :  { %4267 = vmatpush.bf16.msra.mxu3 %v6390_v57  ;;  %v6398_v57 = vld [vmem:[%s8797_s2 + $0x408] sm:$0xff] }
 0xb5e   :  { %v3441_v36 = vsel %vm623_vm7, %v3440_v25, %v3432_v14  ;;  %v3448_v55 = vrot.slane %v3437_v53, 3 }
 0xb5f   :  { %v3443_v58 = vsel %vm626_vm8, %v3442_v31, %v3441_v36  ;;  %v6400_v31 = vld [vmem:[%s8797_s2 + $0x418] sm:$0xff] }
 0xb60   :  { %v3445_v49 = vsel %vm629_vm9, %v3444_v13, %v3443_v58  ;;  %4278 = vmatpush.bf16.msra.mxu0 %v6400_v31 }
 0xb61   :  { %v3447_v30 = vsel %vm632_vm10, %v3446_v44, %v3445_v49  ;;  %4268 = vmatpush.bf16.msra.mxu3 %v6389_v19 }
 0xb62   :  { %v3449_v0 = vsel %vm635_vm11, %v3448_v55, %v3447_v30 }
 0xb63   :  { %v3426_v46 = vld [vmem:[#allocation1] sm:$0xf] }
 0xb64   :  { %3429 = vst [vmem:[#allocation1] ss:$9 sm:$0xff] %v3144_v7  ;;  %v3438_v39 = vunpack.c.l.b16 %v3426_v46  ;;  %v8387_v7 = vsel %vm7935_vm0, %v3107_v54, 0 }
 0xb65   :  { %v8394_v46 = vrot.slane %v8387_v7, 1 }
 0xb66   :  { %v3450_v29 = vrot.slane %v3438_v39, 2 }
 0xb68   :  { %v3451_v24 = vsel %vm638_vm12, %v3450_v29, %v3449_v0 }
 0xb6b   :  { %v3430_v27 = vld [vmem:[#allocation1] sm:$0xf] }
 0xb6c   :  { %v3439_v11 = vunpack.c.l.b16 %v3430_v27  ;;  %3456 = vst [vmem:[#allocation1] ss:$9 sm:$0xff] %v7999_v35  ;;  %v6399_v27 = vld [vmem:[%s8797_s2 + $0x410] sm:$0xff] }
 0xb6d   :  { %4279 = vmatpush.bf16.msra.mxu0 %v6399_v27  ;;  %v6407_v27 = vld [vmem:[%s8797_s2 + $0x450] sm:$0xff] }
 0xb6e   :  { %v3452_v51 = vrot.slane %v3439_v11, 1 }
 0xb70   :  { %v4231_v45 = vpop.f32.mrf.mxu0  ;;  %v3453_v62 = vsel %vm641_vm13, %v3452_v51, %v3451_v24 }
 0xb71   :  { %v8357_v16 = vadd.f32 %v4231_v45, %v4219_v18  ;;  %v3454_v17 = vpack.c.b16 %v3453_v62, %v3453_v62  ;;  %v8368_v18 = vrot.slane %v8364_v37, 1  ;;  %4280 = vmatpush.bf16.msra.mxu0 %v6398_v57 }
 0xb73   :  { %4256 = vmatmul.bf16.vlgmr.msra.gmra.mxu2 %v3454_v17  ;;  %v3457_v22 = vld [vmem:[#allocation1] sm:$0xf] }
 0xb74   :  { %3459 = vst [vmem:[#allocation1] ss:$9 sm:$0xff] %v8003_v61  ;;  %v3484_v13 = vunpack.c.l.b16 %v3457_v22 }
 0xb75   :  { %4281 = vmatpush.bf16.msra.mxu0 %v6397_v59  ;;  %v6477_v59 = vld [vmem:[%s8797_s2 + $0x680] sm:$0xff] }
 0xb78   :  { %v4233_v56 = vpop.f32.mrf.mxu0 }
 0xb7b   :  { %v3460_v26 = vld [vmem:[#allocation1] sm:$0xf] }
 0xb7c   :  { %3463 = vst [vmem:[#allocation1] ss:$9 sm:$0xff] %v8364_v37  ;;  %v3485_v47 = vunpack.c.l.b16 %v3460_v26 }
 0xb7e   :  { %v3492_v39 = vrot.slane %v3485_v47, 7 }
 0xb80   :  { %v3493_v55 = vsel %vm623_vm7, %v3492_v39, %v3484_v13 }
 0xb83   :  { %v3464_v50 = vld [vmem:[#allocation1] sm:$0xf] }
 0xb84   :  { %3467 = vst [vmem:[#allocation1] ss:$9 sm:$0xff] %v8368_v18  ;;  %v3486_v38 = vunpack.c.l.b16 %v3464_v50 }
 0xb86   :  { %v3494_v14 = vrot.slane %v3486_v38, 6 }
 0xb88   :  { %v3495_v29 = vsel %vm626_vm8, %v3494_v14, %v3493_v55  ;;  %v6408_v14 = vld [vmem:[%s8797_s2 + $0x458] sm:$0xff] }
 0xb8b   :  { %v3468_v8 = vld [vmem:[#allocation1] sm:$0xf] }
 0xb8c   :  { %3470 = vst [vmem:[#allocation1] ss:$9 sm:$0xff] %v8072_v1  ;;  %v3487_v53 = vunpack.c.l.b16 %v3468_v8  ;;  %v6411_v8 = vld [vmem:[%s8797_s2 + $0x470] sm:$0xff] }
 0xb8d   :  { %4288 = vmatpush.bf16.msrb.mxu1 %v6411_v8 }
 0xb8e   :  { %v3496_v44 = vrot.slane %v3487_v53, 5 }
 0xb90   :  { %v3497_v49 = vsel %vm629_vm9, %v3496_v44, %v3495_v29  ;;  %v6406_v29 = vld [vmem:[%s8797_s2 + $0x448] sm:$0xff] }
 0xb93   :  { %v3471_v15 = vld [vmem:[#allocation1] sm:$0xf] }
 0xb94   :  { %3473 = vst [vmem:[#allocation1] ss:$9 sm:$0xff] %v8083_v21  ;;  %v3488_v25 = vunpack.c.l.b16 %v3471_v15  ;;  %v6410_v15 = vld [vmem:[%s8797_s2 + $0x468] sm:$0xff] }
 0xb95   :  { %4289 = vmatpush.bf16.msrb.mxu1 %v6410_v15 }
 0xb96   :  { %v3498_v36 = vrot.slane %v3488_v25, 4 }
 0xb98   :  { %v3499_v30 = vsel %vm632_vm10, %v3498_v36, %v3497_v49  ;;  %v6405_v49 = vld [vmem:[%s8797_s2 + $0x440] sm:$0xff] }
 0xb99   :  { %4290 = vmatpush.bf16.msrb.mxu1 %v6409_v4 }
 0xb9b   :  { %v3474_v32 = vld [vmem:[#allocation1] sm:$0xf] }
 0xb9c   :  { %3477 = vst [vmem:[#allocation1] ss:$9 sm:$0xff] %v8387_v7  ;;  %v3489_v3 = vunpack.c.l.b16 %v3474_v32 }
 0xb9d   :  { %4291 = vmatpush.bf16.msrb.mxu1 %v6408_v14  ;;  %v6417_v14 = vld [vmem:[%s8797_s2 + $0x4a0] sm:$0xff] }
 0xb9e   :  { %v3500_v43 = vrot.slane %v3489_v3, 3 }
 0xba0   :  { %v3501_v0 = vsel %vm635_vm11, %v3500_v43, %v3499_v30 }
 0xba1   :  { %4292 = vmatpush.bf16.msrb.mxu1 %v6407_v27  ;;  %v6425_v27 = vld [vmem:[%s8797_s2 + $0x4e0] sm:$0xff] }
 0xba3   :  { %v3478_v41 = vld [vmem:[#allocation1] sm:$0xf] }
 0xba4   :  { %3481 = vst [vmem:[#allocation1] ss:$9 sm:$0xff] %v8394_v46  ;;  %v3490_v60 = vunpack.c.l.b16 %v3478_v41 }
 0xba5   :  { %4293 = vmatpush.bf16.msrb.mxu1 %v6406_v29  ;;  %v6415_v29 = vld [vmem:[%s8797_s2 + $0x490] sm:$0xff] }
 0xba6   :  { %v3502_v23 = vrot.slane %v3490_v60, 2 }
 0xba8   :  { %v3503_v24 = vsel %vm638_vm12, %v3502_v23, %v3501_v0 }
 0xba9   :  { %4294 = vmatpush.bf16.msrb.mxu1 %v6405_v49  ;;  %v6442_v49 = vld [vmem:[%s8797_s2 + $0x568] sm:$0xff] }
 0xbab   :  { %v3482_v58 = vld [vmem:[#allocation1] sm:$0xf] }
 0xbac   :  { %v3491_v11 = vunpack.c.l.b16 %v3482_v58  ;;  %3508 = vst [vmem:[#allocation1] ss:$9 sm:$0xff] %v7999_v35 }
 0xbae   :  { %v3504_v51 = vrot.slane %v3491_v11, 1 }
 0xbb0   :  { %v4244_v42 = vpop.f32.mrf.mxu1  ;;  %v3505_v45 = vsel %vm641_vm13, %v3504_v51, %v3503_v24  ;;  %v3138_v51 = vrot.slane %v8364_v37, 2 }
 0xbb1   :  { %v8418_v62 = vadd.f32 %v4244_v42, %v8357_v16  ;;  %v3506_v17 = vpack.c.b16 %v3505_v45, %v3505_v45  ;;  %v3146_v42 = vrot.slane %v8387_v7, 2 }
 0xbb3   :  { %4269 = vmatmul.bf16.vlgmr.msra.gmra.mxu3 %v3506_v17  ;;  %v3509_v22 = vld [vmem:[#allocation1] sm:$0xf] }
 0xbb4   :  { %3511 = vst [vmem:[#allocation1] ss:$9 sm:$0xff] %v8003_v61  ;;  %v3532_v20 = vunpack.c.l.b16 %v3509_v22 }
 0xbb6   :  { %v3540_v5 = vrot.slane %v3532_v20, 1 }
 0xbb8   :  { %v4246_v33 = vpop.f32.mrf.mxu1 }
 0xbbb   :  { %v3512_v12 = vld [vmem:[#allocation1] sm:$0xf] }
 0xbbc   :  { %3514 = vst [vmem:[#allocation1] ss:$9 sm:$0xff] %v8364_v37  ;;  %v3533_v54 = vunpack.c.l.b16 %v3512_v12 }
 0xbbe   :  { %v3541_v38 = vsel %vm623_vm7, %v3533_v54, %v3540_v5  ;;  %v6419_v5 = vld [vmem:[%s8797_s2 + $0x4b0] sm:$0xff] }
 0xbc3   :  { %v3515_v56 = vld [vmem:[#allocation1] sm:$0xf] }
 0xbc4   :  { %3517 = vst [vmem:[#allocation1] ss:$9 sm:$0xff] %v8368_v18  ;;  %v3534_v19 = vunpack.c.l.b16 %v3515_v56 }
 0xbc6   :  { %v3542_v32 = vrot.slane %v3534_v19, 7 }
 0xbc8   :  { %v3543_v3 = vsel %vm626_vm8, %v3542_v32, %v3541_v38  ;;  %v6420_v32 = vld [vmem:[%s8797_s2 + $0x4b8] sm:$0xff] }
 0xbc9   :  { %5065 = vmatpush.bf16.msrb.mxu2 %v6420_v32  ;;  %v6437_v32 = vld [vmem:[%s8797_s2 + $0x540] sm:$0xff] }
 0xbcb   :  { %v3518_v16 = vld [vmem:[#allocation1] sm:$0xf] }
 0xbcc   :  { %3520 = vst [vmem:[#allocation1] ss:$9 sm:$0xff] %v8072_v1  ;;  %v3535_v9 = vunpack.c.l.b16 %v3518_v16 }
 0xbcd   :  { %5066 = vmatpush.bf16.msrb.mxu2 %v6419_v5 }
 0xbce   :  { %v3544_v47 = vrot.slane %v3535_v9, 6 }
 0xbd0   :  { %v3545_v60 = vsel %vm629_vm9, %v3544_v47, %v3543_v3  ;;  %v6428_v3 = vld [vmem:[%s8797_s2 + $0x4f8] sm:$0xff] }
 0xbd1   :  { %5078 = vmatpush.bf16.msrb.mxu3 %v6428_v3  ;;  %v6460_v3 = vld [vmem:[%s8797_s2 + $0x5f8] sm:$0xff] }
 0xbd3   :  { %v3521_v26 = vld [vmem:[#allocation1] sm:$0xf] }
 0xbd4   :  { %3523 = vst [vmem:[#allocation1] ss:$9 sm:$0xff] %v8083_v21  ;;  %v3536_v48 = vunpack.c.l.b16 %v3521_v26 }
 0xbd6   :  { %v3546_v41 = vrot.slane %v3536_v48, 5 }
 0xbd8   :  { %v3547_v13 = vsel %vm632_vm10, %v3546_v41, %v3545_v60  ;;  %v6427_v60 = vld [vmem:[%s8797_s2 + $0x4f0] sm:$0xff] }
 0xbd9   :  { %5079 = vmatpush.bf16.msrb.mxu3 %v6427_v60  ;;  %v6447_v60 = vld [vmem:[%s8797_s2 + $0x590] sm:$0xff] }
 0xbdb   :  { %v3524_v50 = vld [vmem:[#allocation1] sm:$0xf] }
 0xbdc   :  { %3526 = vst [vmem:[#allocation1] ss:$9 sm:$0xff] %v8387_v7  ;;  %v3537_v63 = vunpack.c.l.b16 %v3524_v50  ;;  %v4355_v7 = vsel %vm8473_vm6, %v8983_v2, 0 }
 0xbde   :  { %v3548_v53 = vrot.slane %v3537_v63, 4 }
 0xbe0   :  { %v3549_v44 = vsel %vm635_vm11, %v3548_v53, %v3547_v13  ;;  %v6426_v13 = vld [vmem:[%s8797_s2 + $0x4e8] sm:$0xff] }
 0xbe1   :  { %5080 = vmatpush.bf16.msrb.mxu3 %v6426_v13 }
 0xbe3   :  { %v3527_v34 = vld [vmem:[#allocation1] sm:$0xf] }
 0xbe4   :  { %3529 = vst [vmem:[#allocation1] ss:$9 sm:$0xff] %v8394_v46  ;;  %v3538_v10 = vunpack.c.l.b16 %v3527_v34 }
 0xbe5   :  { %5081 = vmatpush.bf16.msrb.mxu3 %v6425_v27  ;;  %v6446_v27 = vld [vmem:[%s8797_s2 + $0x588] sm:$0xff] }
 0xbe6   :  { %v3550_v39 = vrot.slane %v3538_v10, 3 }
 0xbe8   :  { %v3551_v55 = vsel %vm638_vm12, %v3550_v39, %v3549_v44  ;;  %v6418_v39 = vld [vmem:[%s8797_s2 + $0x4a8] sm:$0xff]  ;;  %v6436_v44 = vld [vmem:[%s8797_s2 + $0x538] sm:$0xff] }
 0xbe9   :  { %5067 = vmatpush.bf16.msrb.mxu2 %v6418_v39  ;;  %5091 = vmatpush.bf16.msrb.mxu0 %v6436_v44 }
 0xbeb   :  { %v3530_v25 = vld [vmem:[#allocation1] sm:$0xf] }
 0xbec   :  { %v3539_v31 = vunpack.c.l.b16 %v3530_v25  ;;  %3556 = vst [vmem:[#allocation1] ss:$9 sm:$0xff] %v8003_v61  ;;  %v4365_v25 = vrot.slane %v4355_v7, 1 }
 0xbed   :  { %5068 = vmatpush.bf16.msrb.mxu2 %v6417_v14  ;;  %v6459_v14 = vld [vmem:[%s8797_s2 + $0x5f0] sm:$0xff] }
 0xbee   :  { %v3552_v36 = vrot.slane %v3539_v31, 2 }
 0xbf0   :  { %v3553_v43 = vsel %vm641_vm13, %v3552_v36, %v3551_v55  ;;  %v6444_v36 = vld [vmem:[%s8797_s2 + $0x578] sm:$0xff] }
 0xbf1   :  { %v3554_v61 = vpack.c.b16 %v3553_v43, %v3553_v43  ;;  %v6416_v55 = vld [vmem:[%s8797_s2 + $0x498] sm:$0xff]  ;;  %5104 = vmatpush.bf16.msra.mxu1 %v6444_v36 }
 0xbf2   :  { %5069 = vmatpush.bf16.msrb.mxu2 %v6416_v55 }
 0xbf3   :  { %4282 = vmatmul.bf16.vlgmr.msra.gmra.mxu0 %v3554_v61  ;;  %v3557_v58 = vld [vmem:[#allocation1] sm:$0xf]  ;;  %v6435_v61 = vld [vmem:[%s8797_s2 + $0x530] sm:$0xff] }
 0xbf4   :  { %3559 = vst [vmem:[#allocation1] ss:$9 sm:$0xff] %v3134_v6  ;;  %v3582_v33 = vunpack.c.l.b16 %v3557_v58  ;;  %5092 = vmatpush.bf16.msrb.mxu0 %v6435_v61  ;;  %v6443_v58 = vld [vmem:[%s8797_s2 + $0x570] sm:$0xff]  ;;  %v6458_v61 = vld [vmem:[%s8797_s2 + $0x5e8] sm:$0xff] }
 0xbf5   :  { %5105 = vmatpush.bf16.msra.mxu1 %v6443_v58 }
 0xbf6   :  { %v4257_v23 = vpop.f32.mrf.mxu2  ;;  %5070 = vmatpush.bf16.msrb.mxu2 %v6415_v29 }
 0xbf7   :  { %v4258_v11 = vadd.f32 %v4257_v23, %v8418_v62  ;;  %v6424_v23 = vld [vmem:[%s8797_s2 + $0x4d8] sm:$0xff] }
 0xbf8   :  { %5082 = vmatpush.bf16.msrb.mxu3 %v6424_v23 }
 0xbf9   :  { %5106 = vmatpush.bf16.msra.mxu1 %v6442_v49  ;;  %v6445_v49 = vld [vmem:[%s8797_s2 + $0x580] sm:$0xff] }
 0xbfb   :  { %v3560_v30 = vld [vmem:[#allocation1] sm:$0xf] }
 0xbfc   :  { %3562 = vst [vmem:[#allocation1] ss:$9 sm:$0xff] %v8368_v18  ;;  %v3583_v45 = vunpack.c.l.b16 %v3560_v30  ;;  %v6414_v30 = vld [vmem:[%s8797_s2 + $0x488] sm:$0xff] }
 0xbfd   :  { %5071 = vmatpush.bf16.msrb.mxu2 %v6414_v30  ;;  %v6457_v30 = vld [vmem:[%s8797_s2 + $0x5e0] sm:$0xff] }
 0xbfe   :  { %v4259_v0 = vpop.f32.mrf.mxu2  ;;  %v3590_v1 = vrot.slane %v3583_v45, 7 }
 0xbff   :  { %v6423_v0 = vld [vmem:[%s8797_s2 + $0x4d0] sm:$0xff] }
 0xc00   :  { %v3591_v56 = vsel %vm623_vm7, %v3590_v1, %v3582_v33  ;;  %5083 = vmatpush.bf16.msrb.mxu3 %v6423_v0  ;;  %v6431_v33 = vld [vmem:[%s8797_s2 + $0x510] sm:$0xff] }
 0xc03   :  { %v3563_v57 = vld [vmem:[#allocation1] sm:$0xf] }
 0xc04   :  { %3566 = vst [vmem:[#allocation1] ss:$9 sm:$0xff] %v3138_v51  ;;  %v3584_v62 = vunpack.c.l.b16 %v3563_v57  ;;  %v6433_v51 = vld [vmem:[%s8797_s2 + $0x520] sm:$0xff] }
 0xc05   :  { %v6441_v57 = vld [vmem:[%s8797_s2 + $0x560] sm:$0xff] }
 0xc06   :  { %v3592_v22 = vrot.slane %v3584_v62, 6  ;;  %v6432_v62 = vld [vmem:[%s8797_s2 + $0x518] sm:$0xff]  ;;  %5107 = vmatpush.bf16.msra.mxu1 %v6441_v57 }
 0xc07   :  { %v6468_v57 = vld [vmem:[%s8797_s2 + $0x638] sm:$0xff] }
 0xc08   :  { %v3593_v50 = vsel %vm626_vm8, %v3592_v22, %v3591_v56  ;;  %v6421_v22 = vld [vmem:[%s8797_s2 + $0x4c0] sm:$0xff]  ;;  %v6451_v56 = vld [vmem:[%s8797_s2 + $0x5b0] sm:$0xff] }
 0xc0b   :  { %v3567_v24 = vld [vmem:[#allocation1] sm:$0xf] }
 0xc0c   :  { %3569 = vst [vmem:[#allocation1] ss:$9 sm:$0xff] %v8083_v21  ;;  %v3585_v37 = vunpack.c.l.b16 %v3567_v24  ;;  %v6413_v24 = vld [vmem:[%s8797_s2 + $0x480] sm:$0xff] }
 0xc0d   :  { %5072 = vmatpush.bf16.msrb.mxu2 %v6413_v24 }
 0xc13   :  { %v3570_v35 = vld [vmem:[#allocation1] sm:$0xf] }
 0xc14   :  { %3572 = vst [vmem:[#allocation1] ss:$9 sm:$0xff] %v3142_v52  ;;  %v3586_v17 = vunpack.c.l.b16 %v3570_v35  ;;  %v6422_v35 = vld [vmem:[%s8797_s2 + $0x4c8] sm:$0xff] }
 0xc15   :  { %5084 = vmatpush.bf16.msrb.mxu3 %v6422_v35 }
 0xc16   :  { %v3596_v12 = vrot.slane %v3586_v17, 4  ;;  %v6440_v17 = vld [vmem:[%s8797_s2 + $0x558] sm:$0xff] }
 0xc17   :  { %5108 = vmatpush.bf16.msra.mxu1 %v6440_v17  ;;  %v6465_v17 = vld [vmem:[%s8797_s2 + $0x620] sm:$0xff] }
 0xc19   :  { %5085 = vmatpush.bf16.msrb.mxu3 %v6421_v22 }
 0xc1b   :  { %v3573_v6 = vld [vmem:[#allocation1] sm:$0xf] }
 0xc1c   :  { %3575 = vst [vmem:[#allocation1] ss:$9 sm:$0xff] %v8394_v46  ;;  %v3587_v21 = vunpack.c.l.b16 %v3573_v6  ;;  %v3594_v46 = vrot.slane %v3585_v37, 5  ;;  %v6452_v37 = vld [vmem:[%s8797_s2 + $0x5b8] sm:$0xff] }
 0xc1d   :  { %5117 = vmatpush.bf16.msra.mxu2 %v6452_v37  ;;  %5130 = vmatpush.bf16.msra.mxu3 %v6460_v3  ;;  %v6471_v3 = vld [vmem:[%s8797_s2 + $0x650] sm:$0xff] }
 0xc1e   :  { %v3598_v16 = vrot.slane %v3587_v21, 3  ;;  %v3595_v34 = vsel %vm629_vm9, %v3594_v46, %v3593_v50 }
 0xc1f   :  { %v3597_v19 = vsel %vm632_vm10, %v3596_v12, %v3595_v34 }
 0xc20   :  { %v3599_v20 = vsel %vm635_vm11, %v3598_v16, %v3597_v19  ;;  %v6450_v19 = vld [vmem:[%s8797_s2 + $0x5a8] sm:$0xff] }
 0xc21   :  { %5118 = vmatpush.bf16.msra.mxu2 %v6451_v56  ;;  %5131 = vmatpush.bf16.msra.mxu3 %v6459_v14  ;;  %v6475_v56 = vld [vmem:[%s8797_s2 + $0x670] sm:$0xff]  ;;  %v6470_v14 = vld [vmem:[%s8797_s2 + $0x648] sm:$0xff] }
 0xc23   :  { %v3576_v18 = vld [vmem:[#allocation1] sm:$0xf] }
 0xc24   :  { %3579 = vst [vmem:[#allocation1] ss:$9 sm:$0xff] %v3146_v42  ;;  %v3588_v52 = vunpack.c.l.b16 %v3576_v18 }
 0xc25   :  { %5119 = vmatpush.bf16.msra.mxu2 %v6450_v19  ;;  %5132 = vmatpush.bf16.msra.mxu3 %v6458_v61  ;;  %v6473_v19 = vld [vmem:[%s8797_s2 + $0x660] sm:$0xff] }
 0xc26   :  { %v3600_v40 = vrot.slane %v3588_v52, 2 }
 0xc28   :  { %v3601_v15 = vsel %vm638_vm12, %v3600_v40, %v3599_v20  ;;  %v6430_v40 = vld [vmem:[%s8797_s2 + $0x508] sm:$0xff] }
 0xc29   :  { %5133 = vmatpush.bf16.msra.mxu3 %v6457_v30 }
 0xc2b   :  { %v3580_v26 = vld [vmem:[#allocation1] sm:$0xf] }
 0xc2c   :  { %v3589_v8 = vunpack.c.l.b16 %v3580_v26  ;;  %4371 = vst [vmem:[#allocation1] ss:$9 sm:$0xff] %v4355_v7  ;;  %v6439_v26 = vld [vmem:[%s8797_s2 + $0x550] sm:$0xff] }
 0xc2d   :  { %5109 = vmatpush.bf16.msra.mxu1 %v6439_v26  ;;  %v6463_v26 = vld [vmem:[%s8797_s2 + $0x610] sm:$0xff] }
 0xc2e   :  { %v3602_v9 = vrot.slane %v3589_v8, 1 }
 0xc30   :  { %v3603_v2 = vsel %vm641_vm13, %v3602_v9, %v3601_v15  ;;  %v6438_v9 = vld [vmem:[%s8797_s2 + $0x548] sm:$0xff] }
 0xc31   :  { %v3604_v48 = vpack.c.b16 %v3603_v2, %v3603_v2  ;;  %5110 = vmatpush.bf16.msra.mxu1 %v6438_v9 }
 0xc33   :  { %4295 = vmatmul.bf16.vlgmr.msrb.gmra.mxu1 %v3604_v48  ;;  %v8497_v41 = vld [vmem:[#allocation1] sm:$0xf] }
 0xc34   :  { %4374 = vst [vmem:[#allocation1] ss:$9 sm:$0xff] %v4355_v7  ;;  %v4377_v6 = vunpack.c.l.b16 %v8497_v41  ;;  %v6429_v48 = vld [vmem:[%s8797_s2 + $0x500] sm:$0xff] }
 0xc35   :  { %5111 = vmatpush.bf16.msra.mxu1 %v6437_v32  ;;  %v6472_v32 = vld [vmem:[%s8797_s2 + $0x658] sm:$0xff] }
 0xc36   :  { %v4270_v54 = vpop.f32.mrf.mxu3 }
 0xc37   :  { %v8487_v63 = vadd.f32 %v4270_v54, %v4258_v11  ;;  %v6434_v11 = vld [vmem:[%s8797_s2 + $0x528] sm:$0xff] }
 0xc38   :  { %5093 = vmatpush.bf16.msrb.mxu0 %v6434_v11 }
 0xc3b   :  { %v4375_v38 = vld [vmem:[#allocation1] sm:$0xf] }
 0xc3c   :  { %4383 = vst [vmem:[#allocation1] ss:$9 sm:$0xff] %v4355_v7  ;;  %5094 = vmatpush.bf16.msrb.mxu0 %v6433_v51  ;;  %v4378_v42 = vunpack.c.l.b16 %v4375_v38  ;;  %v6456_v51 = vld [vmem:[%s8797_s2 + $0x5d8] sm:$0xff] }
 0xc3d   :  { %5134 = vmatpush.bf16.msra.mxu3 %v6456_v51 }
 0xc3e   :  { %v4272_v10 = vpop.f32.mrf.mxu3  ;;  %v4379_v21 = vrot.slane %v4378_v42, 7  ;;  %v6476_v42 = vld [vmem:[%s8797_s2 + $0x678] sm:$0xff] }
 0xc3f   :  { %5156 = vmatpush.bf16.msrb.mxu1 %v6476_v42 }
 0xc40   :  { %5095 = vmatpush.bf16.msrb.mxu0 %v6432_v62  ;;  %v4380_v46 = vsel %vm623_vm7, %v4379_v21, %v4377_v6  ;;  %v6467_v6 = vld [vmem:[%s8797_s2 + $0x630] sm:$0xff]  ;;  %v6454_v62 = vld [vmem:[%s8797_s2 + $0x5c8] sm:$0xff] }
 0xc41   :  { %v4381_v16 = vpack.c.b16 %v4380_v46, %v4380_v46 }
 0xc43   :  { %v4384_v53 = vld [vmem:[#allocation1] sm:$0xf]  ;;  %5073 = vmatmul.bf16.vlgmr.msrb.gmra.mxu2 %v4381_v16  ;;  %5157 = vmatpush.bf16.msrb.mxu1 %v6475_v56 }
 0xc44   :  { %4386 = vst [vmem:[#allocation1] ss:$9 sm:$0xff] %v4355_v7  ;;  %v4389_v45 = vunpack.c.l.b16 %v4384_v53  ;;  %5096 = vmatpush.bf16.msrb.mxu0 %v6431_v33 }
 0xc46   :  { %v4391_v1 = vrot.slane %v4389_v45, 1  ;;  %v6455_v45 = vld [vmem:[%s8797_s2 + $0x5d0] sm:$0xff] }
 0xc47   :  { %5135 = vmatpush.bf16.msra.mxu3 %v6455_v45 }
 0xc48   :  { %5097 = vmatpush.bf16.msrb.mxu0 %v6430_v40 }
 0xc4b   :  { %v4387_v31 = vld [vmem:[#allocation1] sm:$0xf]  ;;  %5136 = vmatpush.bf16.msra.mxu3 %v6454_v62 }
 0xc4c   :  { %4396 = vst [vmem:[#allocation1] ss:$9 sm:$0xff] %v4365_v25  ;;  %v4390_v18 = vunpack.c.l.b16 %v4387_v31  ;;  %5098 = vmatpush.bf16.msrb.mxu0 %v6429_v48 }
 0xc4e   :  { %v4392_v7 = vsel %vm623_vm7, %v4390_v18, %v4391_v1  ;;  %v6466_v18 = vld [vmem:[%s8797_s2 + $0x628] sm:$0xff]  ;;  %v6453_v1 = vld [vmem:[%s8797_s2 + $0x5c0] sm:$0xff] }
 0xc4f   :  { %v4393_v50 = vpack.c.b16 %v4392_v7, %v4392_v7  ;;  %5137 = vmatpush.bf16.msra.mxu3 %v6453_v1 }
 0xc50   :  { %5143 = vmatpush.bf16.msra.mxu0 %v6468_v57  ;;  %v6480_v57 = vld [vmem:[%s8797_s2 + $0x698] sm:$0xff] }
 0xc51   :  { %5086 = vmatmul.bf16.vlgmr.msrb.gmra.mxu3 %v4393_v50  ;;  %v6474_v50 = vld [vmem:[%s8797_s2 + $0x668] sm:$0xff] }
 0xc52   :  { %5158 = vmatpush.bf16.msrb.mxu1 %v6474_v50 }
 0xc53   :  { %v8523_v43 = vld [vmem:[#allocation1] sm:$0xf] }
 0xc54   :  { %4399 = vst [vmem:[#allocation1] ss:$9 sm:$0xff] %v4365_v25  ;;  %v4402_v8 = vunpack.c.l.b16 %v8523_v43  ;;  %5144 = vmatpush.bf16.msra.mxu0 %v6467_v6  ;;  %v6478_v6 = vld [vmem:[%s8797_s2 + $0x688] sm:$0xff] }
 0xc56   :  { %5159 = vmatpush.bf16.msrb.mxu1 %v6473_v19 }
 0xc58   :  { %5145 = vmatpush.bf16.msra.mxu0 %v6466_v18 }
 0xc5a   :  { %5160 = vmatpush.bf16.msrb.mxu1 %v6472_v32 }
 0xc5b   :  { %v4400_v52 = vld [vmem:[#allocation1] sm:$0xf] }
 0xc5c   :  { %v4403_v12 = vunpack.c.l.b16 %v4400_v52  ;;  %5146 = vmatpush.bf16.msra.mxu0 %v6465_v17 }
 0xc5e   :  { %v4404_v34 = vrot.slane %v4403_v12, 7  ;;  %v6464_v12 = vld [vmem:[%s8797_s2 + $0x618] sm:$0xff]  ;;  %5161 = vmatpush.bf16.msrb.mxu1 %v6471_v3 }
 0xc5f   :  { %v6492_v3 = vld [vmem:[%s8798_s3 + $0x38] sm:$0xff] }
 0xc60   :  { %v4405_v54 = vsel %vm623_vm7, %v4404_v34, %v4402_v8  ;;  %5147 = vmatpush.bf16.msra.mxu0 %v6464_v12  ;;  %v6462_v34 = vld [vmem:[%s8797_s2 + $0x608] sm:$0xff]  ;;  %5250 = vmatpush.bf16.msrb.mxu3 %v6492_v3 }
 0xc61   :  { %v4406_v5 = vpack.c.b16 %v4405_v54, %v4405_v54 }
 0xc62   :  { %5162 = vmatpush.bf16.msrb.mxu1 %v6470_v14  ;;  %v6489_v14 = vld [vmem:[%s8798_s3 + $0x20] sm:$0xff] }
 0xc63   :  { %5099 = vmatmul.bf16.vlgmr.msrb.gmra.mxu0 %v4406_v5 }
 0xc64   :  { %5148 = vmatpush.bf16.msra.mxu0 %v6463_v26 }
 0xc68   :  { %5149 = vmatpush.bf16.msra.mxu0 %v6462_v34 }
 0xc70   :  { %v8495_v47 = vpop.f32.mrf.mxu0 }
 0xc71   :  { %v4284_v20 = vadd.f32 %v8495_v47, %v8487_v63  ;;  %v6449_v63 = vld [vmem:[%s8797_s2 + $0x5a0] sm:$0xff] }
 0xc72   :  { %5120 = vmatpush.bf16.msra.mxu2 %v6449_v63  ;;  %v6461_v63 = vld [vmem:[%s8797_s2 + $0x600] sm:$0xff] }
 0xc73   :  { %5150 = vmatpush.bf16.msra.mxu0 %v6461_v63 }
 0xc78   :  { %v4285_v4 = vpop.f32.mrf.mxu0 }
 0xc79   :  { %v6448_v4 = vld [vmem:[%s8797_s2 + $0x598] sm:$0xff] }
 0xc7a   :  { %5121 = vmatpush.bf16.msra.mxu2 %v6448_v4 }
 0xc7e   :  { %5122 = vmatpush.bf16.msra.mxu2 %v6447_v60  ;;  %v6483_v60 = vld [vmem:[%s8797_s2 + $0x6b0] sm:$0xff] }
 0xc82   :  { %5123 = vmatpush.bf16.msra.mxu2 %v6446_v27 }
 0xc86   :  { %5124 = vmatpush.bf16.msra.mxu2 %v6445_v49 }
 0xcb0   :  { %v4296_v15 = vpop.f32.mrf.mxu1 }
 0xcb1   :  { %v4297_v2 = vadd.f32 %v4296_v15, %v4284_v20 }
 0xcb3   :  { %v4300_v10 = vmax.f32 %v4297_v2, 0.0 }
 0xcb5   :  { %v8610_v47 = vpack.c.bf16 %v4300_v10, %v4300_v10 }
 0xcb7   :  { %v8616_v41 = vrot.slane %v8610_v47, 3 }
 0xcb8   :  { %v4298_v38 = vpop.f32.mrf.mxu1 }
 0xcb9   :  { %v4307_v53 = vsel %vm341_vm1, %v8610_v47, %v8616_v41  ;;  %v4311_v25 = vsel %vm626_vm8, %v8610_v47, %v8616_v41  ;;  %v4308_v16 = vsel %vm623_vm7, %v8610_v47, %v8616_v41  ;;  %v4314_v54 = vsel %vm629_vm9, %v8610_v47, %v8616_v41 }
 0xcba   :  { %v4313_v39 = vrot.slane %v4311_v25, 2  ;;  %v4317_v31 = vshrl.u32 %v4307_v53, 16  ;;  %v4320_v44 = vshll.u32 %v4307_v53, 16  ;;  %v4310_v40 = vrot.slane %v4308_v16, 1  ;;  %v6484_v25 = vld [vmem:[%s8797_s2 + $0x6b8] sm:$0xff] }
 0xcbb   :  { %v4316_v4 = vrot.slane %v4314_v54, 3  ;;  %5169 = vmatpush.bf16.msrb.mxu2 %v6484_v25 }
 0xcbc   :  { %v4319_v13 = vrot.slane %v4317_v31, 7  ;;  %v4331_v36 = vshrl.u32 %v4313_v39, 16  ;;  %v4334_v58 = vshll.u32 %v4313_v39, 16  ;;  %v4324_v15 = vshrl.u32 %v4310_v40, 16 }
 0xcbd   :  { %v4327_v53 = vshll.u32 %v4310_v40, 16  ;;  %v4338_v31 = vshrl.u32 %v4316_v4, 16 }
 0xcbe   :  { %v4322_v55 = vor.u32 %v4320_v44, %v4319_v13  ;;  %v4333_v43 = vrot.slane %v4331_v36, 7  ;;  %v4326_v38 = vrot.slane %v4324_v15, 7  ;;  %v6482_v36 = vld [vmem:[%s8797_s2 + $0x6a8] sm:$0xff] }
 0xcbf   :  { %v4340_v13 = vrot.slane %v4338_v31, 7  ;;  %5170 = vmatpush.bf16.msrb.mxu2 %v6483_v60  ;;  %v6490_v31 = vld [vmem:[%s8798_s3 + $0x28] sm:$0xff] }
 0xcc0   :  { %v4348_v29 = vsel %vm6620_vm3, 0, %v4322_v55  ;;  %v4336_v11 = vor.u32 %v4334_v58, %v4333_v43  ;;  %v4329_v39 = vor.u32 %v4327_v53, %v4326_v38  ;;  %v4341_v55 = vshll.u32 %v4316_v4, 16  ;;  %v6469_v43 = vld [vmem:[%s8797_s2 + $0x640] sm:$0xff] }
 0xcc1   :  { %v4356_v23 = vsel %vm8473_vm6, %v4348_v29, 0  ;;  %5163 = vmatpush.bf16.msrb.mxu1 %v6469_v43  ;;  %v6486_v43 = vld [vmem:[%s8798_s3 + $0x8] sm:$0xff] }
 0xcc2   :  { %4409 = vst [vmem:[#allocation1] ss:$9 sm:$0xff] %v4356_v23  ;;  %v4350_v0 = vsel %vm6620_vm3, 0, %v4336_v11  ;;  %v4366_v20 = vrot.slane %v4356_v23, 1  ;;  %v4349_v44 = vsel %vm6620_vm3, 0, %v4329_v39  ;;  %v4343_v58 = vor.u32 %v4341_v55, %v4340_v13  ;;  %v6491_v39 = vld [vmem:[%s8798_s3 + $0x30] sm:$0xff] }
 0xcc3   :  { %v8659_v24 = vsel %vm8473_vm6, %v4350_v0, 0  ;;  %v4357_v27 = vsel %vm8473_vm6, %v4349_v44, 0  ;;  %5171 = vmatpush.bf16.msrb.mxu2 %v6482_v36  ;;  %5251 = vmatpush.bf16.msrb.mxu3 %v6491_v39  ;;  %v6488_v13 = vld [vmem:[%s8798_s3 + $0x18] sm:$0xff]  ;;  %v6487_v36 = vld [vmem:[%s8798_s3 + $0x10] sm:$0xff] }
 0xcc4   :  { %v4368_v47 = vrot.slane %v8659_v24, 1  ;;  %v4351_v30 = vsel %vm6620_vm3, 0, %v4343_v58 }
 0xcc6   :  { %v5074_v15 = vpop.f32.mrf.mxu2 }
 0xcc7   :  { %5252 = vmatpush.bf16.msrb.mxu3 %v6490_v31 }
 0xcc9   :  { %v4410_v35 = vld [vmem:[#allocation1] sm:$0xf] }
 0xcca   :  { %4413 = vst [vmem:[#allocation1] ss:$9 sm:$0xff] %v8659_v24  ;;  %v4416_v52 = vunpack.c.l.b16 %v4410_v35 }
 0xccb   :  { %5253 = vmatpush.bf16.msrb.mxu3 %v6489_v14 }
 0xcce   :  { %v5076_v32 = vpop.f32.mrf.mxu2 }
 0xccf   :  { %5254 = vmatpush.bf16.msrb.mxu3 %v6488_v13 }
 0xcd1   :  { %v4414_v37 = vld [vmem:[#allocation1] sm:$0xf] }
 0xcd2   :  { %v4417_v21 = vunpack.c.l.b16 %v4414_v37  ;;  %4422 = vst [vmem:[#allocation1] ss:$9 sm:$0xff] %v4356_v23  ;;  %v6481_v23 = vld [vmem:[%s8797_s2 + $0x6a0] sm:$0xff] }
 0xcd3   :  { %5172 = vmatpush.bf16.msrb.mxu2 %v6481_v23  ;;  %5255 = vmatpush.bf16.msrb.mxu3 %v6487_v36 }
 0xcd4   :  { %v4418_v22 = vrot.slane %v4417_v21, 7 }
 0xcd6   :  { %v4419_v33 = vsel %vm623_vm7, %v4418_v22, %v4416_v52  ;;  %v4367_v52 = vrot.slane %v4357_v27, 1 }
 0xcd7   :  { %v4420_v46 = vpack.c.b16 %v4419_v33, %v4419_v33  ;;  %5173 = vmatpush.bf16.msrb.mxu2 %v6480_v57  ;;  %5256 = vmatpush.bf16.msrb.mxu3 %v6486_v43 }
 0xcd9   :  { %5112 = vmatmul.bf16.vlgmr.msra.gmra.mxu1 %v4420_v46  ;;  %v4423_v7 = vld [vmem:[#allocation1] sm:$0xf] }
 0xcda   :  { %4425 = vst [vmem:[#allocation1] ss:$9 sm:$0xff] %v8659_v24  ;;  %v4428_v8 = vunpack.c.l.b16 %v4423_v7  ;;  %v4359_v24 = vsel %vm8473_vm6, %v4351_v30, 0 }
 0xcdb   :  { %5174 = vmatpush.bf16.msrb.mxu2 %v6479_v28  ;;  %v4369_v56 = vrot.slane %v4359_v24, 1 }
 0xcdc   :  { %v4430_v48 = vrot.slane %v4428_v8, 1 }
 0xcdf   :  { %5175 = vmatpush.bf16.msrb.mxu2 %v6478_v6 }
 0xce0   :  { %v5100_v63 = vpop.f32.mrf.mxu0 }
 0xce1   :  { %v4426_v9 = vld [vmem:[#allocation1] sm:$0xf] }
 0xce2   :  { %v4429_v2 = vunpack.c.l.b16 %v4426_v9  ;;  %4435 = vst [vmem:[#allocation1] ss:$9 sm:$0xff] %v4366_v20  ;;  %v6502_v20 = vld [vmem:[%s8799_s4] sm:$0xff] }
 0xce3   :  { %5176 = vmatpush.bf16.msrb.mxu2 %v6477_v59  ;;  %v4632_v9 = vperm.slane %v6502_v20, 3  ;;  %v5201_v28 = vperm.slane %v6502_v20, 4 }
 0xce4   :  { %v4431_v10 = vsel %vm623_vm7, %v4429_v2, %v4430_v48  ;;  %v5087_v48 = vpop.f32.mrf.mxu3 }
 0xce5   :  { %v4432_v5 = vpack.c.b16 %v4431_v10, %v4431_v10  ;;  %v5075_v2 = vadd.f32 %v5074_v15, %v4632_v9 }
 0xce7   :  { %5125 = vmatmul.bf16.vlgmr.msra.gmra.mxu2 %v4432_v5  ;;  %v5088_v54 = vadd.f32 %v5087_v48, %v5075_v2 }
 0xce8   :  { %v5102_v4 = vpop.f32.mrf.mxu0 }
 0xce9   :  { %v4436_v41 = vld [vmem:[#allocation1] sm:$0xf]  ;;  %v5101_v10 = vadd.f32 %v5100_v63, %v5088_v54 }
 0xcea   :  { %4439 = vst [vmem:[#allocation1] ss:$9 sm:$0xff] %v4368_v47  ;;  %v4442_v11 = vunpack.c.l.b16 %v4436_v41 }
 0xcec   :  { %v5089_v5 = vpop.f32.mrf.mxu3 }
 0xcf1   :  { %v4440_v61 = vld [vmem:[#allocation1] sm:$0xf] }
 0xcf2   :  { %v4443_v29 = vunpack.c.l.b16 %v4440_v61  ;;  %4449 = vst [vmem:[#allocation1] ss:$9 sm:$0xff] %v4357_v27  ;;  %v6485_v61 = vld [vmem:[%s8798_s3] sm:$0xff]  ;;  %s5301_s3 = sshll.u32 %s8801_s6, 4  ;;  %s6557_s6 = smov [#allocation2]   ;;  %s5302_s3 = int_to_ptr.hbm [resolvable:$true] %s5301_s3 }
 0xcf3   :  { %5257 = vmatpush.bf16.msrb.mxu3 %v6485_v61  ;;  %s5288_s8 = sshll.u32 %s6557_s6, 4  ;;  %s5289_s8 = int_to_ptr.vmem [resolvable:$true] %s5288_s8 }
 0xcf4   :  { %v4444_v49 = vrot.slane %v4443_v29, 7 }
 0xcf6   :  { %v4445_v0 = vsel %vm623_vm7, %v4444_v49, %v4442_v11 }
 0xcf7   :  { %v4446_v51 = vpack.c.b16 %v4445_v0, %v4445_v0 }
 0xcf9   :  { %5138 = vmatmul.bf16.vlgmr.msra.gmra.mxu3 %v4446_v51  ;;  %v4450_v35 = vld [vmem:[#allocation1] sm:$0xf] }
 0xcfa   :  { %4453 = vst [vmem:[#allocation1] ss:$9 sm:$0xff] %v4359_v24  ;;  %v4456_v18 = vunpack.c.l.b16 %v4450_v35 }
 0xd01   :  { %v4454_v42 = vld [vmem:[#allocation1] sm:$0xf] }
 0xd02   :  { %v4457_v45 = vunpack.c.l.b16 %v4454_v42  ;;  %4462 = vst [vmem:[#allocation1] ss:$9 sm:$0xff] %v4357_v27 }
 0xd04   :  { %v4458_v62 = vrot.slane %v4457_v45, 7 }
 0xd06   :  { %v4459_v37 = vsel %vm623_vm7, %v4458_v62, %v4456_v18 }
 0xd07   :  { %v4460_v17 = vpack.c.b16 %v4459_v37, %v4459_v37 }
 0xd09   :  { %5151 = vmatmul.bf16.vlgmr.msra.gmra.mxu0 %v4460_v17  ;;  %v4463_v21 = vld [vmem:[#allocation1] sm:$0xf] }
 0xd0a   :  { %4465 = vst [vmem:[#allocation1] ss:$9 sm:$0xff] %v4359_v24  ;;  %v4468_v1 = vunpack.c.l.b16 %v4463_v21 }
 0xd0c   :  { %v4470_v46 = vrot.slane %v4468_v1, 1 }
 0xd11   :  { %v4466_v22 = vld [vmem:[#allocation1] sm:$0xf] }
 0xd12   :  { %v4469_v33 = vunpack.c.l.b16 %v4466_v22  ;;  %4475 = vst [vmem:[#allocation1] ss:$9 sm:$0xff] %v4367_v52 }
 0xd14   :  { %v4471_v7 = vsel %vm623_vm7, %v4469_v33, %v4470_v46 }
 0xd15   :  { %v4472_v12 = vpack.c.b16 %v4471_v7, %v4471_v7 }
 0xd17   :  { %5164 = vmatmul.bf16.vlgmr.msrb.gmra.mxu1 %v4472_v12 }
 0xd19   :  { %v4476_v16 = vld [vmem:[#allocation1] sm:$0xf] }
 0xd1a   :  { %4479 = vst [vmem:[#allocation1] ss:$9 sm:$0xff] %v4369_v56  ;;  %v4482_v40 = vunpack.c.l.b16 %v4476_v16 }
 0xd21   :  { %v4480_v26 = vld [vmem:[#allocation1] sm:$0xf] }
 0xd22   :  { %v4483_v50 = vunpack.c.l.b16 %v4480_v26 }
 0xd24   :  { %v4484_v8 = vrot.slane %v4483_v50, 7 }
 0xd26   :  { %v4485_v34 = vsel %vm623_vm7, %v4484_v8, %v4482_v40 }
 0xd27   :  { %v4486_v19 = vpack.c.b16 %v4485_v34, %v4485_v34 }
 0xd29   :  { %5177 = vmatmul.bf16.vlgmr.msrb.gmra.mxu2 %v4486_v19 }
 0xd56   :  { %v5113_v38 = vpop.f32.mrf.mxu1 }
 0xd57   :  { %v5114_v53 = vadd.f32 %v5113_v38, %v5101_v10 }
 0xd5e   :  { %v5115_v47 = vpop.f32.mrf.mxu1 }
 0xd6a   :  { %v5126_v41 = vpop.f32.mrf.mxu2 }
 0xd6b   :  { %v5127_v23 = vadd.f32 %v5126_v41, %v5114_v53 }
 0xd72   :  { %v5128_v25 = vpop.f32.mrf.mxu2 }
 0xd7c   :  { %v5139_v60 = vpop.f32.mrf.mxu3 }
 0xd7d   :  { %v5140_v11 = vadd.f32 %v5139_v60, %v5127_v23 }
 0xd84   :  { %v5141_v44 = vpop.f32.mrf.mxu3 }
 0xd86   :  { %v5152_v55 = vpop.f32.mrf.mxu0 }
 0xd87   :  { %v5153_v49 = vadd.f32 %v5152_v55, %v5140_v11 }
 0xd8e   :  { %v5154_v27 = vpop.f32.mrf.mxu0 }
 0xd94   :  { %v5165_v58 = vpop.f32.mrf.mxu1 }
 0xd95   :  { %v5166_v30 = vadd.f32 %v5165_v58, %v5153_v49 }
 0xd9c   :  { %v5167_v29 = vpop.f32.mrf.mxu1 }
 0xdac   :  { %v5178_v0 = vpop.f32.mrf.mxu2 }
 0xdad   :  { %v5179_v51 = vadd.f32 %v5178_v0, %v5166_v30 }
 0xdaf   :  { %v5182_v57 = vmax.f32 %v5179_v51, 0.0 }
 0xdb1   :  { %5183 = vst [vmem:[#allocation4] sm:$0x3] %v5182_v57  ;;  %v5184_v24 = vpack.c.bf16 %v5182_v57, %v5182_v57 }
 0xdb2   :  { %5304 = dma.vmem_to_hbm [thread:$0]  %s5300_s30, 32, %s5302_s3, [#allocation5]  }
 0xdb3   :  { %5258 = vmatmul.bf16.vlgmr.msrb.gmra.mxu3 %v5184_v24 }
 0xdb4   :  { %v5180_v35 = vpop.f32.mrf.mxu2 }
 0xe36   :  { %v5259_v6 = vpop.f32.mrf.mxu3 }
 0xe37   :  { %v5260_v42 = vadd.f32 %v5259_v6, %v5201_v28 }
 0xe39   :  { %v5263_v45 = vsub.f32 0.0, %v5260_v42 }
 0xe3b   :  { %v5264_v59 = vmul.f32 1.442695, %v5263_v45 }
 0xe3d   :  { %6496 = vpow2.f32 %v5264_v59 }
 0xe3e   :  { %v5261_v18 = vpop.f32.mrf.mxu3 }
 0xe43   :  { %v6497_v62 = vpop.eup %6496 }
 0xe44   :  { %v5266_v37 = vadd.f32 1.0, %v6497_v62 }
 0xe46   :  { %6498 = vrcp.f32 %v5266_v37  ;;  %v5278_v52 = vand.u32 2147483648, %v5266_v37  ;;  %v5276_v33 = vand.u32 2147483647, %v5266_v37  ;;  %vm5272_vm3 = vweird.f32 %v5266_v37 }
 0xe48   :  { %v5279_v7 = vor.u32 1.1754944e-38, %v5278_v52  ;;  %vm5277_vm8 = vcmp.eq.f32.partialorder %v5276_v33, 8.507059e+37 }
 0xe4c   :  { %v6499_v17 = vpop.eup %6498 }
 0xe4d   :  { %v5268_v21 = vmul.f32 %v6499_v17, %v5266_v37  ;;  %vm5273_vm1 = vweird.f32 %v6499_v17 }
 0xe4e   :  { %vm5274_vm7 = vmor %vm5272_vm3, %vm5273_vm1 }
 0xe4f   :  { %v5269_v1 = vsub.f32 1.0, %v5268_v21 }
 0xe51   :  { %v5270_v22 = vmul.f32 %v6499_v17, %v5269_v1 }
 0xe53   :  { %v5271_v46 = vadd.f32 %v6499_v17, %v5270_v22 }
 0xe55   :  { %v5275_v12 = vsel %vm5274_vm7, %v6499_v17, %v5271_v46 }
 0xe56   :  { %v5280_v56 = vsel %vm5277_vm8, %v5279_v7, %v5275_v12 }
 0xe57   :  { %5282 = vst [vmem:[#allocation2] sm:$0x3] %v5280_v56 }
 0xe58   :  { %5293 = dma.vmem_to_hbm [thread:$0]  %s5289_s8, 32, %s5291_s11, [#allocation3]  }
 0xe59   :  { %6551 = dma.done.wait [#allocation3], 32  }
 0xe5a   :  { %6552 = vsyncadd [#allocation3], 4294967264 }
 0xe5b   :  { %6553 = dma.done.wait [#allocation5], 32  }
 0xe5c   :  { %6554 = vsyncadd [#allocation5], 4294967264 }
 0xe5d   :  { %5313 = vsyncpa [#allocation3], 1 }
 0xe5e   :  { %5314 = vsyncpa [#allocation5], 1 }

</bundles_post_ra>
